<compile_context>
chip_gen: v7x
topology: tpu7x:2x2x1
jax: 0.10.0
libtpu: 0.0.40
codegen_flags: <defaults>
</compile_context>

<pallas_src>
import jax
import jax.numpy as jnp
from jax.experimental import pallas as pl
from jax.experimental.pallas import tpu as pltpu

_LANE = 128
_VMEM_STEP_BUDGET = 16 * 1024 * 1024   # target live bytes per grid step
_VMEM_LIMIT = 32 * 1024 * 1024         # <= scoped default on v6e/v7x, raises v5e's 16 MiB
_MAX_NB = 8                            # cap on (b,c) pairs per step (bounds unrolled dots)
_MAX_LANES = 1024                      # cap on folded lane width (keeps sel <= 2 MiB bf16)


def _split_exact(v):
    """Split v into MXU-ready bf16 pieces whose sum reconstructs v exactly.

    f32 -> three bf16 pieces (disjoint 8+8+8 mantissa bits, exact split);
    bf16 -> itself.  Each piece times a 0/1 bf16 selection matrix accumulated
    in f32 is exact, so the squeeze is bit-exact at default MXU precision.
    """
    if v.dtype == jnp.float32:
        hi = v.astype(jnp.bfloat16)
        r1 = v - hi.astype(jnp.float32)
        mid = r1.astype(jnp.bfloat16)
        lo = (r1 - mid.astype(jnp.float32)).astype(jnp.bfloat16)
        return (hi, mid, lo)
    return (v,)


def _sel_dot(pieces, sel, out_dtype):
    """sum_k pieces[k] @ sel, accumulated in f32, cast to out_dtype."""
    acc = jnp.dot(pieces[0], sel, preferred_element_type=jnp.float32)
    for pc in pieces[1:]:
        acc = acc + jnp.dot(pc, sel, preferred_element_type=jnp.float32)
    return acc.astype(out_dtype)


def _make_kernel(nb, w, sliced):
    if sliced:
        def kernel(x_ref, s_ref, o_ref):
            # x_ref: (NB, TG, 2W)   row i lanes = [row 2i | row 2i+1]   (dy slice is free)
            # s_ref: (2, W, W2)     s_ref[dx][src_w, j] = (src_w == 2j + dx)
            # o_ref: (NB, 4, TG, W2)
            for b in range(nb):
                pieces = _split_exact(x_ref[b])
                for dy in range(2):
                    dyp = tuple(pc[:, dy * w:(dy + 1) * w] for pc in pieces)
                    for dx in range(2):
                        o_ref[b, 2 * dy + dx] = _sel_dot(dyp, s_ref[dx], o_ref.dtype)
        return kernel

    def kernel(x_ref, s_ref, o_ref):
        # Folded path (small W2): R output rows live on the lane axis.
        # x_ref: (NB, TG, L)     group lanes = input rows [2Rg .. 2Rg+2R-1] concatenated
        # s_ref: (4, L, P)       one 0/1 selection block per output plane (P = R*W2)
        # o_ref: (NB, 4, TG, P)
        for b in range(nb):
            pieces = _split_exact(x_ref[b])
            for p in range(4):
                o_ref[b, p] = _sel_dot(pieces, s_ref[p], o_ref.dtype)
    return kernel


def _divisors(n):
    return [d for d in range(1, n + 1) if n % d == 0]


def _choose_fold(h2, w2, w):
    """Row-fold factor R (divides H2): output lane width becomes R*W2."""
    if w2 >= _LANE:
        return 1
    best = 1
    for r in _divisors(h2):                 # ascending
        if 2 * r * w > _MAX_LANES:
            continue
        best = r
        if r * w2 >= _LANE:                  # smallest R reaching a full lane width
            return r
    return best                              # best effort (can't reach 128 lanes)


def _choose_tiles(bc, g, lanes, in_isz, out_isz, sel_bytes, n_pieces):
    """VMEM-aware (NB, TG): double-buffered in/out tiles + 2x sel + split temps."""
    temp_isz = 16 if n_pieces == 3 else 8

    def step_bytes(nb, tg):
        tile = nb * tg * lanes
        return 2 * tile * (in_isz + out_isz) + 2 * sel_bytes + tile * temp_isz

    tg_cands = [d for d in _divisors(g) if d == g or d % 8 == 0]
    tg = min(tg_cands)
    for d in sorted(tg_cands, reverse=True):
        if step_bytes(1, d) <= _VMEM_STEP_BUDGET:
            tg = d
            break

    nb = 1
    for d in sorted(_divisors(bc), reverse=True):
        if d > _MAX_NB:
            continue
        if d > 1 and (bc // d) * (g // tg) < 2:
            continue                         # keep >= 2 steps for pipelining / megacore
        if step_bytes(d, tg) <= _VMEM_STEP_BUDGET:
            nb = d
            break
    return nb, tg


def squeeze_forward(x):
    """RealNVP Squeeze.forward: (B, C, H, W) -> (B, 4C, H//2, W//2)."""
    B, C, H, W = x.shape
    assert H % 2 == 0 and W % 2 == 0, "Squeeze needs even spatial dims"
    if x.dtype not in (jnp.float32, jnp.bfloat16):
        # TODO(synk): integer / f16 inputs need the non-MXU de-interleave path.
        raise NotImplementedError(f"unsupported dtype {x.dtype}")

    H2, W2 = H // 2, W // 2
    BC = B * C

    R = _choose_fold(H2, W2, W)     # rows folded into the lane axis
    G = H2 // R                     # row-groups per (b, c)
    L = 2 * R * W                   # input lanes per row-group
    P = R * W2                      # output lanes per plane per row-group (4P == L)
    sliced = (R == 1)               # dy handled by a free contiguous lane slice

    # Free (contiguous) view: xr[n, g, (2r+dy)*W + w] = x[b, c, 2*(R*g+r)+dy, w].
    xr = x.reshape(BC, G, L)

    # 0/1 selection matrices in bf16 (exactly representable), built once per call.
    if sliced:
        w_idx = jnp.arange(W)[:, None]
        j_idx = jnp.arange(W2)[None, :]
        sel = jnp.stack([w_idx == 2 * j_idx + dx for dx in range(2)])        # (2, W, W2)
    else:
        cols = jnp.arange(P)
        r_idx, j_idx = cols // W2, cols % W2
        s_idx = jnp.arange(L)[:, None]
        planes = []
        for p in range(4):
            dy, dx = divmod(p, 2)
            src = (2 * r_idx + dy) * W + 2 * j_idx + dx
            planes.append(s_idx == src[None, :])
        sel = jnp.stack(planes)                                              # (4, L, P)
    sel = sel.astype(jnp.bfloat16)

    n_pieces = 3 if x.dtype == jnp.float32 else 1
    itemsize = jnp.dtype(x.dtype).itemsize
    sel_bytes = sel.size * 2
    NB, TG = _choose_tiles(BC, G, L, itemsize, itemsize, sel_bytes, n_pieces)
    grid = (BC // NB, G // TG)

    k_dot = W if sliced else L
    cost = pl.CostEstimate(
        flops=n_pieces * 2 * BC * G * k_dot * L,      # 4 planes x (rows,K)@(K,P), 4P == L
        transcendentals=0,
        bytes_accessed=2 * BC * H2 * 2 * W * itemsize + sel_bytes,
    )

    out = pl.pallas_call(
        _make_kernel(NB, W, sliced),
        out_shape=jax.ShapeDtypeStruct((BC, 4, G, P), x.dtype),
        grid_spec=pltpu.PrefetchScalarGridSpec(
            num_scalar_prefetch=0,
            grid=grid,
            in_specs=[
                pl.BlockSpec((NB, TG, L), lambda n, g: (n, g, 0)),
                pl.BlockSpec(sel.shape, lambda n, g: (0, 0, 0)),   # constant block: fetched once
            ],
            out_specs=pl.BlockSpec((NB, 4, TG, P), lambda n, g: (n, 0, g, 0)),
        ),
        compiler_params=pltpu.CompilerParams(
            dimension_semantics=("parallel", "parallel"),
            vmem_limit_bytes=_VMEM_LIMIT,
        ),
        cost_estimate=cost,
    )(xr, sel)

    # Free reshapes back to NCHW with channel order 4c + 2dy + dx.
    return out.reshape(B, 4 * C, H2, W2)


if __name__ == "__main__":
    B, C, H, W = 2, 4, 16, 16

    key = jax.random.PRNGKey(0)
    x = jax.random.normal(key, (B, C, H, W), dtype=jnp.float32)   # raw f32, no bf16 snapping

    out = jax.block_until_ready(squeeze_forward(x))
    assert out.shape == (B, 4 * C, H // 2, W // 2)

    # Reference: the PyTorch Squeeze.forward expressed in jnp.
    ref = (x.reshape(B, C, H // 2, 2, W // 2, 2)
             .transpose(0, 1, 3, 5, 2, 4)
             .reshape(B, 4 * C, H // 2, W // 2))
    ref = jax.block_until_ready(ref)
    assert jnp.array_equal(out, ref), "mismatch vs reference squeeze"

    print("KERNEL_OK")
</pallas_src>

<mosaic_0001>
module attributes {stable_mosaic.version = 11 : i64} {
  func.func @kernel(%arg0: i32, %arg1: i32, %arg2: memref<4x1x256xf32, #tpu.memory_space<vmem>>, %arg3: memref<4x256x64xbf16, #tpu.memory_space<vmem>>, %arg4: memref<4x4x1x64xf32, #tpu.memory_space<vmem>>) attributes {dimension_semantics = [#tpu.dimension_semantics<parallel>, #tpu.dimension_semantics<parallel>], iteration_bounds = array<i64: 2, 1>, scalar_prefetch = 0 : i64, scratch_operands = 0 : i64, tpu.core_type = #tpu.core_type<tc>, window_params = [{transform_indices = @transform_0, window_bounds = array<i64: 4, 1, 256>}, {pipeline_mode = #tpu.pipeline_mode<synchronous>, transform_indices = @transform_1, window_bounds = array<i64: 4, 256, 64>}, {transform_indices = @transform_2, window_bounds = array<i64: 4, 4, 1, 64>}]} {
    %c0 = arith.constant 0 : index
    %c0_0 = arith.constant 0 : index
    %c0_1 = arith.constant 0 : index
    %0 = vector.load %arg2[%c0, %c0_0, %c0_1] : memref<4x1x256xf32, #tpu.memory_space<vmem>>, vector<1x1x256xf32>
    %1 = vector.shape_cast %0 : vector<1x1x256xf32> to vector<1x256xf32>
    %2 = arith.truncf %1 : vector<1x256xf32> to vector<1x256xbf16>
    %3 = arith.extf %2 : vector<1x256xbf16> to vector<1x256xf32>
    %4 = arith.subf %1, %3 : vector<1x256xf32>
    %5 = arith.truncf %4 : vector<1x256xf32> to vector<1x256xbf16>
    %6 = arith.extf %5 : vector<1x256xbf16> to vector<1x256xf32>
    %7 = arith.subf %4, %6 : vector<1x256xf32>
    %8 = arith.truncf %7 : vector<1x256xf32> to vector<1x256xbf16>
    %c0_2 = arith.constant 0 : index
    %c0_3 = arith.constant 0 : index
    %c0_4 = arith.constant 0 : index
    %9 = vector.load %arg3[%c0_2, %c0_3, %c0_4] : memref<4x256x64xbf16, #tpu.memory_space<vmem>>, vector<1x256x64xbf16>
    %10 = vector.shape_cast %9 : vector<1x256x64xbf16> to vector<256x64xbf16>
    %cst = arith.constant dense<0.000000e+00> : vector<1x64xf32>
    %11 = tpu.matmul %2, %10, %cst {dimension_numbers = #tpu.dot_dimension_numbers<[1], [0], [0], [1], [0, 0, 1, 1], [], []>} : vector<1x256xbf16>, vector<256x64xbf16>, vector<1x64xf32> -> vector<1x64xf32>
    %cst_5 = arith.constant dense<0.000000e+00> : vector<1x64xf32>
    %12 = tpu.matmul %5, %10, %cst_5 {dimension_numbers = #tpu.dot_dimension_numbers<[1], [0], [0], [1], [0, 0, 1, 1], [], []>} : vector<1x256xbf16>, vector<256x64xbf16>, vector<1x64xf32> -> vector<1x64xf32>
    %13 = arith.addf %11, %12 : vector<1x64xf32>
    %cst_6 = arith.constant dense<0.000000e+00> : vector<1x64xf32>
    %14 = tpu.matmul %8, %10, %cst_6 {dimension_numbers = #tpu.dot_dimension_numbers<[1], [0], [0], [1], [0, 0, 1, 1], [], []>} : vector<1x256xbf16>, vector<256x64xbf16>, vector<1x64xf32> -> vector<1x64xf32>
    %15 = arith.addf %13, %14 : vector<1x64xf32>
    %c0_7 = arith.constant 0 : index
    %c0_8 = arith.constant 0 : index
    %c0_9 = arith.constant 0 : index
    %c0_10 = arith.constant 0 : index
    %16 = vector.load %arg4[%c0_7, %c0_8, %c0_9, %c0_10] : memref<4x4x1x64xf32, #tpu.memory_space<vmem>>, vector<1x1x1x64xf32>
    %17 = vector.shape_cast %16 : vector<1x1x1x64xf32> to vector<1x64xf32>
    %18 = vector.shape_cast %15 : vector<1x64xf32> to vector<1x1x1x64xf32>
    tpu.vector_store %arg4[%c0_7, %c0_8, %c0_9, %c0_10], %18 {strides = array<i32>} : memref<4x4x1x64xf32, #tpu.memory_space<vmem>>, vector<1x1x1x64xf32>,
    %c1 = arith.constant 1 : index
    %c0_11 = arith.constant 0 : index
    %c0_12 = arith.constant 0 : index
    %19 = vector.load %arg3[%c1, %c0_11, %c0_12] : memref<4x256x64xbf16, #tpu.memory_space<vmem>>, vector<1x256x64xbf16>
    %20 = vector.shape_cast %19 : vector<1x256x64xbf16> to vector<256x64xbf16>
    %cst_13 = arith.constant dense<0.000000e+00> : vector<1x64xf32>
    %21 = tpu.matmul %2, %20, %cst_13 {dimension_numbers = #tpu.dot_dimension_numbers<[1], [0], [0], [1], [0, 0, 1, 1], [], []>} : vector<1x256xbf16>, vector<256x64xbf16>, vector<1x64xf32> -> vector<1x64xf32>
    %cst_14 = arith.constant dense<0.000000e+00> : vector<1x64xf32>
    %22 = tpu.matmul %5, %20, %cst_14 {dimension_numbers = #tpu.dot_dimension_numbers<[1], [0], [0], [1], [0, 0, 1, 1], [], []>} : vector<1x256xbf16>, vector<256x64xbf16>, vector<1x64xf32> -> vector<1x64xf32>
    %23 = arith.addf %21, %22 : vector<1x64xf32>
    %cst_15 = arith.constant dense<0.000000e+00> : vector<1x64xf32>
    %24 = tpu.matmul %8, %20, %cst_15 {dimension_numbers = #tpu.dot_dimension_numbers<[1], [0], [0], [1], [0, 0, 1, 1], [], []>} : vector<1x256xbf16>, vector<256x64xbf16>, vector<1x64xf32> -> vector<1x64xf32>
    %25 = arith.addf %23, %24 : vector<1x64xf32>
    %c0_16 = arith.constant 0 : index
    %c1_17 = arith.constant 1 : index
    %c0_18 = arith.constant 0 : index
    %c0_19 = arith.constant 0 : index
    %26 = vector.load %arg4[%c0_16, %c1_17, %c0_18, %c0_19] : memref<4x4x1x64xf32, #tpu.memory_space<vmem>>, vector<1x1x1x64xf32>
    %27 = vector.shape_cast %26 : vector<1x1x1x64xf32> to vector<1x64xf32>
    %28 = vector.shape_cast %25 : vector<1x64xf32> to vector<1x1x1x64xf32>
    tpu.vector_store %arg4[%c0_16, %c1_17, %c0_18, %c0_19], %28 {strides = array<i32>} : memref<4x4x1x64xf32, #tpu.memory_space<vmem>>, vector<1x1x1x64xf32>,
    %c2 = arith.constant 2 : index
    %c0_20 = arith.constant 0 : index
    %c0_21 = arith.constant 0 : index
    %29 = vector.load %arg3[%c2, %c0_20, %c0_21] : memref<4x256x64xbf16, #tpu.memory_space<vmem>>, vector<1x256x64xbf16>
    %30 = vector.shape_cast %29 : vector<1x256x64xbf16> to vector<256x64xbf16>
    %cst_22 = arith.constant dense<0.000000e+00> : vector<1x64xf32>
    %31 = tpu.matmul %2, %30, %cst_22 {dimension_numbers = #tpu.dot_dimension_numbers<[1], [0], [0], [1], [0, 0, 1, 1], [], []>} : vector<1x256xbf16>, vector<256x64xbf16>, vector<1x64xf32> -> vector<1x64xf32>
    %cst_23 = arith.constant dense<0.000000e+00> : vector<1x64xf32>
    %32 = tpu.matmul %5, %30, %cst_23 {dimension_numbers = #tpu.dot_dimension_numbers<[1], [0], [0], [1], [0, 0, 1, 1], [], []>} : vector<1x256xbf16>, vector<256x64xbf16>, vector<1x64xf32> -> vector<1x64xf32>
    %33 = arith.addf %31, %32 : vector<1x64xf32>
    %cst_24 = arith.constant dense<0.000000e+00> : vector<1x64xf32>
    %34 = tpu.matmul %8, %30, %cst_24 {dimension_numbers = #tpu.dot_dimension_numbers<[1], [0], [0], [1], [0, 0, 1, 1], [], []>} : vector<1x256xbf16>, vector<256x64xbf16>, vector<1x64xf32> -> vector<1x64xf32>
    %35 = arith.addf %33, %34 : vector<1x64xf32>
    %c0_25 = arith.constant 0 : index
    %c2_26 = arith.constant 2 : index
    %c0_27 = arith.constant 0 : index
    %c0_28 = arith.constant 0 : index
    %36 = vector.load %arg4[%c0_25, %c2_26, %c0_27, %c0_28] : memref<4x4x1x64xf32, #tpu.memory_space<vmem>>, vector<1x1x1x64xf32>
    %37 = vector.shape_cast %36 : vector<1x1x1x64xf32> to vector<1x64xf32>
    %38 = vector.shape_cast %35 : vector<1x64xf32> to vector<1x1x1x64xf32>
    tpu.vector_store %arg4[%c0_25, %c2_26, %c0_27, %c0_28], %38 {strides = array<i32>} : memref<4x4x1x64xf32, #tpu.memory_space<vmem>>, vector<1x1x1x64xf32>,
    %c3 = arith.constant 3 : index
    %c0_29 = arith.constant 0 : index
    %c0_30 = arith.constant 0 : index
    %39 = vector.load %arg3[%c3, %c0_29, %c0_30] : memref<4x256x64xbf16, #tpu.memory_space<vmem>>, vector<1x256x64xbf16>
    %40 = vector.shape_cast %39 : vector<1x256x64xbf16> to vector<256x64xbf16>
    %cst_31 = arith.constant dense<0.000000e+00> : vector<1x64xf32>
    %41 = tpu.matmul %2, %40, %cst_31 {dimension_numbers = #tpu.dot_dimension_numbers<[1], [0], [0], [1], [0, 0, 1, 1], [], []>} : vector<1x256xbf16>, vector<256x64xbf16>, vector<1x64xf32> -> vector<1x64xf32>
    %cst_32 = arith.constant dense<0.000000e+00> : vector<1x64xf32>
    %42 = tpu.matmul %5, %40, %cst_32 {dimension_numbers = #tpu.dot_dimension_numbers<[1], [0], [0], [1], [0, 0, 1, 1], [], []>} : vector<1x256xbf16>, vector<256x64xbf16>, vector<1x64xf32> -> vector<1x64xf32>
    %43 = arith.addf %41, %42 : vector<1x64xf32>
    %cst_33 = arith.constant dense<0.000000e+00> : vector<1x64xf32>
    %44 = tpu.matmul %8, %40, %cst_33 {dimension_numbers = #tpu.dot_dimension_numbers<[1], [0], [0], [1], [0, 0, 1, 1], [], []>} : vector<1x256xbf16>, vector<256x64xbf16>, vector<1x64xf32> -> vector<1x64xf32>
    %45 = arith.addf %43, %44 : vector<1x64xf32>
    %c0_34 = arith.constant 0 : index
    %c3_35 = arith.constant 3 : index
    %c0_36 = arith.constant 0 : index
    %c0_37 = arith.constant 0 : index
    %46 = vector.load %arg4[%c0_34, %c3_35, %c0_36, %c0_37] : memref<4x4x1x64xf32, #tpu.memory_space<vmem>>, vector<1x1x1x64xf32>
    %47 = vector.shape_cast %46 : vector<1x1x1x64xf32> to vector<1x64xf32>
    %48 = vector.shape_cast %45 : vector<1x64xf32> to vector<1x1x1x64xf32>
    tpu.vector_store %arg4[%c0_34, %c3_35, %c0_36, %c0_37], %48 {strides = array<i32>} : memref<4x4x1x64xf32, #tpu.memory_space<vmem>>, vector<1x1x1x64xf32>,
    %c1_38 = arith.constant 1 : index
    %c0_39 = arith.constant 0 : index
    %c0_40 = arith.constant 0 : index
    %49 = vector.load %arg2[%c1_38, %c0_39, %c0_40] : memref<4x1x256xf32, #tpu.memory_space<vmem>>, vector<1x1x256xf32>
    %50 = vector.shape_cast %49 : vector<1x1x256xf32> to vector<1x256xf32>
    %51 = arith.truncf %50 : vector<1x256xf32> to vector<1x256xbf16>
    %52 = arith.extf %51 : vector<1x256xbf16> to vector<1x256xf32>
    %53 = arith.subf %50, %52 : vector<1x256xf32>
    %54 = arith.truncf %53 : vector<1x256xf32> to vector<1x256xbf16>
    %55 = arith.extf %54 : vector<1x256xbf16> to vector<1x256xf32>
    %56 = arith.subf %53, %55 : vector<1x256xf32>
    %57 = arith.truncf %56 : vector<1x256xf32> to vector<1x256xbf16>
    %c0_41 = arith.constant 0 : index
    %c0_42 = arith.constant 0 : index
    %c0_43 = arith.constant 0 : index
    %58 = vector.load %arg3[%c0_41, %c0_42, %c0_43] : memref<4x256x64xbf16, #tpu.memory_space<vmem>>, vector<1x256x64xbf16>
    %59 = vector.shape_cast %58 : vector<1x256x64xbf16> to vector<256x64xbf16>
    %cst_44 = arith.constant dense<0.000000e+00> : vector<1x64xf32>
    %60 = tpu.matmul %51, %59, %cst_44 {dimension_numbers = #tpu.dot_dimension_numbers<[1], [0], [0], [1], [0, 0, 1, 1], [], []>} : vector<1x256xbf16>, vector<256x64xbf16>, vector<1x64xf32> -> vector<1x64xf32>
    %cst_45 = arith.constant dense<0.000000e+00> : vector<1x64xf32>
    %61 = tpu.matmul %54, %59, %cst_45 {dimension_numbers = #tpu.dot_dimension_numbers<[1], [0], [0], [1], [0, 0, 1, 1], [], []>} : vector<1x256xbf16>, vector<256x64xbf16>, vector<1x64xf32> -> vector<1x64xf32>
    %62 = arith.addf %60, %61 : vector<1x64xf32>
    %cst_46 = arith.constant dense<0.000000e+00> : vector<1x64xf32>
    %63 = tpu.matmul %57, %59, %cst_46 {dimension_numbers = #tpu.dot_dimension_numbers<[1], [0], [0], [1], [0, 0, 1, 1], [], []>} : vector<1x256xbf16>, vector<256x64xbf16>, vector<1x64xf32> -> vector<1x64xf32>
    %64 = arith.addf %62, %63 : vector<1x64xf32>
    %c1_47 = arith.constant 1 : index
    %c0_48 = arith.constant 0 : index
    %c0_49 = arith.constant 0 : index
    %c0_50 = arith.constant 0 : index
    %65 = vector.load %arg4[%c1_47, %c0_48, %c0_49, %c0_50] : memref<4x4x1x64xf32, #tpu.memory_space<vmem>>, vector<1x1x1x64xf32>
    %66 = vector.shape_cast %65 : vector<1x1x1x64xf32> to vector<1x64xf32>
    %67 = vector.shape_cast %64 : vector<1x64xf32> to vector<1x1x1x64xf32>
    tpu.vector_store %arg4[%c1_47, %c0_48, %c0_49, %c0_50], %67 {strides = array<i32>} : memref<4x4x1x64xf32, #tpu.memory_space<vmem>>, vector<1x1x1x64xf32>,
    %c1_51 = arith.constant 1 : index
    %c0_52 = arith.constant 0 : index
    %c0_53 = arith.constant 0 : index
    %68 = vector.load %arg3[%c1_51, %c0_52, %c0_53] : memref<4x256x64xbf16, #tpu.memory_space<vmem>>, vector<1x256x64xbf16>
    %69 = vector.shape_cast %68 : vector<1x256x64xbf16> to vector<256x64xbf16>
    %cst_54 = arith.constant dense<0.000000e+00> : vector<1x64xf32>
    %70 = tpu.matmul %51, %69, %cst_54 {dimension_numbers = #tpu.dot_dimension_numbers<[1], [0], [0], [1], [0, 0, 1, 1], [], []>} : vector<1x256xbf16>, vector<256x64xbf16>, vector<1x64xf32> -> vector<1x64xf32>
    %cst_55 = arith.constant dense<0.000000e+00> : vector<1x64xf32>
    %71 = tpu.matmul %54, %69, %cst_55 {dimension_numbers = #tpu.dot_dimension_numbers<[1], [0], [0], [1], [0, 0, 1, 1], [], []>} : vector<1x256xbf16>, vector<256x64xbf16>, vector<1x64xf32> -> vector<1x64xf32>
    %72 = arith.addf %70, %71 : vector<1x64xf32>
    %cst_56 = arith.constant dense<0.000000e+00> : vector<1x64xf32>
    %73 = tpu.matmul %57, %69, %cst_56 {dimension_numbers = #tpu.dot_dimension_numbers<[1], [0], [0], [1], [0, 0, 1, 1], [], []>} : vector<1x256xbf16>, vector<256x64xbf16>, vector<1x64xf32> -> vector<1x64xf32>
    %74 = arith.addf %72, %73 : vector<1x64xf32>
    %c1_57 = arith.constant 1 : index
    %c1_58 = arith.constant 1 : index
    %c0_59 = arith.constant 0 : index
    %c0_60 = arith.constant 0 : index
    %75 = vector.load %arg4[%c1_57, %c1_58, %c0_59, %c0_60] : memref<4x4x1x64xf32, #tpu.memory_space<vmem>>, vector<1x1x1x64xf32>
    %76 = vector.shape_cast %75 : vector<1x1x1x64xf32> to vector<1x64xf32>
    %77 = vector.shape_cast %74 : vector<1x64xf32> to vector<1x1x1x64xf32>
    tpu.vector_store %arg4[%c1_57, %c1_58, %c0_59, %c0_60], %77 {strides = array<i32>} : memref<4x4x1x64xf32, #tpu.memory_space<vmem>>, vector<1x1x1x64xf32>,
    %c2_61 = arith.constant 2 : index
    %c0_62 = arith.constant 0 : index
    %c0_63 = arith.constant 0 : index
    %78 = vector.load %arg3[%c2_61, %c0_62, %c0_63] : memref<4x256x64xbf16, #tpu.memory_space<vmem>>, vector<1x256x64xbf16>
    %79 = vector.shape_cast %78 : vector<1x256x64xbf16> to vector<256x64xbf16>
    %cst_64 = arith.constant dense<0.000000e+00> : vector<1x64xf32>
    %80 = tpu.matmul %51, %79, %cst_64 {dimension_numbers = #tpu.dot_dimension_numbers<[1], [0], [0], [1], [0, 0, 1, 1], [], []>} : vector<1x256xbf16>, vector<256x64xbf16>, vector<1x64xf32> -> vector<1x64xf32>
    %cst_65 = arith.constant dense<0.000000e+00> : vector<1x64xf32>
    %81 = tpu.matmul %54, %79, %cst_65 {dimension_numbers = #tpu.dot_dimension_numbers<[1], [0], [0], [1], [0, 0, 1, 1], [], []>} : vector<1x256xbf16>, vector<256x64xbf16>, vector<1x64xf32> -> vector<1x64xf32>
    %82 = arith.addf %80, %81 : vector<1x64xf32>
    %cst_66 = arith.constant dense<0.000000e+00> : vector<1x64xf32>
    %83 = tpu.matmul %57, %79, %cst_66 {dimension_numbers = #tpu.dot_dimension_numbers<[1], [0], [0], [1], [0, 0, 1, 1], [], []>} : vector<1x256xbf16>, vector<256x64xbf16>, vector<1x64xf32> -> vector<1x64xf32>
    %84 = arith.addf %82, %83 : vector<1x64xf32>
    %c1_67 = arith.constant 1 : index
    %c2_68 = arith.constant 2 : index
    %c0_69 = arith.constant 0 : index
    %c0_70 = arith.constant 0 : index
    %85 = vector.load %arg4[%c1_67, %c2_68, %c0_69, %c0_70] : memref<4x4x1x64xf32, #tpu.memory_space<vmem>>, vector<1x1x1x64xf32>
    %86 = vector.shape_cast %85 : vector<1x1x1x64xf32> to vector<1x64xf32>
    %87 = vector.shape_cast %84 : vector<1x64xf32> to vector<1x1x1x64xf32>
    tpu.vector_store %arg4[%c1_67, %c2_68, %c0_69, %c0_70], %87 {strides = array<i32>} : memref<4x4x1x64xf32, #tpu.memory_space<vmem>>, vector<1x1x1x64xf32>,
    %c3_71 = arith.constant 3 : index
    %c0_72 = arith.constant 0 : index
    %c0_73 = arith.constant 0 : index
    %88 = vector.load %arg3[%c3_71, %c0_72, %c0_73] : memref<4x256x64xbf16, #tpu.memory_space<vmem>>, vector<1x256x64xbf16>
    %89 = vector.shape_cast %88 : vector<1x256x64xbf16> to vector<256x64xbf16>
    %cst_74 = arith.constant dense<0.000000e+00> : vector<1x64xf32>
    %90 = tpu.matmul %51, %89, %cst_74 {dimension_numbers = #tpu.dot_dimension_numbers<[1], [0], [0], [1], [0, 0, 1, 1], [], []>} : vector<1x256xbf16>, vector<256x64xbf16>, vector<1x64xf32> -> vector<1x64xf32>
    %cst_75 = arith.constant dense<0.000000e+00> : vector<1x64xf32>
    %91 = tpu.matmul %54, %89, %cst_75 {dimension_numbers = #tpu.dot_dimension_numbers<[1], [0], [0], [1], [0, 0, 1, 1], [], []>} : vector<1x256xbf16>, vector<256x64xbf16>, vector<1x64xf32> -> vector<1x64xf32>
    %92 = arith.addf %90, %91 : vector<1x64xf32>
    %cst_76 = arith.constant dense<0.000000e+00> : vector<1x64xf32>
    %93 = tpu.matmul %57, %89, %cst_76 {dimension_numbers = #tpu.dot_dimension_numbers<[1], [0], [0], [1], [0, 0, 1, 1], [], []>} : vector<1x256xbf16>, vector<256x64xbf16>, vector<1x64xf32> -> vector<1x64xf32>
    %94 = arith.addf %92, %93 : vector<1x64xf32>
    %c1_77 = arith.constant 1 : index
    %c3_78 = arith.constant 3 : index
    %c0_79 = arith.constant 0 : index
    %c0_80 = arith.constant 0 : index
    %95 = vector.load %arg4[%c1_77, %c3_78, %c0_79, %c0_80] : memref<4x4x1x64xf32, #tpu.memory_space<vmem>>, vector<1x1x1x64xf32>
    %96 = vector.shape_cast %95 : vector<1x1x1x64xf32> to vector<1x64xf32>
    %97 = vector.shape_cast %94 : vector<1x64xf32> to vector<1x1x1x64xf32>
    tpu.vector_store %arg4[%c1_77, %c3_78, %c0_79, %c0_80], %97 {strides = array<i32>} : memref<4x4x1x64xf32, #tpu.memory_space<vmem>>, vector<1x1x1x64xf32>,
    %c2_81 = arith.constant 2 : index
    %c0_82 = arith.constant 0 : index
    %c0_83 = arith.constant 0 : index
    %98 = vector.load %arg2[%c2_81, %c0_82, %c0_83] : memref<4x1x256xf32, #tpu.memory_space<vmem>>, vector<1x1x256xf32>
    %99 = vector.shape_cast %98 : vector<1x1x256xf32> to vector<1x256xf32>
    %100 = arith.truncf %99 : vector<1x256xf32> to vector<1x256xbf16>
    %101 = arith.extf %100 : vector<1x256xbf16> to vector<1x256xf32>
    %102 = arith.subf %99, %101 : vector<1x256xf32>
    %103 = arith.truncf %102 : vector<1x256xf32> to vector<1x256xbf16>
    %104 = arith.extf %103 : vector<1x256xbf16> to vector<1x256xf32>
    %105 = arith.subf %102, %104 : vector<1x256xf32>
    %106 = arith.truncf %105 : vector<1x256xf32> to vector<1x256xbf16>
    %c0_84 = arith.constant 0 : index
    %c0_85 = arith.constant 0 : index
    %c0_86 = arith.constant 0 : index
    %107 = vector.load %arg3[%c0_84, %c0_85, %c0_86] : memref<4x256x64xbf16, #tpu.memory_space<vmem>>, vector<1x256x64xbf16>
    %108 = vector.shape_cast %107 : vector<1x256x64xbf16> to vector<256x64xbf16>
    %cst_87 = arith.constant dense<0.000000e+00> : vector<1x64xf32>
    %109 = tpu.matmul %100, %108, %cst_87 {dimension_numbers = #tpu.dot_dimension_numbers<[1], [0], [0], [1], [0, 0, 1, 1], [], []>} : vector<1x256xbf16>, vector<256x64xbf16>, vector<1x64xf32> -> vector<1x64xf32>
    %cst_88 = arith.constant dense<0.000000e+00> : vector<1x64xf32>
    %110 = tpu.matmul %103, %108, %cst_88 {dimension_numbers = #tpu.dot_dimension_numbers<[1], [0], [0], [1], [0, 0, 1, 1], [], []>} : vector<1x256xbf16>, vector<256x64xbf16>, vector<1x64xf32> -> vector<1x64xf32>
    %111 = arith.addf %109, %110 : vector<1x64xf32>
    %cst_89 = arith.constant dense<0.000000e+00> : vector<1x64xf32>
    %112 = tpu.matmul %106, %108, %cst_89 {dimension_numbers = #tpu.dot_dimension_numbers<[1], [0], [0], [1], [0, 0, 1, 1], [], []>} : vector<1x256xbf16>, vector<256x64xbf16>, vector<1x64xf32> -> vector<1x64xf32>
    %113 = arith.addf %111, %112 : vector<1x64xf32>
    %c2_90 = arith.constant 2 : index
    %c0_91 = arith.constant 0 : index
    %c0_92 = arith.constant 0 : index
    %c0_93 = arith.constant 0 : index
    %114 = vector.load %arg4[%c2_90, %c0_91, %c0_92, %c0_93] : memref<4x4x1x64xf32, #tpu.memory_space<vmem>>, vector<1x1x1x64xf32>
    %115 = vector.shape_cast %114 : vector<1x1x1x64xf32> to vector<1x64xf32>
    %116 = vector.shape_cast %113 : vector<1x64xf32> to vector<1x1x1x64xf32>
    tpu.vector_store %arg4[%c2_90, %c0_91, %c0_92, %c0_93], %116 {strides = array<i32>} : memref<4x4x1x64xf32, #tpu.memory_space<vmem>>, vector<1x1x1x64xf32>,
    %c1_94 = arith.constant 1 : index
    %c0_95 = arith.constant 0 : index
    %c0_96 = arith.constant 0 : index
    %117 = vector.load %arg3[%c1_94, %c0_95, %c0_96] : memref<4x256x64xbf16, #tpu.memory_space<vmem>>, vector<1x256x64xbf16>
    %118 = vector.shape_cast %117 : vector<1x256x64xbf16> to vector<256x64xbf16>
    %cst_97 = arith.constant dense<0.000000e+00> : vector<1x64xf32>
    %119 = tpu.matmul %100, %118, %cst_97 {dimension_numbers = #tpu.dot_dimension_numbers<[1], [0], [0], [1], [0, 0, 1, 1], [], []>} : vector<1x256xbf16>, vector<256x64xbf16>, vector<1x64xf32> -> vector<1x64xf32>
    %cst_98 = arith.constant dense<0.000000e+00> : vector<1x64xf32>
    %120 = tpu.matmul %103, %118, %cst_98 {dimension_numbers = #tpu.dot_dimension_numbers<[1], [0], [0], [1], [0, 0, 1, 1], [], []>} : vector<1x256xbf16>, vector<256x64xbf16>, vector<1x64xf32> -> vector<1x64xf32>
    %121 = arith.addf %119, %120 : vector<1x64xf32>
    %cst_99 = arith.constant dense<0.000000e+00> : vector<1x64xf32>
    %122 = tpu.matmul %106, %118, %cst_99 {dimension_numbers = #tpu.dot_dimension_numbers<[1], [0], [0], [1], [0, 0, 1, 1], [], []>} : vector<1x256xbf16>, vector<256x64xbf16>, vector<1x64xf32> -> vector<1x64xf32>
    %123 = arith.addf %121, %122 : vector<1x64xf32>
    %c2_100 = arith.constant 2 : index
    %c1_101 = arith.constant 1 : index
    %c0_102 = arith.constant 0 : index
    %c0_103 = arith.constant 0 : index
    %124 = vector.load %arg4[%c2_100, %c1_101, %c0_102, %c0_103] : memref<4x4x1x64xf32, #tpu.memory_space<vmem>>, vector<1x1x1x64xf32>
    %125 = vector.shape_cast %124 : vector<1x1x1x64xf32> to vector<1x64xf32>
    %126 = vector.shape_cast %123 : vector<1x64xf32> to vector<1x1x1x64xf32>
    tpu.vector_store %arg4[%c2_100, %c1_101, %c0_102, %c0_103], %126 {strides = array<i32>} : memref<4x4x1x64xf32, #tpu.memory_space<vmem>>, vector<1x1x1x64xf32>,
    %c2_104 = arith.constant 2 : index
    %c0_105 = arith.constant 0 : index
    %c0_106 = arith.constant 0 : index
    %127 = vector.load %arg3[%c2_104, %c0_105, %c0_106] : memref<4x256x64xbf16, #tpu.memory_space<vmem>>, vector<1x256x64xbf16>
    %128 = vector.shape_cast %127 : vector<1x256x64xbf16> to vector<256x64xbf16>
    %cst_107 = arith.constant dense<0.000000e+00> : vector<1x64xf32>
    %129 = tpu.matmul %100, %128, %cst_107 {dimension_numbers = #tpu.dot_dimension_numbers<[1], [0], [0], [1], [0, 0, 1, 1], [], []>} : vector<1x256xbf16>, vector<256x64xbf16>, vector<1x64xf32> -> vector<1x64xf32>
    %cst_108 = arith.constant dense<0.000000e+00> : vector<1x64xf32>
    %130 = tpu.matmul %103, %128, %cst_108 {dimension_numbers = #tpu.dot_dimension_numbers<[1], [0], [0], [1], [0, 0, 1, 1], [], []>} : vector<1x256xbf16>, vector<256x64xbf16>, vector<1x64xf32> -> vector<1x64xf32>
    %131 = arith.addf %129, %130 : vector<1x64xf32>
    %cst_109 = arith.constant dense<0.000000e+00> : vector<1x64xf32>
    %132 = tpu.matmul %106, %128, %cst_109 {dimension_numbers = #tpu.dot_dimension_numbers<[1], [0], [0], [1], [0, 0, 1, 1], [], []>} : vector<1x256xbf16>, vector<256x64xbf16>, vector<1x64xf32> -> vector<1x64xf32>
    %133 = arith.addf %131, %132 : vector<1x64xf32>
    %c2_110 = arith.constant 2 : index
    %c2_111 = arith.constant 2 : index
    %c0_112 = arith.constant 0 : index
    %c0_113 = arith.constant 0 : index
    %134 = vector.load %arg4[%c2_110, %c2_111, %c0_112, %c0_113] : memref<4x4x1x64xf32, #tpu.memory_space<vmem>>, vector<1x1x1x64xf32>
    %135 = vector.shape_cast %134 : vector<1x1x1x64xf32> to vector<1x64xf32>
    %136 = vector.shape_cast %133 : vector<1x64xf32> to vector<1x1x1x64xf32>
    tpu.vector_store %arg4[%c2_110, %c2_111, %c0_112, %c0_113], %136 {strides = array<i32>} : memref<4x4x1x64xf32, #tpu.memory_space<vmem>>, vector<1x1x1x64xf32>,
    %c3_114 = arith.constant 3 : index
    %c0_115 = arith.constant 0 : index
    %c0_116 = arith.constant 0 : index
    %137 = vector.load %arg3[%c3_114, %c0_115, %c0_116] : memref<4x256x64xbf16, #tpu.memory_space<vmem>>, vector<1x256x64xbf16>
    %138 = vector.shape_cast %137 : vector<1x256x64xbf16> to vector<256x64xbf16>
    %cst_117 = arith.constant dense<0.000000e+00> : vector<1x64xf32>
    %139 = tpu.matmul %100, %138, %cst_117 {dimension_numbers = #tpu.dot_dimension_numbers<[1], [0], [0], [1], [0, 0, 1, 1], [], []>} : vector<1x256xbf16>, vector<256x64xbf16>, vector<1x64xf32> -> vector<1x64xf32>
    %cst_118 = arith.constant dense<0.000000e+00> : vector<1x64xf32>
    %140 = tpu.matmul %103, %138, %cst_118 {dimension_numbers = #tpu.dot_dimension_numbers<[1], [0], [0], [1], [0, 0, 1, 1], [], []>} : vector<1x256xbf16>, vector<256x64xbf16>, vector<1x64xf32> -> vector<1x64xf32>
    %141 = arith.addf %139, %140 : vector<1x64xf32>
    %cst_119 = arith.constant dense<0.000000e+00> : vector<1x64xf32>
    %142 = tpu.matmul %106, %138, %cst_119 {dimension_numbers = #tpu.dot_dimension_numbers<[1], [0], [0], [1], [0, 0, 1, 1], [], []>} : vector<1x256xbf16>, vector<256x64xbf16>, vector<1x64xf32> -> vector<1x64xf32>
    %143 = arith.addf %141, %142 : vector<1x64xf32>
    %c2_120 = arith.constant 2 : index
    %c3_121 = arith.constant 3 : index
    %c0_122 = arith.constant 0 : index
    %c0_123 = arith.constant 0 : index
    %144 = vector.load %arg4[%c2_120, %c3_121, %c0_122, %c0_123] : memref<4x4x1x64xf32, #tpu.memory_space<vmem>>, vector<1x1x1x64xf32>
    %145 = vector.shape_cast %144 : vector<1x1x1x64xf32> to vector<1x64xf32>
    %146 = vector.shape_cast %143 : vector<1x64xf32> to vector<1x1x1x64xf32>
    tpu.vector_store %arg4[%c2_120, %c3_121, %c0_122, %c0_123], %146 {strides = array<i32>} : memref<4x4x1x64xf32, #tpu.memory_space<vmem>>, vector<1x1x1x64xf32>,
    %c3_124 = arith.constant 3 : index
    %c0_125 = arith.constant 0 : index
    %c0_126 = arith.constant 0 : index
    %147 = vector.load %arg2[%c3_124, %c0_125, %c0_126] : memref<4x1x256xf32, #tpu.memory_space<vmem>>, vector<1x1x256xf32>
    %148 = vector.shape_cast %147 : vector<1x1x256xf32> to vector<1x256xf32>
    %149 = arith.truncf %148 : vector<1x256xf32> to vector<1x256xbf16>
    %150 = arith.extf %149 : vector<1x256xbf16> to vector<1x256xf32>
    %151 = arith.subf %148, %150 : vector<1x256xf32>
    %152 = arith.truncf %151 : vector<1x256xf32> to vector<1x256xbf16>
    %153 = arith.extf %152 : vector<1x256xbf16> to vector<1x256xf32>
    %154 = arith.subf %151, %153 : vector<1x256xf32>
    %155 = arith.truncf %154 : vector<1x256xf32> to vector<1x256xbf16>
    %c0_127 = arith.constant 0 : index
    %c0_128 = arith.constant 0 : index
    %c0_129 = arith.constant 0 : index
    %156 = vector.load %arg3[%c0_127, %c0_128, %c0_129] : memref<4x256x64xbf16, #tpu.memory_space<vmem>>, vector<1x256x64xbf16>
    %157 = vector.shape_cast %156 : vector<1x256x64xbf16> to vector<256x64xbf16>
    %cst_130 = arith.constant dense<0.000000e+00> : vector<1x64xf32>
    %158 = tpu.matmul %149, %157, %cst_130 {dimension_numbers = #tpu.dot_dimension_numbers<[1], [0], [0], [1], [0, 0, 1, 1], [], []>} : vector<1x256xbf16>, vector<256x64xbf16>, vector<1x64xf32> -> vector<1x64xf32>
    %cst_131 = arith.constant dense<0.000000e+00> : vector<1x64xf32>
    %159 = tpu.matmul %152, %157, %cst_131 {dimension_numbers = #tpu.dot_dimension_numbers<[1], [0], [0], [1], [0, 0, 1, 1], [], []>} : vector<1x256xbf16>, vector<256x64xbf16>, vector<1x64xf32> -> vector<1x64xf32>
    %160 = arith.addf %158, %159 : vector<1x64xf32>
    %cst_132 = arith.constant dense<0.000000e+00> : vector<1x64xf32>
    %161 = tpu.matmul %155, %157, %cst_132 {dimension_numbers = #tpu.dot_dimension_numbers<[1], [0], [0], [1], [0, 0, 1, 1], [], []>} : vector<1x256xbf16>, vector<256x64xbf16>, vector<1x64xf32> -> vector<1x64xf32>
    %162 = arith.addf %160, %161 : vector<1x64xf32>
    %c3_133 = arith.constant 3 : index
    %c0_134 = arith.constant 0 : index
    %c0_135 = arith.constant 0 : index
    %c0_136 = arith.constant 0 : index
    %163 = vector.load %arg4[%c3_133, %c0_134, %c0_135, %c0_136] : memref<4x4x1x64xf32, #tpu.memory_space<vmem>>, vector<1x1x1x64xf32>
    %164 = vector.shape_cast %163 : vector<1x1x1x64xf32> to vector<1x64xf32>
    %165 = vector.shape_cast %162 : vector<1x64xf32> to vector<1x1x1x64xf32>
    tpu.vector_store %arg4[%c3_133, %c0_134, %c0_135, %c0_136], %165 {strides = array<i32>} : memref<4x4x1x64xf32, #tpu.memory_space<vmem>>, vector<1x1x1x64xf32>,
    %c1_137 = arith.constant 1 : index
    %c0_138 = arith.constant 0 : index
    %c0_139 = arith.constant 0 : index
    %166 = vector.load %arg3[%c1_137, %c0_138, %c0_139] : memref<4x256x64xbf16, #tpu.memory_space<vmem>>, vector<1x256x64xbf16>
    %167 = vector.shape_cast %166 : vector<1x256x64xbf16> to vector<256x64xbf16>
    %cst_140 = arith.constant dense<0.000000e+00> : vector<1x64xf32>
    %168 = tpu.matmul %149, %167, %cst_140 {dimension_numbers = #tpu.dot_dimension_numbers<[1], [0], [0], [1], [0, 0, 1, 1], [], []>} : vector<1x256xbf16>, vector<256x64xbf16>, vector<1x64xf32> -> vector<1x64xf32>
    %cst_141 = arith.constant dense<0.000000e+00> : vector<1x64xf32>
    %169 = tpu.matmul %152, %167, %cst_141 {dimension_numbers = #tpu.dot_dimension_numbers<[1], [0], [0], [1], [0, 0, 1, 1], [], []>} : vector<1x256xbf16>, vector<256x64xbf16>, vector<1x64xf32> -> vector<1x64xf32>
    %170 = arith.addf %168, %169 : vector<1x64xf32>
    %cst_142 = arith.constant dense<0.000000e+00> : vector<1x64xf32>
    %171 = tpu.matmul %155, %167, %cst_142 {dimension_numbers = #tpu.dot_dimension_numbers<[1], [0], [0], [1], [0, 0, 1, 1], [], []>} : vector<1x256xbf16>, vector<256x64xbf16>, vector<1x64xf32> -> vector<1x64xf32>
    %172 = arith.addf %170, %171 : vector<1x64xf32>
    %c3_143 = arith.constant 3 : index
    %c1_144 = arith.constant 1 : index
    %c0_145 = arith.constant 0 : index
    %c0_146 = arith.constant 0 : index
    %173 = vector.load %arg4[%c3_143, %c1_144, %c0_145, %c0_146] : memref<4x4x1x64xf32, #tpu.memory_space<vmem>>, vector<1x1x1x64xf32>
    %174 = vector.shape_cast %173 : vector<1x1x1x64xf32> to vector<1x64xf32>
    %175 = vector.shape_cast %172 : vector<1x64xf32> to vector<1x1x1x64xf32>
    tpu.vector_store %arg4[%c3_143, %c1_144, %c0_145, %c0_146], %175 {strides = array<i32>} : memref<4x4x1x64xf32, #tpu.memory_space<vmem>>, vector<1x1x1x64xf32>,
    %c2_147 = arith.constant 2 : index
    %c0_148 = arith.constant 0 : index
    %c0_149 = arith.constant 0 : index
    %176 = vector.load %arg3[%c2_147, %c0_148, %c0_149] : memref<4x256x64xbf16, #tpu.memory_space<vmem>>, vector<1x256x64xbf16>
    %177 = vector.shape_cast %176 : vector<1x256x64xbf16> to vector<256x64xbf16>
    %cst_150 = arith.constant dense<0.000000e+00> : vector<1x64xf32>
    %178 = tpu.matmul %149, %177, %cst_150 {dimension_numbers = #tpu.dot_dimension_numbers<[1], [0], [0], [1], [0, 0, 1, 1], [], []>} : vector<1x256xbf16>, vector<256x64xbf16>, vector<1x64xf32> -> vector<1x64xf32>
    %cst_151 = arith.constant dense<0.000000e+00> : vector<1x64xf32>
    %179 = tpu.matmul %152, %177, %cst_151 {dimension_numbers = #tpu.dot_dimension_numbers<[1], [0], [0], [1], [0, 0, 1, 1], [], []>} : vector<1x256xbf16>, vector<256x64xbf16>, vector<1x64xf32> -> vector<1x64xf32>
    %180 = arith.addf %178, %179 : vector<1x64xf32>
    %cst_152 = arith.constant dense<0.000000e+00> : vector<1x64xf32>
    %181 = tpu.matmul %155, %177, %cst_152 {dimension_numbers = #tpu.dot_dimension_numbers<[1], [0], [0], [1], [0, 0, 1, 1], [], []>} : vector<1x256xbf16>, vector<256x64xbf16>, vector<1x64xf32> -> vector<1x64xf32>
    %182 = arith.addf %180, %181 : vector<1x64xf32>
    %c3_153 = arith.constant 3 : index
    %c2_154 = arith.constant 2 : index
    %c0_155 = arith.constant 0 : index
    %c0_156 = arith.constant 0 : index
    %183 = vector.load %arg4[%c3_153, %c2_154, %c0_155, %c0_156] : memref<4x4x1x64xf32, #tpu.memory_space<vmem>>, vector<1x1x1x64xf32>
    %184 = vector.shape_cast %183 : vector<1x1x1x64xf32> to vector<1x64xf32>
    %185 = vector.shape_cast %182 : vector<1x64xf32> to vector<1x1x1x64xf32>
    tpu.vector_store %arg4[%c3_153, %c2_154, %c0_155, %c0_156], %185 {strides = array<i32>} : memref<4x4x1x64xf32, #tpu.memory_space<vmem>>, vector<1x1x1x64xf32>,
    %c3_157 = arith.constant 3 : index
    %c0_158 = arith.constant 0 : index
    %c0_159 = arith.constant 0 : index
    %186 = vector.load %arg3[%c3_157, %c0_158, %c0_159] : memref<4x256x64xbf16, #tpu.memory_space<vmem>>, vector<1x256x64xbf16>
    %187 = vector.shape_cast %186 : vector<1x256x64xbf16> to vector<256x64xbf16>
    %cst_160 = arith.constant dense<0.000000e+00> : vector<1x64xf32>
    %188 = tpu.matmul %149, %187, %cst_160 {dimension_numbers = #tpu.dot_dimension_numbers<[1], [0], [0], [1], [0, 0, 1, 1], [], []>} : vector<1x256xbf16>, vector<256x64xbf16>, vector<1x64xf32> -> vector<1x64xf32>
    %cst_161 = arith.constant dense<0.000000e+00> : vector<1x64xf32>
    %189 = tpu.matmul %152, %187, %cst_161 {dimension_numbers = #tpu.dot_dimension_numbers<[1], [0], [0], [1], [0, 0, 1, 1], [], []>} : vector<1x256xbf16>, vector<256x64xbf16>, vector<1x64xf32> -> vector<1x64xf32>
    %190 = arith.addf %188, %189 : vector<1x64xf32>
    %cst_162 = arith.constant dense<0.000000e+00> : vector<1x64xf32>
    %191 = tpu.matmul %155, %187, %cst_162 {dimension_numbers = #tpu.dot_dimension_numbers<[1], [0], [0], [1], [0, 0, 1, 1], [], []>} : vector<1x256xbf16>, vector<256x64xbf16>, vector<1x64xf32> -> vector<1x64xf32>
    %192 = arith.addf %190, %191 : vector<1x64xf32>
    %c3_163 = arith.constant 3 : index
    %c3_164 = arith.constant 3 : index
    %c0_165 = arith.constant 0 : index
    %c0_166 = arith.constant 0 : index
    %193 = vector.load %arg4[%c3_163, %c3_164, %c0_165, %c0_166] : memref<4x4x1x64xf32, #tpu.memory_space<vmem>>, vector<1x1x1x64xf32>
    %194 = vector.shape_cast %193 : vector<1x1x1x64xf32> to vector<1x64xf32>
    %195 = vector.shape_cast %192 : vector<1x64xf32> to vector<1x1x1x64xf32>
    tpu.vector_store %arg4[%c3_163, %c3_164, %c0_165, %c0_166], %195 {strides = array<i32>} : memref<4x4x1x64xf32, #tpu.memory_space<vmem>>, vector<1x1x1x64xf32>,
    return
  }
  func.func @transform_0(%arg0: i32, %arg1: i32) -> (i32, i32, i32) {
    %c0_i32 = arith.constant 0 : i32
    %c0_i32_0 = arith.constant 0 : i32
    return %arg0, %arg1, %c0_i32 : i32, i32, i32
  }
  func.func @transform_1(%arg0: i32, %arg1: i32) -> (i32, i32, i32) {
    %c0_i32 = arith.constant 0 : i32
    %c0_i32_0 = arith.constant 0 : i32
    %c0_i32_1 = arith.constant 0 : i32
    %c0_i32_2 = arith.constant 0 : i32
    return %c0_i32, %c0_i32_0, %c0_i32_1 : i32, i32, i32
  }
  func.func @transform_2(%arg0: i32, %arg1: i32) -> (i32, i32, i32, i32) {
    %c0_i32 = arith.constant 0 : i32
    %c0_i32_0 = arith.constant 0 : i32
    %c0_i32_1 = arith.constant 0 : i32
    return %arg0, %c0_i32, %arg1, %c0_i32_0 : i32, i32, i32, i32
  }
}

</mosaic_0001>

<bundles_post_ra>
// kernel: tpu_custom_call.1
= control target key start
LH: loop header
LB: loop body
LE: loop exit
PB: predicated region body
PF: predicated region fallthrough
CT: control target
= control target key end

     0   :  { %7 = vsyncpa [#allocation3], 0  ;;  %s8901_s0 = inlined_call_operand.vmem [shape: f32[8,1,256], index: 0, kind: input, shape index: {}]   ;;  %s8902_s1 = inlined_call_operand.vmem [shape: bf16[4,256,64], index: 1, kind: input, shape index: {}]   ;;  %s8903_s2 = inlined_call_operand.hbm [shape: f32[8,4,1,64], index: 2, kind: output, shape index: {}]  }
   0x1   :  { %9 = vsyncpa [#allocation3 + $0x1], 0  ;;  %s6761_s9 = smov 0   ;;  %s6763_s10 = smov 0  }
   0x2   :  { %s6765_s11 = smov 0   ;;  %s6767_s12 = smov 0  }
   0x3   :  { %s6769_s13 = smov 0   ;;  %s6771_s14 = smov 0  }
   0x4 LB: > { %s4618_s15 = sadd.s32 4294967295, %s6740_s14   ;;  %s4619_s16 = sadd.s32 4294967294, %s6740_s14   ;;  %s6740_s14 = sphi %s6771_s14, %s15_s14   ;;  %s6736_s13 = sphi %s6769_s13, %s8910_s13   ;;  %s6732_s12 = sphi %s6767_s12, %s8909_s12   ;;  %s6728_s11 = sphi %s6765_s11, %s8908_s11   ;;  %s6724_s10 = sphi %s6763_s10, %s8907_s10   ;;  %s6720_s9 = sphi %s6761_s9, %s8906_s9  }
   0x5   : > { %s27_s17 = sadd.s32 1, %s6736_s13  ;;  %s85_s18 = sadd.s32 1, %s6728_s11 }
   0x6   : > { %p29_p0 = scmp.ge.s32.totalorder %s27_s17, 2  ;;  %p95_p1 = scmp.ne.s32.totalorder %s6728_s11, %s6724_s10 }
   0x7   : > { %p96_p2 = scmp.eq.s32.totalorder %s4618_s15, 1  ;;  %p101_p3 = scmp.ne.s32.totalorder %s6724_s10, %s6720_s9 }
   0x8   : > { %s8912_s17 = smov (%p29_p0, %s27_s17), 0  ;;  %p102_p5 = scmp.eq.s32.totalorder %s4619_s16, 1 }
   0x9   : > { %p6801_p4 = por %p96_p2, %p95_p1  ;;  %s80_s20 = ssub.s32 %s6736_s13, %s8912_s17 }
   0xa   : > { %p4622_p6 = scmp.ge.s32.totalorder %s6740_s14, 1  ;;  %p83_p7 = scmp.eq.s32.totalorder %s80_s20, 0 }
   0xb   : > { %p6808_p8 = por %p102_p5, %p101_p3  ;;  %p136_p9 = scmp.lt.s32.totalorder %s6740_s14, 3 }
   0xc   : > { %s6814_s22 = scalar_select %p83_p7, %s6728_s11, %s85_s18  }
   0xd   : > { %p137_p10 = pnand %p4622_p6, %p136_p9 }
   0xe   : > { %v6819_v0 = vld [vmem:[%s8902_s1 + $0x40] sm:$0xff] (!%p137_p10)   ;;  %s4624_s25 = sshll.u32 (!%p137_p10), %s6732_s12, 2  ;;  %v6832_v2 = vld [vmem:[%s8902_s1 + $0x48] sm:$0xff] (!%p137_p10)   ;;  %v6846_v4 = vld [vmem:[%s8902_s1 + $0x50] sm:$0xff] (!%p137_p10)   ;;  %v176_v5 = vlaneseq (!%p137_p10)  ;;  %v6742_v18 = vmov (!%p137_p10), 1966171168  }
   0xf   : > { %140 = sbr.rel (%p137_p10) target bundleno = 1019 (0x3fb), region = 28  ;;  %v6825_v1 = vld [vmem:[%s8902_s1] sm:$0xff] (!%p137_p10)   ;;  %5292 = vmatprep.subr.bf16.mxu0 (!%p137_p10), %v6819_v0  ;;  %5314 = vmatprep.subr.bf16.mxu1 (!%p137_p10), %v6819_v0  ;;  %p163_p11 = scmp.lt.s32.totalorder (!%p137_p10), %s4624_s25, 7  ;;  %v6839_v3 = vld [vmem:[%s8902_s1 + $0x8] sm:$0xff] (!%p137_p10)   ;;  %v6853_v6 = vld [vmem:[%s8902_s1 + $0x10] sm:$0xff] (!%p137_p10)   ;;  %v194_v19 = vunpack.c.l.s4 (!%p137_p10), %v6742_v18  ;;  %vm505_vm0 = vcmask (!%p137_p10), 516096  }
  0x10   : > { %5293 = vmatpush3.bf16.msra.mxu0 (!%p137_p10), %v6825_v1  ;;  %5315 = vmatpush3.bf16.msra.mxu1 (!%p137_p10), %v6825_v1  ;;  %v6860_v7 = vld [vmem:[%s8902_s1 + $0x58] sm:$0xff] (!%p137_p10)   ;;  %v177_v8 = vshrl.u32 (!%p137_p10), %v176_v5, 7  ;;  %v6874_v10 = vld [vmem:[%s8902_s1 + $0x60] sm:$0xff] (!%p137_p10)   ;;  %v6895_v14 = vld [vmem:[%s8902_s1 + $0x68] sm:$0xff] (!%p137_p10)   ;;  %s159_s4 = sand.u32 (!%p137_p10), 1, %s6724_s10   ;;  %s6743_s15 = smov (!%p137_p10), [#allocation2]  }
  0x11   : > { %5294 = vmatprep.subr.bf16.mxu0 (!%p137_p10), %v6832_v2  ;;  %5316 = vmatprep.subr.bf16.mxu1 (!%p137_p10), %v6832_v2  ;;  %v6867_v9 = vld [vmem:[%s8902_s1 + $0x18] sm:$0xff] (!%p137_p10)   ;;  %v6888_v13 = vld [vmem:[%s8902_s1 + $0x20] sm:$0xff] (!%p137_p10)   ;;  %v6907_v20 = vld [vmem:[%s8902_s1 + $0x28] sm:$0xff] (!%p137_p10)   ;;  %v195_v23 = vunpack.c.0.s8 (!%p137_p10), %v194_v19  ;;  %s4623_s5 = sshll.u32 (!%p137_p10), %s159_s4, 4  ;;  %s8855_s7 = scalar_lea.sflag (!%p137_p10), [#allocation3], %s159_s4 }
  0x12   : > { %v6881_v11 = vsub.s32 (!%p137_p10), 0, %v177_v8  ;;  %v6883_v12 = vsub.s32 (!%p137_p10), 1, %v177_v8  ;;  %v6918_v24 = vld [vmem:[%s8902_s1 + $0x70] sm:$0xff] (!%p137_p10)   ;;  %v6937_v30 = vld [vmem:[%s8902_s1 + $0x78] sm:$0xff] (!%p137_p10)   ;;  %v6953_v34 = vld [vmem:[%s8902_s1 + $0xc0] sm:$0xff] (!%p137_p10)   ;;  %s7491_s8 = scalar_lea.vmem (!%p137_p10), [#allocation2], %s4623_s5 }
  0x13   : > { %v6922_v27 = vsub.s32 (!%p137_p10), %v195_v23, %v177_v8  ;;  %v6930_v28 = vld [vmem:[%s8902_s1 + $0x30] sm:$0xff] (!%p137_p10)   ;;  %v6945_v32 = vld [vmem:[%s8902_s1 + $0x38] sm:$0xff] (!%p137_p10)   ;;  %v6962_v38 = vld [vmem:[%s8902_s1 + $0x80] sm:$0xff] (!%p137_p10)   ;;  %s4540_s30 = sshll.u32 (!%p137_p10), %s7491_s8, 4  ;;  %s8849_s30 = int_to_ptr.vmem [resolvable:$true] %s4540_s30 }
  0x14   : > { %5295 = vmatpush3.bf16.msra.mxu0 (!%p137_p10), %v6839_v3  ;;  %5317 = vmatpush3.bf16.msra.mxu1 (!%p137_p10), %v6839_v3  ;;  %v6969_v39 = vld [vmem:[%s8902_s1 + $0xc8] sm:$0xff] (!%p137_p10)   ;;  %v6426_v45 = vld [vmem:[%s8902_s1 + $0xd0] sm:$0xff] (!%p137_p10)   ;;  %v6428_v49 = vld [vmem:[%s8902_s1 + $0xd8] sm:$0xff] (!%p137_p10)  }
  0x15   : > { %5296 = vmatprep.subr.bf16.mxu0 (!%p137_p10), %v6846_v4  ;;  %5318 = vmatprep.subr.bf16.mxu1 (!%p137_p10), %v6846_v4  ;;  %v6981_v42 = vld [vmem:[%s8902_s1 + $0x88] sm:$0xff] (!%p137_p10)   ;;  %v6427_v47 = vld [vmem:[%s8902_s1 + $0x90] sm:$0xff] (!%p137_p10)   ;;  %v6429_v51 = vld [vmem:[%s8902_s1 + $0x98] sm:$0xff] (!%p137_p10)  }
  0x16   : > { %s8914_s25 = smov (!%p163_p11, %s4624_s25), 7  ;;  %v6430_v53 = vld [vmem:[%s8902_s1 + $0xe0] sm:$0xff]   ;;  %v6432_v57 = vld [vmem:[%s8902_s1 + $0xe8] sm:$0xff]   ;;  %v6434_v59 = vld [vmem:[%s8902_s1 + $0xf0] sm:$0xff]  }
  0x17   : > { %s4625_s16 = sshll.u32 %s8914_s25, 1  ;;  %v6431_v55 = vld [vmem:[%s8902_s1 + $0xa0] sm:$0xff]   ;;  %v6433_v58 = vld [vmem:[%s8902_s1 + $0xa8] sm:$0xff]   ;;  %v6435_v60 = vld [vmem:[%s8902_s1 + $0xb0] sm:$0xff]  }
  0x18   : > { %5297 = vmatpush3.bf16.msra.mxu0 %v6853_v6  ;;  %5319 = vmatpush3.bf16.msra.mxu1 %v6853_v6  ;;  %s6879_s27 = scalar_lea.vmem %s8901_s0, %s4625_s16  ;;  %v6436_v61 = vld [vmem:[%s8902_s1 + $0xf8] sm:$0xff]   ;;  %v7088_v5 = vld [vmem:[%s8902_s1 + $0x150] sm:$0xff]   ;;  %v6454_v19 = vld [vmem:[%s8902_s1 + $0x1c0] sm:$0xff]   ;;  %s6666_s16 = sshll.u32 %s6743_s15, 4  ;;  %s6667_s16 = int_to_ptr.vmem [resolvable:$false] %s6666_s16 }
  0x19   : > { %5298 = vmatprep.subr.bf16.mxu0 %v6860_v7  ;;  %5320 = vmatprep.subr.bf16.mxu1 %v6860_v7  ;;  %v174_v15 = vld [vmem:[%s6879_s27] sm:$0x3]  ;;  %v6437_v62 = vld [vmem:[%s8902_s1 + $0xb8] sm:$0xff]   ;;  %v7142_v23 = vld [vmem:[%s8902_s1 + $0x1c8] sm:$0xff]   ;;  %s6668_s18 = scalar_lea.vmem %s6667_s16, 512  ;;  %p6669_p1 = scmp.lt.s32.totalorder %s8849_s30, %s6667_s16 }
  0x1a   : > { %v179_v16 = vrot.slane %v174_v15, %v6881_v11  ;;  %v183_v17 = vrot.slane %v174_v15, %v6883_v12  ;;  %v6445_v8 = vld [vmem:[%s8902_s1 + $0x118] sm:$0xff]  }
  0x1b   : > { %v6453_v18 = vld [vmem:[%s8902_s1 + $0x138] sm:$0xff]  }
  0x1c   : > { %5299 = vmatpush3.bf16.msra.mxu0 %v6867_v9  ;;  %5321 = vmatpush3.bf16.msra.mxu1 %v6867_v9  ;;  %v6909_v21 = vpack.c.bf16 %v179_v16, %v179_v16  ;;  %v6911_v22 = vpack.c.bf16 %v183_v17, %v183_v17  ;;  %v6451_v16 = vld [vmem:[%s8902_s1 + $0x130] sm:$0xff]   ;;  %v6452_v17 = vld [vmem:[%s8902_s1 + $0x178] sm:$0xff]  }
  0x1d   : > { %5300 = vmatprep.subr.bf16.mxu0 %v6874_v10  ;;  %5322 = vmatprep.subr.bf16.mxu1 %v6874_v10 }
  0x1e   : > { %v188_v25 = vunpack.c.l.bf16 %v6909_v21  ;;  %v189_v26 = vunpack.c.l.bf16 %v6911_v22  ;;  %456 = vmatprep.mubr.bf16.mxu1 %v6911_v22 }
  0x20   : > { %5301 = vmatpush3.bf16.msra.mxu0 %v6888_v13  ;;  %5323 = vmatpush3.bf16.msra.mxu1 %v6888_v13  ;;  %v192_v29 = vcombine.low %v188_v25, %v189_v26  ;;  %v7154_v25 = vld [vmem:[%s8902_s1 + $0x1d0] sm:$0xff]  }
  0x21   : > { %5302 = vmatprep.subr.bf16.mxu0 %v6895_v14  ;;  %5324 = vmatprep.subr.bf16.mxu1 %v6895_v14  ;;  %v6459_v26 = vld [vmem:[%s8902_s1 + $0x190] sm:$0xff]  }
  0x22   : > { %v199_v31 = vrot.slane %v192_v29, %v6922_v27  ;;  %v6461_v29 = vld [vmem:[%s8902_s1 + $0x198] sm:$0xff]  }
  0x24   : > { %5303 = vmatpush3.bf16.msra.mxu0 %v6907_v20  ;;  %5325 = vmatpush3.bf16.msra.mxu1 %v6907_v20  ;;  %v206_v33 = vrot.slane %v199_v31, %v6922_v27  ;;  %v6463_v31 = vld [vmem:[%s8902_s1 + $0x1a0] sm:$0xff]  }
  0x25   : > { %5304 = vmatprep.subr.bf16.mxu0 %v6918_v24  ;;  %5326 = vmatprep.subr.bf16.mxu1 %v6918_v24 }
  0x26   : > { %v208_v35 = vsub.f32 %v174_v15, %v206_v33  ;;  %v6450_v15 = vld [vmem:[%s8902_s1 + $0x170] sm:$0xff]   ;;  %v6465_v33 = vld [vmem:[%s8902_s1 + $0x1a8] sm:$0xff]  }
  0x28   : > { %5305 = vmatpush3.bf16.msra.mxu0 %v6930_v28  ;;  %5327 = vmatpush3.bf16.msra.mxu1 %v6930_v28  ;;  %v217_v36 = vrot.slane %v208_v35, %v6883_v12  ;;  %v213_v37 = vrot.slane %v208_v35, %v6881_v11 }
  0x29   : > { %5306 = vmatprep.subr.bf16.mxu0 %v6937_v30  ;;  %5328 = vmatprep.subr.bf16.mxu1 %v6937_v30 }
  0x2a   : > { %v6971_v40 = vpack.c.bf16 %v217_v36, %v217_v36  ;;  %v6973_v41 = vpack.c.bf16 %v213_v37, %v213_v37  ;;  %v6468_v36 = vld [vmem:[%s8902_s1 + $0x1f8] sm:$0xff]  }
  0x2b   : > { %v6469_v37 = vld [vmem:[%s8902_s1 + $0x1b8] sm:$0xff]  }
  0x2c   : > { %5307 = vmatpush3.bf16.msra.mxu0 %v6945_v32  ;;  %5329 = vmatpush3.bf16.msra.mxu1 %v6945_v32  ;;  %v222_v43 = vunpack.c.l.bf16 %v6973_v41  ;;  %v223_v44 = vunpack.c.l.bf16 %v6971_v40 }
  0x2d   : > { %5336 = vmatprep.subr.bf16.mxu0 %v6819_v0  ;;  %5358 = vmatprep.subr.bf16.mxu1 %v6953_v34 }
  0x2e   : > { %416 = vmatprep.mubr.bf16.mxu0 %v6971_v40  ;;  %v226_v46 = vcombine.low %v222_v43, %v223_v44 }
  0x2f   : > { %457 = vmatmul.mubr.bf16.vlgmr.msra.gmra.mrb[0].mxu1 %v6909_v21  ;;  %417 = vmatmul.mubr.bf16.vlgmr.msra.gmra.mrb[0].mxu0 %v6973_v41 }
  0x30   : > { %5359 = vmatpush3.bf16.msra.mxu1 %v6962_v38  ;;  %5337 = vmatpush3.bf16.msra.mxu0 %v6825_v1  ;;  %v233_v48 = vrot.slane %v226_v46, %v6922_v27  ;;  %v7064_v1 = vld [vmem:[%s8902_s1 + $0x140] sm:$0xff]  }
  0x31   : > { %5360 = vmatprep.subr.bf16.mxu1 %v6969_v39  ;;  %668 = vmatprep.mubr.bf16.mxu1 %v6971_v40 }
  0x32   : > { %5338 = vmatprep.subr.bf16.mxu0 %v6832_v2  ;;  %v240_v50 = vrot.slane %v233_v48, %v6922_v27  ;;  %v7069_v2 = vld [vmem:[%s8902_s1 + $0x100] sm:$0xff]  }
  0x33   : > { %v7223_v48 = vld [vmem:[%s8902_s1 + $0x40] sm:$0xff]  }
  0x34   : > { %5361 = vmatpush3.bf16.msra.mxu1 %v6981_v42  ;;  %5339 = vmatpush3.bf16.msra.mxu0 %v6839_v3  ;;  %v242_v52 = vsub.f32 %v208_v35, %v240_v50  ;;  %v7074_v3 = vld [vmem:[%s8902_s1 + $0x148] sm:$0xff]   ;;  %v6467_v35 = vld [vmem:[%s8902_s1 + $0x1b0] sm:$0xff]   ;;  %v7229_v50 = vld [vmem:[%s8902_s1] sm:$0xff]  }
  0x35   : > { %5362 = vmatprep.subr.bf16.mxu1 %v6426_v45  ;;  %5340 = vmatprep.subr.bf16.mxu0 %v6846_v4  ;;  %v7082_v4 = vld [vmem:[%s8902_s1 + $0x108] sm:$0xff]  }
  0x36   : > { %v251_v54 = vrot.slane %v242_v52, %v6883_v12  ;;  %v247_v63 = vrot.slane %v242_v52, %v6881_v11 }
  0x38   : > { %5363 = vmatpush3.bf16.msra.mxu1 %v6427_v47  ;;  %5341 = vmatpush3.bf16.msra.mxu0 %v6853_v6  ;;  %v7016_v56 = vpack.c.bf16 %v251_v54, %v251_v54  ;;  %v7046_v0 = vpack.c.bf16 %v247_v63, %v247_v63  ;;  %v6443_v6 = vld [vmem:[%s8902_s1 + $0x110] sm:$0xff]   ;;  %v7294_v63 = vld [vmem:[%s8902_s1 + $0x20] sm:$0xff]  }
  0x39   : > { %5364 = vmatprep.subr.bf16.mxu1 %v6428_v49  ;;  %5342 = vmatprep.subr.bf16.mxu0 %v6860_v7  ;;  %v6444_v7 = vld [vmem:[%s8902_s1 + $0x158] sm:$0xff]   ;;  %v7250_v54 = vld [vmem:[%s8902_s1 + $0x50] sm:$0xff]  }
  0x3a   : > { %496 = vmatprep.mubr.bf16.mxu0 %v7016_v56 }
  0x3c   : > { %5365 = vmatpush3.bf16.msra.mxu1 %v6429_v51  ;;  %5343 = vmatpush3.bf16.msra.mxu0 %v6867_v9  ;;  %v6446_v9 = vld [vmem:[%s8902_s1 + $0x160] sm:$0xff]  }
  0x3d   : > { %5366 = vmatprep.subr.bf16.mxu1 %v6430_v53  ;;  %5344 = vmatprep.subr.bf16.mxu0 %v6874_v10  ;;  %v6447_v10 = vld [vmem:[%s8902_s1 + $0x120] sm:$0xff]  }
  0x40   : > { %5367 = vmatpush3.bf16.msra.mxu1 %v6431_v55  ;;  %5345 = vmatpush3.bf16.msra.mxu0 %v6888_v13  ;;  %v6448_v13 = vld [vmem:[%s8902_s1 + $0x168] sm:$0xff]  }
  0x41   : > { %5368 = vmatprep.subr.bf16.mxu1 %v6432_v57  ;;  %5346 = vmatprep.subr.bf16.mxu0 %v6895_v14  ;;  %v6449_v14 = vld [vmem:[%s8902_s1 + $0x128] sm:$0xff]  }
  0x44   : > { %5369 = vmatpush3.bf16.msra.mxu1 %v6433_v58  ;;  %5347 = vmatpush3.bf16.msra.mxu0 %v6907_v20  ;;  %v6455_v20 = vld [vmem:[%s8902_s1 + $0x180] sm:$0xff]  }
  0x45   : > { %5370 = vmatprep.subr.bf16.mxu1 %v6434_v59  ;;  %5348 = vmatprep.subr.bf16.mxu0 %v6918_v24  ;;  %v7147_v24 = vld [vmem:[%s8902_s1 + $0x188] sm:$0xff]  }
  0x48   : > { %5371 = vmatpush3.bf16.msra.mxu1 %v6435_v60  ;;  %5349 = vmatpush3.bf16.msra.mxu0 %v6930_v28  ;;  %v6460_v28 = vld [vmem:[%s8902_s1 + $0x1d8] sm:$0xff]  }
  0x49   : > { %5372 = vmatprep.subr.bf16.mxu1 %v6436_v61  ;;  %5350 = vmatprep.subr.bf16.mxu0 %v6937_v30  ;;  %v6462_v30 = vld [vmem:[%s8902_s1 + $0x1e0] sm:$0xff]  }
  0x4c   : > { %5373 = vmatpush3.bf16.msra.mxu1 %v6437_v62  ;;  %5351 = vmatpush3.bf16.msra.mxu0 %v6945_v32  ;;  %v6464_v32 = vld [vmem:[%s8902_s1 + $0x1e8] sm:$0xff]  }
  0x4d   : > { %5402 = vmatprep.subr.bf16.mxu1 %v6953_v34  ;;  %5380 = vmatprep.subr.bf16.mxu0 %v6953_v34  ;;  %v6466_v34 = vld [vmem:[%s8902_s1 + $0x1f0] sm:$0xff]  }
  0x4f   : > { %669 = vmatmul.mubr.bf16.vlgmr.msra.gmra.mrb[4].mxu1 %v6973_v41  ;;  %497 = vmatmul.mubr.bf16.vlgmr.msra.gmra.mrb[4].mxu0 %v7046_v0 }
  0x50   : > { %5403 = vmatpush3.bf16.msra.mxu1 %v6962_v38  ;;  %748 = vmatprep.mubr.bf16.mxu1 %v7016_v56 }
  0x51   : > { %5404 = vmatprep.subr.bf16.mxu1 %v6969_v39  ;;  %5381 = vmatpush3.bf16.msra.mxu0 %v6962_v38  ;;  %v4789_v38 = vld [vmem:[%s6879_s27 + $0x2] sm:$0x3] }
  0x52   : > { %708 = vmatprep.mubr.bf16.mxu0 %v6911_v22  ;;  %5382 = vmatprep.subr.bf16.mxu0 %v6969_v39  ;;  %v1269_v39 = vrot.slane %v4789_v38, %v6881_v11 }
  0x54   : > { %5405 = vmatpush3.bf16.msra.mxu1 %v6981_v42 }
  0x55   : > { %5406 = vmatprep.subr.bf16.mxu1 %v6426_v45  ;;  %5383 = vmatpush3.bf16.msra.mxu0 %v6981_v42  ;;  %v7207_v42 = vpack.c.bf16 %v1269_v39, %v1269_v39 }
  0x56   : > { %5384 = vmatprep.subr.bf16.mxu0 %v6426_v45 }
  0x58   : > { %5407 = vmatpush3.bf16.msra.mxu1 %v6427_v47 }
  0x59   : > { %5408 = vmatprep.subr.bf16.mxu1 %v6428_v49  ;;  %5385 = vmatpush3.bf16.msra.mxu0 %v6427_v47 }
  0x5a   : > { %5386 = vmatprep.subr.bf16.mxu0 %v6428_v49 }
  0x5c   : > { %5409 = vmatpush3.bf16.msra.mxu1 %v6429_v51 }
  0x5d   : > { %5410 = vmatprep.subr.bf16.mxu1 %v6430_v53  ;;  %5387 = vmatpush3.bf16.msra.mxu0 %v6429_v51  ;;  %v7234_v51 = vld [vmem:[%s8902_s1 + $0x48] sm:$0xff]  }
  0x5e   : > { %5388 = vmatprep.subr.bf16.mxu0 %v6430_v53  ;;  %v7244_v53 = vld [vmem:[%s8902_s1 + $0x8] sm:$0xff]  }
  0x60   : > { %5411 = vmatpush3.bf16.msra.mxu1 %v6431_v55 }
  0x61   : > { %5412 = vmatprep.subr.bf16.mxu1 %v6432_v57  ;;  %5389 = vmatpush3.bf16.msra.mxu0 %v6431_v55 }
  0x62   : > { %5390 = vmatprep.subr.bf16.mxu0 %v6432_v57  ;;  %v7268_v57 = vld [vmem:[%s8902_s1 + $0x58] sm:$0xff]  }
  0x64   : > { %5413 = vmatpush3.bf16.msra.mxu1 %v6433_v58 }
  0x65   : > { %5414 = vmatprep.subr.bf16.mxu1 %v6434_v59  ;;  %5391 = vmatpush3.bf16.msra.mxu0 %v6433_v58 }
  0x66   : > { %5392 = vmatprep.subr.bf16.mxu0 %v6434_v59 }
  0x68   : > { %5415 = vmatpush3.bf16.msra.mxu1 %v6435_v60 }
  0x69   : > { %5416 = vmatprep.subr.bf16.mxu1 %v6436_v61  ;;  %5393 = vmatpush3.bf16.msra.mxu0 %v6435_v60  ;;  %v7280_v60 = vld [vmem:[%s8902_s1 + $0x18] sm:$0xff]  }
  0x6a   : > { %5394 = vmatprep.subr.bf16.mxu0 %v6436_v61  ;;  %v7286_v61 = vld [vmem:[%s8902_s1 + $0x60] sm:$0xff]  }
  0x6c   : > { %5417 = vmatpush3.bf16.msra.mxu1 %v6437_v62 }
  0x6d   : > { %5446 = vmatprep.subr.bf16.mxu1 %v7064_v1  ;;  %5395 = vmatpush3.bf16.msra.mxu0 %v6437_v62 }
  0x6e   : > { %5424 = vmatprep.subr.bf16.mxu0 %v7064_v1 }
  0x6f   : > { %749 = vmatmul.mubr.bf16.vlgmr.msra.gmra.mrb[8].mxu1 %v7046_v0 }
  0x70   : > { %5447 = vmatpush3.bf16.msra.mxu1 %v7069_v2  ;;  %960 = vmatprep.mubr.bf16.mxu1 %v6911_v22 }
  0x71   : > { %709 = vmatmul.mubr.bf16.vlgmr.msra.gmra.mrb[8].mxu0 %v6909_v21  ;;  %5448 = vmatprep.subr.bf16.mxu1 %v7074_v3 }
  0x72   : > { %5425 = vmatpush3.bf16.msra.mxu0 %v7069_v2  ;;  %920 = vmatprep.mubr.bf16.mxu0 %v6971_v40 }
  0x73   : > { %5426 = vmatprep.subr.bf16.mxu0 %v7074_v3 }
  0x74   : > { %5449 = vmatpush3.bf16.msra.mxu1 %v7082_v4 }
  0x75   : > { %5450 = vmatprep.subr.bf16.mxu1 %v7088_v5 }
  0x76   : > { %5427 = vmatpush3.bf16.msra.mxu0 %v7082_v4 }
  0x77   : > { %5428 = vmatprep.subr.bf16.mxu0 %v7088_v5 }
  0x78   : > { %5451 = vmatpush3.bf16.msra.mxu1 %v6443_v6 }
  0x79   : > { %5452 = vmatprep.subr.bf16.mxu1 %v6444_v7 }
  0x7a   : > { %5429 = vmatpush3.bf16.msra.mxu0 %v6443_v6 }
  0x7b   : > { %5430 = vmatprep.subr.bf16.mxu0 %v6444_v7 }
  0x7c   : > { %5453 = vmatpush3.bf16.msra.mxu1 %v6445_v8 }
  0x7d   : > { %5454 = vmatprep.subr.bf16.mxu1 %v6446_v9 }
  0x7e   : > { %5431 = vmatpush3.bf16.msra.mxu0 %v6445_v8 }
  0x7f   : > { %5432 = vmatprep.subr.bf16.mxu0 %v6446_v9 }
  0x80   : > { %5455 = vmatpush3.bf16.msra.mxu1 %v6447_v10 }
  0x81   : > { %5456 = vmatprep.subr.bf16.mxu1 %v6448_v13 }
  0x82   : > { %5433 = vmatpush3.bf16.msra.mxu0 %v6447_v10 }
  0x83   : > { %5434 = vmatprep.subr.bf16.mxu0 %v6448_v13 }
  0x84   : > { %5457 = vmatpush3.bf16.msra.mxu1 %v6449_v14 }
  0x85   : > { %5458 = vmatprep.subr.bf16.mxu1 %v6450_v15 }
  0x86   : > { %5435 = vmatpush3.bf16.msra.mxu0 %v6449_v14 }
  0x87   : > { %5436 = vmatprep.subr.bf16.mxu0 %v6450_v15 }
  0x88   : > { %5459 = vmatpush3.bf16.msra.mxu1 %v6451_v16 }
  0x89   : > { %5460 = vmatprep.subr.bf16.mxu1 %v6452_v17 }
  0x8a   : > { %5437 = vmatpush3.bf16.msra.mxu0 %v6451_v16 }
  0x8b   : > { %5438 = vmatprep.subr.bf16.mxu0 %v6452_v17 }
  0x8c   : > { %5461 = vmatpush3.bf16.msra.mxu1 %v6453_v18 }
  0x8d   : > { %5490 = vmatprep.subr.bf16.mxu1 %v6454_v19 }
  0x8e   : > { %5439 = vmatpush3.bf16.msra.mxu0 %v6453_v18 }
  0x8f   : > { %961 = vmatmul.mubr.bf16.vlgmr.msra.gmra.mrb[12].mxu1 %v6909_v21  ;;  %5468 = vmatprep.subr.bf16.mxu0 %v7064_v1 }
  0x90   : > { %5491 = vmatpush3.bf16.msra.mxu1 %v6455_v20  ;;  %1172 = vmatprep.mubr.bf16.mxu1 %v6971_v40  ;;  %v1273_v40 = vrot.slane %v4789_v38, %v6883_v12 }
  0x91   : > { %921 = vmatmul.mubr.bf16.vlgmr.msra.gmra.mrb[12].mxu0 %v6973_v41  ;;  %5492 = vmatprep.subr.bf16.mxu1 %v7142_v23 }
  0x92   : > { %5469 = vmatpush3.bf16.msra.mxu0 %v7069_v2  ;;  %1000 = vmatprep.mubr.bf16.mxu0 %v7016_v56  ;;  %v7209_v43 = vpack.c.bf16 %v1273_v40, %v1273_v40  ;;  %v7309_v2 = vld [vmem:[%s8902_s1 + $0x28] sm:$0xff]  }
  0x93   : > { %5470 = vmatprep.subr.bf16.mxu0 %v7074_v3  ;;  %v7315_v3 = vld [vmem:[%s8902_s1 + $0x70] sm:$0xff]  }
  0x94   : > { %5493 = vmatpush3.bf16.msra.mxu1 %v7147_v24  ;;  %v1279_v44 = vunpack.c.l.bf16 %v7209_v43 }
  0x95   : > { %5494 = vmatprep.subr.bf16.mxu1 %v7154_v25 }
  0x96   : > { %5471 = vmatpush3.bf16.msra.mxu0 %v7082_v4 }
  0x97   : > { %5472 = vmatprep.subr.bf16.mxu0 %v7088_v5  ;;  %v7325_v5 = vld [vmem:[%s8902_s1 + $0x30] sm:$0xff]  }
  0x98   : > { %5495 = vmatpush3.bf16.msra.mxu1 %v6459_v26 }
  0x99   : > { %5496 = vmatprep.subr.bf16.mxu1 %v6460_v28 }
  0x9a   : > { %5473 = vmatpush3.bf16.msra.mxu0 %v6443_v6  ;;  %v7331_v6 = vld [vmem:[%s8902_s1 + $0x78] sm:$0xff]  }
  0x9b   : > { %5474 = vmatprep.subr.bf16.mxu0 %v6444_v7 }
  0x9c   : > { %5497 = vmatpush3.bf16.msra.mxu1 %v6461_v29 }
  0x9d   : > { %5498 = vmatprep.subr.bf16.mxu1 %v6462_v30 }
  0x9e   : > { %5475 = vmatpush3.bf16.msra.mxu0 %v6445_v8  ;;  %v7341_v8 = vld [vmem:[%s8902_s1 + $0x38] sm:$0xff]  }
  0x9f   : > { %5476 = vmatprep.subr.bf16.mxu0 %v6446_v9  ;;  %v7347_v9 = vld [vmem:[%s8902_s1 + $0xc0] sm:$0xff]  }
  0xa0   : > { %5499 = vmatpush3.bf16.msra.mxu1 %v6463_v31 }
  0xa1   : > { %5500 = vmatprep.subr.bf16.mxu1 %v6464_v32 }
  0xa2   : > { %5477 = vmatpush3.bf16.msra.mxu0 %v6447_v10 }
  0xa3   : > { %5478 = vmatprep.subr.bf16.mxu0 %v6448_v13  ;;  %v7357_v13 = vld [vmem:[%s8902_s1 + $0x80] sm:$0xff]  }
  0xa4   : > { %5501 = vmatpush3.bf16.msra.mxu1 %v6465_v33 }
  0xa5   : > { %5502 = vmatprep.subr.bf16.mxu1 %v6466_v34 }
  0xa6   : > { %5479 = vmatpush3.bf16.msra.mxu0 %v6449_v14  ;;  %v7363_v14 = vld [vmem:[%s8902_s1 + $0xc8] sm:$0xff]  }
  0xa7   : > { %5480 = vmatprep.subr.bf16.mxu0 %v6450_v15 }
  0xa8   : > { %5503 = vmatpush3.bf16.msra.mxu1 %v6467_v35 }
  0xa9   : > { %5504 = vmatprep.subr.bf16.mxu1 %v6468_v36 }
  0xaa   : > { %5481 = vmatpush3.bf16.msra.mxu0 %v6451_v16  ;;  %v7374_v16 = vld [vmem:[%s8902_s1 + $0x88] sm:$0xff]  }
  0xab   : > { %5482 = vmatprep.subr.bf16.mxu0 %v6452_v17  ;;  %v7382_v17 = vld [vmem:[%s8902_s1 + $0xd0] sm:$0xff]  }
  0xac   : > { %5505 = vmatpush3.bf16.msra.mxu1 %v6469_v37 }
  0xad   : > { %5534 = vmatprep.subr.bf16.mxu1 %v6454_v19 }
  0xae   : > { %5483 = vmatpush3.bf16.msra.mxu0 %v6453_v18  ;;  %v7391_v18 = vld [vmem:[%s8902_s1 + $0x90] sm:$0xff]  }
  0xaf   : > { %1173 = vmatmul.mubr.bf16.vlgmr.msra.gmra.mrb[16].mxu1 %v6973_v41  ;;  %5512 = vmatprep.subr.bf16.mxu0 %v6454_v19  ;;  %v1278_v41 = vunpack.c.l.bf16 %v7207_v42  ;;  %v7397_v19 = vld [vmem:[%s8902_s1 + $0xd8] sm:$0xff]  }
  0xb0   : > { %5535 = vmatpush3.bf16.msra.mxu1 %v6455_v20  ;;  %1252 = vmatprep.mubr.bf16.mxu1 %v7016_v56  ;;  %v7262_v56 = vld [vmem:[%s8902_s1 + $0x10] sm:$0xff]  }
  0xb1   : > { %1001 = vmatmul.mubr.bf16.vlgmr.msra.gmra.mrb[16].mxu0 %v7046_v0  ;;  %5536 = vmatprep.subr.bf16.mxu1 %v7142_v23 }
  0xb2   : > { %5513 = vmatpush3.bf16.msra.mxu0 %v6455_v20  ;;  %1212 = vmatprep.mubr.bf16.mxu0 %v6911_v22  ;;  %v1282_v22 = vcombine.low %v1278_v41, %v1279_v44  ;;  %v6493_v20 = vld [vmem:[%s8902_s1 + $0x98] sm:$0xff]  }
  0xb3   : > { %5514 = vmatprep.subr.bf16.mxu0 %v7142_v23  ;;  %v6494_v23 = vld [vmem:[%s8902_s1 + $0xe0] sm:$0xff]   ;;  %v6501_v44 = vld [vmem:[%s8902_s1 + $0xb8] sm:$0xff]  }
  0xb4   : > { %5537 = vmatpush3.bf16.msra.mxu1 %v7147_v24  ;;  %v1289_v45 = vrot.slane %v1282_v22, %v6922_v27 }
  0xb5   : > { %5538 = vmatprep.subr.bf16.mxu1 %v7154_v25 }
  0xb6   : > { %5515 = vmatpush3.bf16.msra.mxu0 %v7147_v24  ;;  %v1296_v46 = vrot.slane %v1289_v45, %v6922_v27  ;;  %v6495_v24 = vld [vmem:[%s8902_s1 + $0xa0] sm:$0xff]  }
  0xb7   : > { %5516 = vmatprep.subr.bf16.mxu0 %v7154_v25  ;;  %v6496_v25 = vld [vmem:[%s8902_s1 + $0xe8] sm:$0xff]  }
  0xb8   : > { %5539 = vmatpush3.bf16.msra.mxu1 %v6459_v26  ;;  %v1298_v47 = vsub.f32 %v4789_v38, %v1296_v46 }
  0xb9   : > { %5540 = vmatprep.subr.bf16.mxu1 %v6460_v28 }
  0xba   : > { %5517 = vmatpush3.bf16.msra.mxu0 %v6459_v26  ;;  %v1307_v49 = vrot.slane %v1298_v47, %v6883_v12  ;;  %v1303_v55 = vrot.slane %v1298_v47, %v6881_v11  ;;  %v7422_v26 = vld [vmem:[%s8902_s1 + $0xa8] sm:$0xff]  }
  0xbb   : > { %5518 = vmatprep.subr.bf16.mxu0 %v6460_v28  ;;  %v7427_v28 = vld [vmem:[%s8902_s1 + $0xf0] sm:$0xff]  }
  0xbc   : > { %5541 = vmatpush3.bf16.msra.mxu1 %v6461_v29  ;;  %v7237_v52 = vpack.c.bf16 %v1307_v49, %v1307_v49 }
  0xbd   : > { %5542 = vmatprep.subr.bf16.mxu1 %v6462_v30 }
  0xbe   : > { %5519 = vmatpush3.bf16.msra.mxu0 %v6461_v29  ;;  %v1313_v59 = vunpack.c.l.bf16 %v7237_v52 }
  0xbf   : > { %5520 = vmatprep.subr.bf16.mxu0 %v6462_v30 }
  0xc0   : > { %5543 = vmatpush3.bf16.msra.mxu1 %v6463_v31 }
  0xc1   : > { %5544 = vmatprep.subr.bf16.mxu1 %v6464_v32 }
  0xc2   : > { %5521 = vmatpush3.bf16.msra.mxu0 %v6463_v31 }
  0xc3   : > { %5522 = vmatprep.subr.bf16.mxu0 %v6464_v32 }
  0xc4   : > { %5545 = vmatpush3.bf16.msra.mxu1 %v6465_v33 }
  0xc5   : > { %5546 = vmatprep.subr.bf16.mxu1 %v6466_v34 }
  0xc6   : > { %5523 = vmatpush3.bf16.msra.mxu0 %v6465_v33 }
  0xc7   : > { %5524 = vmatprep.subr.bf16.mxu0 %v6466_v34  ;;  %v7435_v34 = vld [vmem:[%s8902_s1 + $0xb0] sm:$0xff]  }
  0xc8   : > { %5547 = vmatpush3.bf16.msra.mxu1 %v6467_v35 }
  0xc9   : > { %5548 = vmatprep.subr.bf16.mxu1 %v6468_v36 }
  0xca   : > { %5525 = vmatpush3.bf16.msra.mxu0 %v6467_v35 }
  0xcb   : > { %5526 = vmatprep.subr.bf16.mxu0 %v6468_v36 }
  0xcc   : > { %5549 = vmatpush3.bf16.msra.mxu1 %v6469_v37 }
  0xcd   : > { %5578 = vmatprep.subr.bf16.mxu1 %v7223_v48 }
  0xce   : > { %5527 = vmatpush3.bf16.msra.mxu0 %v6469_v37  ;;  %v7441_v37 = vld [vmem:[%s8902_s1 + $0xf8] sm:$0xff]  }
  0xcf   : > { %1253 = vmatmul.mubr.bf16.vlgmr.msra.gmra.mrb[20].mxu1 %v7046_v0  ;;  %5556 = vmatprep.subr.bf16.mxu0 %v7223_v48  ;;  %v7300_v0 = vld [vmem:[%s8902_s1 + $0x68] sm:$0xff]  }
  0xd0   : > { %5579 = vmatpush3.bf16.msra.mxu1 %v7229_v50  ;;  %1546 = vmatprep.mubr.bf16.mxu1 %v7209_v43 }
  0xd1   : > { %1213 = vmatmul.mubr.bf16.vlgmr.msra.gmra.mrb[20].mxu0 %v6909_v21  ;;  %5580 = vmatprep.subr.bf16.mxu1 %v7234_v51  ;;  %v7270_v21 = vpack.c.bf16 %v1303_v55, %v1303_v55 }
  0xd2   : > { %5557 = vmatpush3.bf16.msra.mxu0 %v7229_v50  ;;  %1506 = vmatprep.mubr.bf16.mxu0 %v7237_v52 }
  0xd3   : > { %5558 = vmatprep.subr.bf16.mxu0 %v7234_v51  ;;  %v1312_v58 = vunpack.c.l.bf16 %v7270_v21 }
  0xd4   : > { %5581 = vmatpush3.bf16.msra.mxu1 %v7244_v53 }
  0xd5   : > { %5582 = vmatprep.subr.bf16.mxu1 %v7250_v54  ;;  %v1316_v62 = vcombine.low %v1312_v58, %v1313_v59  ;;  %v7489_v58 = vld [vmem:[%s8902_s1 + $0x140] sm:$0xff]  }
  0xd6   : > { %5559 = vmatpush3.bf16.msra.mxu0 %v7244_v53  ;;  %v7500_v59 = vld [vmem:[%s8902_s1 + $0x100] sm:$0xff]  }
  0xd7   : > { %5560 = vmatprep.subr.bf16.mxu0 %v7250_v54  ;;  %v1323_v1 = vrot.slane %v1316_v62, %v6922_v27  ;;  %v7522_v62 = vld [vmem:[%s8902_s1 + $0x150] sm:$0xff]  }
  0xd8   : > { %5583 = vmatpush3.bf16.msra.mxu1 %v7262_v56 }
  0xd9   : > { %5584 = vmatprep.subr.bf16.mxu1 %v7268_v57  ;;  %v1330_v4 = vrot.slane %v1323_v1, %v6922_v27  ;;  %v7545_v1 = vld [vmem:[%s8902_s1 + $0x118] sm:$0xff]  }
  0xda   : > { %5561 = vmatpush3.bf16.msra.mxu0 %v7262_v56 }
  0xdb   : > { %5562 = vmatprep.subr.bf16.mxu0 %v7268_v57  ;;  %v7334_v7 = vsub.f32 %v1298_v47, %v1330_v4  ;;  %v7565_v4 = vld [vmem:[%s8902_s1 + $0x168] sm:$0xff]  }
  0xdc   : > { %5585 = vmatpush3.bf16.msra.mxu1 %v7280_v60 }
  0xdd   : > { %5586 = vmatprep.subr.bf16.mxu1 %v7286_v61  ;;  %v1341_v10 = vrot.slane %v7334_v7, %v6883_v12  ;;  %v1337_v22 = vrot.slane %v7334_v7, %v6881_v11 }
  0xde   : > { %5563 = vmatpush3.bf16.msra.mxu0 %v7280_v60 }
  0xdf   : > { %5564 = vmatprep.subr.bf16.mxu0 %v7286_v61  ;;  %v7366_v15 = vpack.c.bf16 %v1341_v10, %v1341_v10  ;;  %v7454_v45 = vpack.c.bf16 %v1337_v22, %v1337_v22 }
  0xe0   : > { %5587 = vmatpush3.bf16.msra.mxu1 %v7294_v63 }
  0xe1   : > { %5588 = vmatprep.subr.bf16.mxu1 %v7300_v0 }
  0xe2   : > { %5565 = vmatpush3.bf16.msra.mxu0 %v7294_v63 }
  0xe3   : > { %5566 = vmatprep.subr.bf16.mxu0 %v7300_v0 }
  0xe4   : > { %5589 = vmatpush3.bf16.msra.mxu1 %v7309_v2 }
  0xe5   : > { %5590 = vmatprep.subr.bf16.mxu1 %v7315_v3 }
  0xe6   : > { %5567 = vmatpush3.bf16.msra.mxu0 %v7309_v2 }
  0xe7   : > { %5568 = vmatprep.subr.bf16.mxu0 %v7315_v3 }
  0xe8   : > { %5591 = vmatpush3.bf16.msra.mxu1 %v7325_v5 }
  0xe9   : > { %5592 = vmatprep.subr.bf16.mxu1 %v7331_v6 }
  0xea   : > { %5569 = vmatpush3.bf16.msra.mxu0 %v7325_v5 }
  0xeb   : > { %5570 = vmatprep.subr.bf16.mxu0 %v7331_v6 }
  0xec   : > { %5593 = vmatpush3.bf16.msra.mxu1 %v7341_v8 }
  0xed   : > { %5622 = vmatprep.subr.bf16.mxu1 %v7347_v9 }
  0xee   : > { %5571 = vmatpush3.bf16.msra.mxu0 %v7341_v8 }
  0xef   : > { %1547 = vmatmul.mubr.bf16.vlgmr.msra.gmra.mrb[24].mxu1 %v7207_v42  ;;  %5600 = vmatprep.subr.bf16.mxu0 %v7223_v48 }
  0xf0   : > { %5623 = vmatpush3.bf16.msra.mxu1 %v7357_v13  ;;  %1757 = vmatprep.mubr.bf16.mxu1 %v7237_v52 }
  0xf1   : > { %1507 = vmatmul.mubr.bf16.vlgmr.msra.gmra.mrb[24].mxu0 %v7270_v21  ;;  %5624 = vmatprep.subr.bf16.mxu1 %v7363_v14 }
  0xf2   : > { %5601 = vmatpush3.bf16.msra.mxu0 %v7229_v50  ;;  %1586 = vmatprep.mubr.bf16.mxu0 %v7366_v15 }
  0xf3   : > { %5602 = vmatprep.subr.bf16.mxu0 %v7234_v51 }
  0xf4   : > { %5625 = vmatpush3.bf16.msra.mxu1 %v7374_v16 }
  0xf5   : > { %5626 = vmatprep.subr.bf16.mxu1 %v7382_v17 }
  0xf6   : > { %5603 = vmatpush3.bf16.msra.mxu0 %v7244_v53 }
  0xf7   : > { %5604 = vmatprep.subr.bf16.mxu0 %v7250_v54 }
  0xf8   : > { %5627 = vmatpush3.bf16.msra.mxu1 %v7391_v18 }
  0xf9   : > { %5628 = vmatprep.subr.bf16.mxu1 %v7397_v19 }
  0xfa   : > { %5605 = vmatpush3.bf16.msra.mxu0 %v7262_v56 }
  0xfb   : > { %5606 = vmatprep.subr.bf16.mxu0 %v7268_v57 }
  0xfc   : > { %5629 = vmatpush3.bf16.msra.mxu1 %v6493_v20 }
  0xfd   : > { %5630 = vmatprep.subr.bf16.mxu1 %v6494_v23 }
  0xfe   : > { %5607 = vmatpush3.bf16.msra.mxu0 %v7280_v60  ;;  %v7506_v60 = vld [vmem:[%s8902_s1 + $0x148] sm:$0xff]  }
  0xff   : > { %5608 = vmatprep.subr.bf16.mxu0 %v7286_v61  ;;  %v7514_v61 = vld [vmem:[%s8902_s1 + $0x108] sm:$0xff]  }
 0x100   : > { %5631 = vmatpush3.bf16.msra.mxu1 %v6495_v24 }
 0x101   : > { %5632 = vmatprep.subr.bf16.mxu1 %v6496_v25 }
 0x102   : > { %5609 = vmatpush3.bf16.msra.mxu0 %v7294_v63  ;;  %v5330_v29 = vpop.f32.mrb[0].mxu1  ;;  %v5308_v31 = vpop.f32.mrb[0].mxu0  ;;  %v7531_v63 = vld [vmem:[%s8902_s1 + $0x110] sm:$0xff]  }
 0x103   : > { %v5331_v30 = vpop.f32.mrb[1].mxu1  ;;  %5610 = vmatprep.subr.bf16.mxu0 %v7300_v0  ;;  %v5309_v35 = vpop.f32.mrb[1].mxu0  ;;  %v7537_v0 = vld [vmem:[%s8902_s1 + $0x158] sm:$0xff]  }
 0x104   : > { %v5332_v32 = vadd.f32 %v5331_v30, %v5330_v29  ;;  %v5333_v33 = vpop.f32.mrb[2].mxu1  ;;  %5633 = vmatpush3.bf16.msra.mxu1 %v7422_v26  ;;  %v5310_v38 = vadd.f32 %v5309_v35, %v5308_v31  ;;  %v5311_v39 = vpop.f32.mrb[2].mxu0  ;;  %v7618_v29 = vld [vmem:[%s8902_s1 + $0x180] sm:$0xff]   ;;  %v7624_v30 = vld [vmem:[%s8902_s1 + $0x1c8] sm:$0xff]  }
 0x105   : > { %v5334_v36 = vpop.f32.mrb[3].mxu1  ;;  %5634 = vmatprep.subr.bf16.mxu1 %v7427_v28  ;;  %v5312_v40 = vpop.f32.mrb[3].mxu0  ;;  %v7633_v31 = vld [vmem:[%s8902_s1 + $0x188] sm:$0xff]   ;;  %v7656_v33 = vld [vmem:[%s8902_s1 + $0x1d8] sm:$0xff]   ;;  %v7670_v35 = vld [vmem:[%s8902_s1 + $0x1e0] sm:$0xff]  }
 0x106   : > { %5611 = vmatpush3.bf16.msra.mxu0 %v7309_v2  ;;  %v459_v41 = vadd.f32 %v5332_v32, %v5310_v38  ;;  %v7551_v2 = vld [vmem:[%s8902_s1 + $0x160] sm:$0xff]   ;;  %v7641_v32 = vld [vmem:[%s8902_s1 + $0x1d0] sm:$0xff]   ;;  %v7692_v38 = vld [vmem:[%s8902_s1 + $0x1a8] sm:$0xff]  }
 0x107   : > { %5612 = vmatprep.subr.bf16.mxu0 %v7315_v3  ;;  %v7559_v3 = vld [vmem:[%s8902_s1 + $0x120] sm:$0xff]   ;;  %v7698_v39 = vld [vmem:[%s8902_s1 + $0x1f0] sm:$0xff]  }
 0x108   : > { %5635 = vmatpush3.bf16.msra.mxu1 %v7435_v34  ;;  %v7678_v36 = vld [vmem:[%s8902_s1 + $0x1a0] sm:$0xff]  }
 0x109   : > { %5636 = vmatprep.subr.bf16.mxu1 %v7441_v37 }
 0x10a   : > { %5613 = vmatpush3.bf16.msra.mxu0 %v7325_v5  ;;  %v7573_v5 = vld [vmem:[%s8902_s1 + $0x128] sm:$0xff]  }
 0x10b   : > { %5614 = vmatprep.subr.bf16.mxu0 %v7331_v6  ;;  %v7579_v6 = vld [vmem:[%s8902_s1 + $0x170] sm:$0xff]  }
 0x10c   : > { %5637 = vmatpush3.bf16.msra.mxu1 %v6501_v44 }
 0x10d   : > { %5666 = vmatprep.subr.bf16.mxu1 %v7347_v9 }
 0x10e   : > { %5615 = vmatpush3.bf16.msra.mxu0 %v7341_v8 }
 0x10f   : > { %1758 = vmatmul.mubr.bf16.vlgmr.msra.gmra.mrb[28].mxu1 %v7270_v21  ;;  %5644 = vmatprep.subr.bf16.mxu0 %v7347_v9 }
 0x110   : > { %5667 = vmatpush3.bf16.msra.mxu1 %v7357_v13  ;;  %1837 = vmatprep.mubr.bf16.mxu1 %v7366_v15 }
 0x111   : > { %1587 = vmatmul.mubr.bf16.vlgmr.msra.gmra.mrb[28].mxu0 %v7454_v45  ;;  %5668 = vmatprep.subr.bf16.mxu1 %v7363_v14 }
 0x112   : > { %5645 = vmatpush3.bf16.msra.mxu0 %v7357_v13  ;;  %1797 = vmatprep.mubr.bf16.mxu0 %v7209_v43 }
 0x113   : > { %5646 = vmatprep.subr.bf16.mxu0 %v7363_v14  ;;  %v7587_v14 = vld [vmem:[%s8902_s1 + $0x130] sm:$0xff]  }
 0x114   : > { %5669 = vmatpush3.bf16.msra.mxu1 %v7374_v16 }
 0x115   : > { %5670 = vmatprep.subr.bf16.mxu1 %v7382_v17 }
 0x116   : > { %5647 = vmatpush3.bf16.msra.mxu0 %v7374_v16 }
 0x117   : > { %5648 = vmatprep.subr.bf16.mxu0 %v7382_v17 }
 0x118   : > { %5671 = vmatpush3.bf16.msra.mxu1 %v7391_v18 }
 0x119   : > { %5672 = vmatprep.subr.bf16.mxu1 %v7397_v19 }
 0x11a   : > { %5649 = vmatpush3.bf16.msra.mxu0 %v7391_v18  ;;  %v7593_v18 = vld [vmem:[%s8902_s1 + $0x178] sm:$0xff]  }
 0x11b   : > { %5650 = vmatprep.subr.bf16.mxu0 %v7397_v19 }
 0x11c   : > { %5673 = vmatpush3.bf16.msra.mxu1 %v6493_v20 }
 0x11d   : > { %5674 = vmatprep.subr.bf16.mxu1 %v6494_v23 }
 0x11e   : > { %5651 = vmatpush3.bf16.msra.mxu0 %v6493_v20 }
 0x11f   : > { %5652 = vmatprep.subr.bf16.mxu0 %v6494_v23 }
 0x120   : > { %5675 = vmatpush3.bf16.msra.mxu1 %v6495_v24 }
 0x121   : > { %5676 = vmatprep.subr.bf16.mxu1 %v6496_v25 }
 0x122   : > { %5653 = vmatpush3.bf16.msra.mxu0 %v6495_v24  ;;  %v5374_v46 = vpop.f32.mrb[4].mxu1  ;;  %v5352_v48 = vpop.f32.mrb[4].mxu0 }
 0x123   : > { %v5375_v47 = vpop.f32.mrb[5].mxu1  ;;  %5654 = vmatprep.subr.bf16.mxu0 %v6496_v25  ;;  %v5353_v51 = vpop.f32.mrb[5].mxu0  ;;  %v7602_v25 = vld [vmem:[%s8902_s1 + $0x138] sm:$0xff]  }
 0x124   : > { %v7478_v49 = vadd.f32 %v5375_v47, %v5374_v46  ;;  %v5377_v50 = vpop.f32.mrb[6].mxu1  ;;  %5677 = vmatpush3.bf16.msra.mxu1 %v7422_v26  ;;  %v5354_v54 = vadd.f32 %v5353_v51, %v5352_v48  ;;  %v5355_v55 = vpop.f32.mrb[6].mxu0  ;;  %v7706_v47 = vld [vmem:[%s8902_s1 + $0x1b0] sm:$0xff]  }
 0x125   : > { %v5378_v53 = vpop.f32.mrb[7].mxu1  ;;  %5678 = vmatprep.subr.bf16.mxu1 %v7427_v28  ;;  %v5356_v56 = vpop.f32.mrb[7].mxu0  ;;  %v7712_v50 = vld [vmem:[%s8902_s1 + $0x1f8] sm:$0xff]  }
 0x126   : > { %5655 = vmatpush3.bf16.msra.mxu0 %v7422_v26  ;;  %v504_v57 = vadd.f32 %v5354_v54, %v459_v41  ;;  %v7608_v26 = vld [vmem:[%s8902_s1 + $0x1c0] sm:$0xff]   ;;  %v7720_v56 = vld [vmem:[%s8902_s1 + $0x1b8] sm:$0xff]  }
 0x127   : > { %5656 = vmatprep.subr.bf16.mxu0 %v7427_v28 }
 0x128   : > { %5679 = vmatpush3.bf16.msra.mxu1 %v7435_v34  ;;  %506 = vst.msk [vmem:[%s7491_s8] sm:$0x1] %vm505_vm0, %v504_v57  ;;  %v4954_v57 = vld [vmem:[%s6879_s27 + $0x4] sm:$0x3] }
 0x129   : > { %5680 = vmatprep.subr.bf16.mxu1 %v7441_v37 }
 0x12a   : > { %5657 = vmatpush3.bf16.msra.mxu0 %v7435_v34  ;;  %v7664_v34 = vld [vmem:[%s8902_s1 + $0x198] sm:$0xff]  }
 0x12b   : > { %5658 = vmatprep.subr.bf16.mxu0 %v7441_v37  ;;  %v7684_v37 = vld [vmem:[%s8902_s1 + $0x1e8] sm:$0xff]  }
 0x12c   : > { %5681 = vmatpush3.bf16.msra.mxu1 %v6501_v44 }
 0x12d   : > { %5710 = vmatprep.subr.bf16.mxu1 %v7489_v58 }
 0x12e   : > { %5659 = vmatpush3.bf16.msra.mxu0 %v6501_v44 }
 0x12f   : > { %1838 = vmatmul.mubr.bf16.vlgmr.msra.gmra.mrb[32].mxu1 %v7454_v45  ;;  %5688 = vmatprep.subr.bf16.mxu0 %v7489_v58 }
 0x130   : > { %5711 = vmatpush3.bf16.msra.mxu1 %v7500_v59  ;;  %2048 = vmatprep.mubr.bf16.mxu1 %v7209_v43 }
 0x131   : > { %1798 = vmatmul.mubr.bf16.vlgmr.msra.gmra.mrb[32].mxu0 %v7207_v42  ;;  %5712 = vmatprep.subr.bf16.mxu1 %v7506_v60 }
 0x132   : > { %5689 = vmatpush3.bf16.msra.mxu0 %v7500_v59  ;;  %2008 = vmatprep.mubr.bf16.mxu0 %v7237_v52 }
 0x133   : > { %5690 = vmatprep.subr.bf16.mxu0 %v7506_v60 }
 0x134   : > { %5713 = vmatpush3.bf16.msra.mxu1 %v7514_v61 }
 0x135   : > { %5714 = vmatprep.subr.bf16.mxu1 %v7522_v62 }
 0x136   : > { %5691 = vmatpush3.bf16.msra.mxu0 %v7514_v61 }
 0x137   : > { %5692 = vmatprep.subr.bf16.mxu0 %v7522_v62 }
 0x138   : > { %5715 = vmatpush3.bf16.msra.mxu1 %v7531_v63 }
 0x139   : > { %5716 = vmatprep.subr.bf16.mxu1 %v7537_v0 }
 0x13a   : > { %5693 = vmatpush3.bf16.msra.mxu0 %v7531_v63 }
 0x13b   : > { %5694 = vmatprep.subr.bf16.mxu0 %v7537_v0 }
 0x13c   : > { %5717 = vmatpush3.bf16.msra.mxu1 %v7545_v1 }
 0x13d   : > { %5718 = vmatprep.subr.bf16.mxu1 %v7551_v2 }
 0x13e   : > { %5695 = vmatpush3.bf16.msra.mxu0 %v7545_v1 }
 0x13f   : > { %5696 = vmatprep.subr.bf16.mxu0 %v7551_v2 }
 0x140   : > { %5719 = vmatpush3.bf16.msra.mxu1 %v7559_v3 }
 0x141   : > { %5720 = vmatprep.subr.bf16.mxu1 %v7565_v4 }
 0x142   : > { %5697 = vmatpush3.bf16.msra.mxu0 %v7559_v3  ;;  %v5418_v7 = vpop.f32.mrb[8].mxu1 }
 0x143   : > { %v5419_v8 = vpop.f32.mrb[9].mxu1  ;;  %5698 = vmatprep.subr.bf16.mxu0 %v7565_v4 }
 0x144   : > { %v5396_v9 = vpop.f32.mrb[8].mxu0  ;;  %v5420_v10 = vadd.f32 %v5419_v8, %v5418_v7  ;;  %v5421_v13 = vpop.f32.mrb[10].mxu1  ;;  %5721 = vmatpush3.bf16.msra.mxu1 %v7573_v5 }
 0x145   : > { %v5397_v16 = vpop.f32.mrb[9].mxu0  ;;  %v5422_v17 = vpop.f32.mrb[11].mxu1  ;;  %5722 = vmatprep.subr.bf16.mxu1 %v7579_v6 }
 0x146   : > { %v5398_v19 = vadd.f32 %v5397_v16, %v5396_v9  ;;  %v5399_v20 = vpop.f32.mrb[10].mxu0  ;;  %5699 = vmatpush3.bf16.msra.mxu0 %v7573_v5  ;;  %v7789_v17 = vld [vmem:[%s8902_s1] sm:$0xff]  }
 0x147   : > { %v5400_v23 = vpop.f32.mrb[11].mxu0  ;;  %5700 = vmatprep.subr.bf16.mxu0 %v7579_v6  ;;  %v7806_v20 = vld [vmem:[%s8902_s1 + $0x8] sm:$0xff]  }
 0x148   : > { %v711_v24 = vadd.f32 %v5398_v19, %v7478_v49  ;;  %5723 = vmatpush3.bf16.msra.mxu1 %v7587_v14 }
 0x149   : > { %5724 = vmatprep.subr.bf16.mxu1 %v7593_v18 }
 0x14a   : > { %v756_v28 = vadd.f32 %v5420_v10, %v711_v24  ;;  %5701 = vmatpush3.bf16.msra.mxu0 %v7587_v14  ;;  %v7825_v24 = vld [vmem:[%s8902_s1 + $0x10] sm:$0xff]  }
 0x14b   : > { %5702 = vmatprep.subr.bf16.mxu0 %v7593_v18 }
 0x14c   : > { %4690 = vst.msk [vmem:[%s7491_s8 + $0x1] sm:$0x1] %vm505_vm0, %v756_v28  ;;  %5725 = vmatpush3.bf16.msra.mxu1 %v7602_v25 }
 0x14d   : > { %5754 = vmatprep.subr.bf16.mxu1 %v7608_v26 }
 0x14e   : > { %5703 = vmatpush3.bf16.msra.mxu0 %v7602_v25 }
 0x14f   : > { %2049 = vmatmul.mubr.bf16.vlgmr.msra.gmra.mrb[36].mxu1 %v7207_v42  ;;  %5732 = vmatprep.subr.bf16.mxu0 %v7489_v58  ;;  %v2356_v58 = vrot.slane %v4954_v57, %v6881_v11 }
 0x150   : > { %5755 = vmatpush3.bf16.msra.mxu1 %v7618_v29  ;;  %2259 = vmatprep.mubr.bf16.mxu1 %v7237_v52  ;;  %v7650_v52 = vld [vmem:[%s8902_s1 + $0x190] sm:$0xff]  }
 0x151   : > { %2009 = vmatmul.mubr.bf16.vlgmr.msra.gmra.mrb[36].mxu0 %v7270_v21  ;;  %5756 = vmatprep.subr.bf16.mxu1 %v7624_v30 }
 0x152   : > { %5733 = vmatpush3.bf16.msra.mxu0 %v7500_v59  ;;  %2088 = vmatprep.mubr.bf16.mxu0 %v7366_v15  ;;  %v2360_v59 = vrot.slane %v4954_v57, %v6883_v12 }
 0x153   : > { %5734 = vmatprep.subr.bf16.mxu0 %v7506_v60  ;;  %v7739_v60 = vpack.c.bf16 %v2356_v58, %v2356_v58  ;;  %v7923_v58 = vld [vmem:[%s8902_s1 + $0x80] sm:$0xff]  }
 0x154   : > { %5757 = vmatpush3.bf16.msra.mxu1 %v7633_v31 }
 0x155   : > { %5758 = vmatprep.subr.bf16.mxu1 %v7641_v32 }
 0x156   : > { %5735 = vmatpush3.bf16.msra.mxu0 %v7514_v61  ;;  %v7741_v61 = vpack.c.bf16 %v2360_v59, %v2360_v59  ;;  %v7929_v59 = vld [vmem:[%s8902_s1 + $0xc8] sm:$0xff]  }
 0x157   : > { %5736 = vmatprep.subr.bf16.mxu0 %v7522_v62 }
 0x158   : > { %5759 = vmatpush3.bf16.msra.mxu1 %v7650_v52 }
 0x159   : > { %5760 = vmatprep.subr.bf16.mxu1 %v7656_v33 }
 0x15a   : > { %5737 = vmatpush3.bf16.msra.mxu0 %v7531_v63 }
 0x15b   : > { %5738 = vmatprep.subr.bf16.mxu0 %v7537_v0 }
 0x15c   : > { %5761 = vmatpush3.bf16.msra.mxu1 %v7664_v34 }
 0x15d   : > { %5762 = vmatprep.subr.bf16.mxu1 %v7670_v35 }
 0x15e   : > { %5739 = vmatpush3.bf16.msra.mxu0 %v7545_v1 }
 0x15f   : > { %5740 = vmatprep.subr.bf16.mxu0 %v7551_v2 }
 0x160   : > { %5763 = vmatpush3.bf16.msra.mxu1 %v7678_v36 }
 0x161   : > { %5764 = vmatprep.subr.bf16.mxu1 %v7684_v37 }
 0x162   : > { %5741 = vmatpush3.bf16.msra.mxu0 %v7559_v3  ;;  %v5462_v40 = vpop.f32.mrb[12].mxu1 }
 0x163   : > { %v5463_v41 = vpop.f32.mrb[13].mxu1  ;;  %5742 = vmatprep.subr.bf16.mxu0 %v7565_v4 }
 0x164   : > { %v5440_v44 = vpop.f32.mrb[12].mxu0  ;;  %v5464_v22 = vadd.f32 %v5463_v41, %v5462_v40  ;;  %v5465_v46 = vpop.f32.mrb[14].mxu1  ;;  %5765 = vmatpush3.bf16.msra.mxu1 %v7692_v38 }
 0x165   : > { %v5441_v48 = vpop.f32.mrb[13].mxu0  ;;  %v5466_v49 = vpop.f32.mrb[15].mxu1  ;;  %5766 = vmatprep.subr.bf16.mxu1 %v7698_v39 }
 0x166   : > { %v5442_v51 = vadd.f32 %v5441_v48, %v5440_v44  ;;  %v5443_v53 = vpop.f32.mrb[14].mxu0  ;;  %5743 = vmatpush3.bf16.msra.mxu0 %v7573_v5  ;;  %v7887_v44 = vld [vmem:[%s8902_s1 + $0x30] sm:$0xff]  }
 0x167   : > { %v5444_v54 = vpop.f32.mrb[15].mxu0  ;;  %5744 = vmatprep.subr.bf16.mxu0 %v7579_v6 }
 0x168   : > { %v963_v55 = vadd.f32 %v5464_v22, %v5442_v51  ;;  %5767 = vmatpush3.bf16.msra.mxu1 %v7706_v47  ;;  %v7905_v54 = vld [vmem:[%s8902_s1 + $0x38] sm:$0xff]  }
 0x169   : > { %5768 = vmatprep.subr.bf16.mxu1 %v7712_v50 }
 0x16a   : > { %5745 = vmatpush3.bf16.msra.mxu0 %v7587_v14  ;;  %v7777_v14 = vld [vmem:[%s8902_s1 + $0x40] sm:$0xff]  }
 0x16b   : > { %5746 = vmatprep.subr.bf16.mxu0 %v7593_v18  ;;  %v7795_v18 = vld [vmem:[%s8902_s1 + $0x48] sm:$0xff]  }
 0x16c   : > { %5769 = vmatpush3.bf16.msra.mxu1 %v7720_v56 }
 0x16d   : > { %5798 = vmatprep.subr.bf16.mxu1 %v7608_v26 }
 0x16e   : > { %5747 = vmatpush3.bf16.msra.mxu0 %v7602_v25  ;;  %v7833_v25 = vld [vmem:[%s8902_s1 + $0x58] sm:$0xff]  }
 0x16f   : > { %2260 = vmatmul.mubr.bf16.vlgmr.msra.gmra.mrb[40].mxu1 %v7270_v21  ;;  %5776 = vmatprep.subr.bf16.mxu0 %v7608_v26  ;;  %v2365_v21 = vunpack.c.l.bf16 %v7739_v60 }
 0x170   : > { %5799 = vmatpush3.bf16.msra.mxu1 %v7618_v29  ;;  %2339 = vmatprep.mubr.bf16.mxu1 %v7366_v15  ;;  %v2366_v15 = vunpack.c.l.bf16 %v7741_v61 }
 0x171   : > { %2089 = vmatmul.mubr.bf16.vlgmr.msra.gmra.mrb[40].mxu0 %v7454_v45  ;;  %5800 = vmatprep.subr.bf16.mxu1 %v7624_v30 }
 0x172   : > { %5777 = vmatpush3.bf16.msra.mxu0 %v7618_v29  ;;  %2299 = vmatprep.mubr.bf16.mxu0 %v7209_v43  ;;  %v2369_v43 = vcombine.low %v2365_v21, %v2366_v15  ;;  %v7843_v29 = vld [vmem:[%s8902_s1 + $0x18] sm:$0xff]   ;;  %v7940_v15 = vld [vmem:[%s8902_s1 + $0x88] sm:$0xff]  }
 0x173   : > { %5778 = vmatprep.subr.bf16.mxu0 %v7624_v30  ;;  %v7849_v30 = vld [vmem:[%s8902_s1 + $0x60] sm:$0xff]  }
 0x174   : > { %5801 = vmatpush3.bf16.msra.mxu1 %v7633_v31  ;;  %v2376_v62 = vrot.slane %v2369_v43, %v6922_v27  ;;  %v7948_v43 = vld [vmem:[%s8902_s1 + $0xd0] sm:$0xff]  }
 0x175   : > { %5802 = vmatprep.subr.bf16.mxu1 %v7641_v32 }
 0x176   : > { %5779 = vmatpush3.bf16.msra.mxu0 %v7633_v31  ;;  %v2383_v0 = vrot.slane %v2376_v62, %v6922_v27  ;;  %v7957_v62 = vld [vmem:[%s8902_s1 + $0x90] sm:$0xff]  }
 0x177   : > { %5780 = vmatprep.subr.bf16.mxu0 %v7641_v32  ;;  %v7857_v32 = vld [vmem:[%s8902_s1 + $0x20] sm:$0xff]  }
 0x178   : > { %5803 = vmatpush3.bf16.msra.mxu1 %v7650_v52  ;;  %v7769_v9 = vsub.f32 %v4954_v57, %v2383_v0  ;;  %v6557_v0 = vld [vmem:[%s8902_s1 + $0x98] sm:$0xff]  }
 0x179   : > { %5804 = vmatprep.subr.bf16.mxu1 %v7656_v33 }
 0x17a   : > { %5781 = vmatpush3.bf16.msra.mxu0 %v7650_v52  ;;  %v2394_v16 = vrot.slane %v7769_v9, %v6883_v12  ;;  %v2390_v23 = vrot.slane %v7769_v9, %v6881_v11  ;;  %v7863_v52 = vld [vmem:[%s8902_s1 + $0x68] sm:$0xff]  }
 0x17b   : > { %5782 = vmatprep.subr.bf16.mxu0 %v7656_v33 }
 0x17c   : > { %5805 = vmatpush3.bf16.msra.mxu1 %v7664_v34  ;;  %v7798_v19 = vpack.c.bf16 %v2394_v16, %v2394_v16 }
 0x17d   : > { %5806 = vmatprep.subr.bf16.mxu1 %v7670_v35 }
 0x17e   : > { %5783 = vmatpush3.bf16.msra.mxu0 %v7664_v34  ;;  %v2400_v28 = vunpack.c.l.bf16 %v7798_v19  ;;  %v7872_v34 = vld [vmem:[%s8902_s1 + $0x28] sm:$0xff]  }
 0x17f   : > { %5784 = vmatprep.subr.bf16.mxu0 %v7670_v35  ;;  %v7878_v35 = vld [vmem:[%s8902_s1 + $0x70] sm:$0xff]  }
 0x180   : > { %5807 = vmatpush3.bf16.msra.mxu1 %v7678_v36 }
 0x181   : > { %5808 = vmatprep.subr.bf16.mxu1 %v7684_v37 }
 0x182   : > { %5785 = vmatpush3.bf16.msra.mxu0 %v7678_v36  ;;  %v5506_v63 = vpop.f32.mrb[16].mxu1 }
 0x183   : > { %v5507_v1 = vpop.f32.mrb[17].mxu1  ;;  %5786 = vmatprep.subr.bf16.mxu0 %v7684_v37 }
 0x184   : > { %v5484_v2 = vpop.f32.mrb[16].mxu0  ;;  %v7764_v3 = vadd.f32 %v5507_v1, %v5506_v63  ;;  %v5509_v4 = vpop.f32.mrb[18].mxu1  ;;  %5809 = vmatpush3.bf16.msra.mxu1 %v7692_v38  ;;  %v7963_v63 = vld [vmem:[%s8902_s1 + $0xd8] sm:$0xff]   ;;  %v6558_v1 = vld [vmem:[%s8902_s1 + $0xe0] sm:$0xff]  }
 0x185   : > { %v5485_v5 = vpop.f32.mrb[17].mxu0  ;;  %v5510_v6 = vpop.f32.mrb[19].mxu1  ;;  %5810 = vmatprep.subr.bf16.mxu1 %v7698_v39  ;;  %v7988_v4 = vld [vmem:[%s8902_s1 + $0xa8] sm:$0xff]  }
 0x186   : > { %v5486_v7 = vadd.f32 %v5485_v5, %v5484_v2  ;;  %v5487_v8 = vpop.f32.mrb[18].mxu0  ;;  %5787 = vmatpush3.bf16.msra.mxu0 %v7692_v38  ;;  %v6559_v2 = vld [vmem:[%s8902_s1 + $0xa0] sm:$0xff]   ;;  %v7993_v5 = vld [vmem:[%s8902_s1 + $0xf0] sm:$0xff]  }
 0x187   : > { %v5488_v10 = vpop.f32.mrb[19].mxu0  ;;  %5788 = vmatprep.subr.bf16.mxu0 %v7698_v39 }
 0x188   : > { %v1008_v13 = vadd.f32 %v5486_v7, %v963_v55  ;;  %5811 = vmatpush3.bf16.msra.mxu1 %v7706_v47  ;;  %v7911_v55 = vld [vmem:[%s8902_s1 + $0xc0] sm:$0xff]  }
 0x189   : > { %5812 = vmatprep.subr.bf16.mxu1 %v7712_v50 }
 0x18a   : > { %4739 = vst.msk [vmem:[%s7491_s8 + $0x2] sm:$0x1] %vm505_vm0, %v1008_v13  ;;  %5789 = vmatpush3.bf16.msra.mxu0 %v7706_v47  ;;  %v7893_v47 = vld [vmem:[%s8902_s1 + $0x78] sm:$0xff]   ;;  %v8001_v13 = vld [vmem:[%s8902_s1 + $0xb0] sm:$0xff]  }
 0x18b   : > { %5790 = vmatprep.subr.bf16.mxu0 %v7712_v50 }
 0x18c   : > { %5813 = vmatpush3.bf16.msra.mxu1 %v7720_v56 }
 0x18d   : > { %5842 = vmatprep.subr.bf16.mxu1 %v7777_v14 }
 0x18e   : > { %5791 = vmatpush3.bf16.msra.mxu0 %v7720_v56 }
 0x18f   : > { %2340 = vmatmul.mubr.bf16.vlgmr.msra.gmra.mrb[44].mxu1 %v7454_v45  ;;  %5820 = vmatprep.subr.bf16.mxu0 %v7777_v14  ;;  %v7816_v45 = vld [vmem:[%s8902_s1 + $0x50] sm:$0xff]  }
 0x190   : > { %5843 = vmatpush3.bf16.msra.mxu1 %v7789_v17  ;;  %2633 = vmatprep.mubr.bf16.mxu1 %v7741_v61 }
 0x191   : > { %2300 = vmatmul.mubr.bf16.vlgmr.msra.gmra.mrb[44].mxu0 %v7207_v42  ;;  %5844 = vmatprep.subr.bf16.mxu1 %v7795_v18  ;;  %v7827_v42 = vpack.c.bf16 %v2390_v23, %v2390_v23 }
 0x192   : > { %5821 = vmatpush3.bf16.msra.mxu0 %v7789_v17  ;;  %2593 = vmatprep.mubr.bf16.mxu0 %v7798_v19 }
 0x193   : > { %5822 = vmatprep.subr.bf16.mxu0 %v7795_v18  ;;  %v2399_v26 = vunpack.c.l.bf16 %v7827_v42 }
 0x194   : > { %5845 = vmatpush3.bf16.msra.mxu1 %v7806_v20 }
 0x195   : > { %5846 = vmatprep.subr.bf16.mxu1 %v7816_v45  ;;  %v2403_v31 = vcombine.low %v2399_v26, %v2400_v28 }
 0x196   : > { %5823 = vmatpush3.bf16.msra.mxu0 %v7806_v20 }
 0x197   : > { %5824 = vmatprep.subr.bf16.mxu0 %v7816_v45  ;;  %v2410_v33 = vrot.slane %v2403_v31, %v6922_v27 }
 0x198   : > { %5847 = vmatpush3.bf16.msra.mxu1 %v7825_v24 }
 0x199   : > { %5848 = vmatprep.subr.bf16.mxu1 %v7833_v25  ;;  %v2417_v37 = vrot.slane %v2410_v33, %v6922_v27 }
 0x19a   : > { %5825 = vmatpush3.bf16.msra.mxu0 %v7825_v24 }
 0x19b   : > { %5826 = vmatprep.subr.bf16.mxu0 %v7833_v25  ;;  %v7897_v50 = vsub.f32 %v7769_v9, %v2417_v37 }
 0x19c   : > { %5849 = vmatpush3.bf16.msra.mxu1 %v7843_v29 }
 0x19d   : > { %5850 = vmatprep.subr.bf16.mxu1 %v7849_v30  ;;  %v2428_v57 = vrot.slane %v7897_v50, %v6883_v12 }
 0x19e   : > { %5827 = vmatpush3.bf16.msra.mxu0 %v7843_v29 }
 0x19f   : > { %5828 = vmatprep.subr.bf16.mxu0 %v7849_v30  ;;  %v7932_v21 = vpack.c.bf16 %v2428_v57, %v2428_v57 }
 0x1a0   : > { %5851 = vmatpush3.bf16.msra.mxu1 %v7857_v32 }
 0x1a1   : > { %5852 = vmatprep.subr.bf16.mxu1 %v7863_v52 }
 0x1a2   : > { %5829 = vmatpush3.bf16.msra.mxu0 %v7857_v32  ;;  %v5550_v36 = vpop.f32.mrb[20].mxu1 }
 0x1a3   : > { %v5551_v38 = vpop.f32.mrb[21].mxu1  ;;  %5830 = vmatprep.subr.bf16.mxu0 %v7863_v52 }
 0x1a4   : > { %v5528_v39 = vpop.f32.mrb[20].mxu0  ;;  %v5552_v40 = vadd.f32 %v5551_v38, %v5550_v36  ;;  %v5553_v41 = vpop.f32.mrb[22].mxu1  ;;  %5853 = vmatpush3.bf16.msra.mxu1 %v7872_v34  ;;  %v8048_v38 = vld [vmem:[%s8902_s1 + $0x140] sm:$0xff]  }
 0x1a5   : > { %v5529_v22 = vpop.f32.mrb[21].mxu0  ;;  %v5554_v46 = vpop.f32.mrb[23].mxu1  ;;  %5854 = vmatprep.subr.bf16.mxu1 %v7878_v35  ;;  %v8070_v41 = vld [vmem:[%s8902_s1 + $0x108] sm:$0xff]  }
 0x1a6   : > { %v5530_v48 = vadd.f32 %v5529_v22, %v5528_v39  ;;  %v5531_v49 = vpop.f32.mrb[22].mxu0  ;;  %5831 = vmatpush3.bf16.msra.mxu0 %v7872_v34  ;;  %v8056_v39 = vld [vmem:[%s8902_s1 + $0x100] sm:$0xff]   ;;  %v8087_v22 = vld [vmem:[%s8902_s1 + $0x110] sm:$0xff]   ;;  %v8093_v46 = vld [vmem:[%s8902_s1 + $0x158] sm:$0xff]  }
 0x1a7   : > { %v5532_v51 = vpop.f32.mrb[23].mxu0  ;;  %5832 = vmatprep.subr.bf16.mxu0 %v7878_v35  ;;  %v8115_v49 = vld [vmem:[%s8902_s1 + $0x120] sm:$0xff]  }
 0x1a8   : > { %v1215_v53 = vadd.f32 %v5530_v48, %v7764_v3  ;;  %5855 = vmatpush3.bf16.msra.mxu1 %v7887_v44  ;;  %v6560_v3 = vld [vmem:[%s8902_s1 + $0xe8] sm:$0xff]   ;;  %v8107_v48 = vld [vmem:[%s8902_s1 + $0x160] sm:$0xff]  }
 0x1a9   : > { %5856 = vmatprep.subr.bf16.mxu1 %v7893_v47  ;;  %v8129_v51 = vld [vmem:[%s8902_s1 + $0x128] sm:$0xff]  }
 0x1aa   : > { %v1260_v56 = vadd.f32 %v5552_v40, %v1215_v53  ;;  %5833 = vmatpush3.bf16.msra.mxu0 %v7887_v44  ;;  %v8062_v40 = vld [vmem:[%s8902_s1 + $0x148] sm:$0xff]   ;;  %v8135_v53 = vld [vmem:[%s8902_s1 + $0x170] sm:$0xff]  }
 0x1ab   : > { %5834 = vmatprep.subr.bf16.mxu0 %v7893_v47 }
 0x1ac   : > { %4788 = vst.msk [vmem:[%s7491_s8 + $0x3] sm:$0x1] %vm505_vm0, %v1260_v56  ;;  %5857 = vmatpush3.bf16.msra.mxu1 %v7905_v54 }
 0x1ad   : > { %5886 = vmatprep.subr.bf16.mxu1 %v7911_v55 }
 0x1ae   : > { %5835 = vmatpush3.bf16.msra.mxu0 %v7905_v54 }
 0x1af   : > { %2634 = vmatmul.mubr.bf16.vlgmr.msra.gmra.mrb[48].mxu1 %v7739_v60  ;;  %5864 = vmatprep.subr.bf16.mxu0 %v7777_v14 }
 0x1b0   : > { %5887 = vmatpush3.bf16.msra.mxu1 %v7923_v58  ;;  %2844 = vmatprep.mubr.bf16.mxu1 %v7798_v19 }
 0x1b1   : > { %2594 = vmatmul.mubr.bf16.vlgmr.msra.gmra.mrb[48].mxu0 %v7827_v42  ;;  %5888 = vmatprep.subr.bf16.mxu1 %v7929_v59 }
 0x1b2   : > { %5865 = vmatpush3.bf16.msra.mxu0 %v7789_v17  ;;  %2673 = vmatprep.mubr.bf16.mxu0 %v7932_v21  ;;  %v6564_v17 = vld [vmem:[%s8902_s1 + $0xf8] sm:$0xff]  }
 0x1b3   : > { %5866 = vmatprep.subr.bf16.mxu0 %v7795_v18 }
 0x1b4   : > { %5889 = vmatpush3.bf16.msra.mxu1 %v7940_v15 }
 0x1b5   : > { %5890 = vmatprep.subr.bf16.mxu1 %v7948_v43 }
 0x1b6   : > { %5867 = vmatpush3.bf16.msra.mxu0 %v7806_v20 }
 0x1b7   : > { %5868 = vmatprep.subr.bf16.mxu0 %v7816_v45 }
 0x1b8   : > { %5891 = vmatpush3.bf16.msra.mxu1 %v7957_v62 }
 0x1b9   : > { %5892 = vmatprep.subr.bf16.mxu1 %v7963_v63 }
 0x1ba   : > { %5869 = vmatpush3.bf16.msra.mxu0 %v7825_v24  ;;  %v6565_v24 = vld [vmem:[%s8902_s1 + $0xb8] sm:$0xff]  }
 0x1bb   : > { %5870 = vmatprep.subr.bf16.mxu0 %v7833_v25  ;;  %v2424_v25 = vrot.slane %v7897_v50, %v6881_v11  ;;  %v8121_v50 = vld [vmem:[%s8902_s1 + $0x168] sm:$0xff]  }
 0x1bc   : > { %5893 = vmatpush3.bf16.msra.mxu1 %v6557_v0 }
 0x1bd   : > { %5894 = vmatprep.subr.bf16.mxu1 %v6558_v1  ;;  %v8017_v26 = vpack.c.bf16 %v2424_v25, %v2424_v25 }
 0x1be   : > { %5871 = vmatpush3.bf16.msra.mxu0 %v7843_v29 }
 0x1bf   : > { %5872 = vmatprep.subr.bf16.mxu0 %v7849_v30 }
 0x1c0   : > { %5895 = vmatpush3.bf16.msra.mxu1 %v6559_v2 }
 0x1c1   : > { %5896 = vmatprep.subr.bf16.mxu1 %v6560_v3 }
 0x1c2   : > { %5873 = vmatpush3.bf16.msra.mxu0 %v7857_v32  ;;  %v5594_v6 = vpop.f32.mrb[24].mxu1 }
 0x1c3   : > { %v5595_v7 = vpop.f32.mrb[25].mxu1  ;;  %5874 = vmatprep.subr.bf16.mxu0 %v7863_v52 }
 0x1c4   : > { %v5572_v8 = vpop.f32.mrb[24].mxu0  ;;  %v5596_v9 = vadd.f32 %v5595_v7, %v5594_v6  ;;  %v5597_v10 = vpop.f32.mrb[26].mxu1  ;;  %5897 = vmatpush3.bf16.msra.mxu1 %v7988_v4  ;;  %v8174_v6 = vld [vmem:[%s8902_s1 + $0x180] sm:$0xff]   ;;  %v8180_v7 = vld [vmem:[%s8902_s1 + $0x1c8] sm:$0xff]  }
 0x1c5   : > { %v5573_v14 = vpop.f32.mrb[25].mxu0  ;;  %v5598_v16 = vpop.f32.mrb[27].mxu1  ;;  %5898 = vmatprep.subr.bf16.mxu1 %v7993_v5  ;;  %v8212_v10 = vld [vmem:[%s8902_s1 + $0x1d8] sm:$0xff]  }
 0x1c6   : > { %v5574_v18 = vadd.f32 %v5573_v14, %v5572_v8  ;;  %v5575_v20 = vpop.f32.mrb[26].mxu0  ;;  %5875 = vmatpush3.bf16.msra.mxu0 %v7872_v34  ;;  %v8189_v8 = vld [vmem:[%s8902_s1 + $0x188] sm:$0xff]   ;;  %v8226_v14 = vld [vmem:[%s8902_s1 + $0x1e0] sm:$0xff]  }
 0x1c7   : > { %v5576_v23 = vpop.f32.mrb[27].mxu0  ;;  %5876 = vmatprep.subr.bf16.mxu0 %v7878_v35  ;;  %v8234_v16 = vld [vmem:[%s8902_s1 + $0x1a0] sm:$0xff]   ;;  %v8254_v20 = vld [vmem:[%s8902_s1 + $0x1f0] sm:$0xff]  }
 0x1c8   : > { %v1549_v45 = vadd.f32 %v5596_v9, %v5574_v18  ;;  %5899 = vmatpush3.bf16.msra.mxu1 %v8001_v13  ;;  %v8197_v9 = vld [vmem:[%s8902_s1 + $0x1d0] sm:$0xff]   ;;  %v8248_v18 = vld [vmem:[%s8902_s1 + $0x1a8] sm:$0xff]  }
 0x1c9   : > { %5900 = vmatprep.subr.bf16.mxu1 %v6564_v17 }
 0x1ca   : > { %5877 = vmatpush3.bf16.msra.mxu0 %v7887_v44  ;;  %v8078_v44 = vld [vmem:[%s8902_s1 + $0x150] sm:$0xff]  }
 0x1cb   : > { %5878 = vmatprep.subr.bf16.mxu0 %v7893_v47  ;;  %v8101_v47 = vld [vmem:[%s8902_s1 + $0x118] sm:$0xff]  }
 0x1cc   : > { %5901 = vmatpush3.bf16.msra.mxu1 %v6565_v24 }
 0x1cd   : > { %5930 = vmatprep.subr.bf16.mxu1 %v7911_v55 }
 0x1ce   : > { %5879 = vmatpush3.bf16.msra.mxu0 %v7905_v54 }
 0x1cf   : > { %2845 = vmatmul.mubr.bf16.vlgmr.msra.gmra.mrb[52].mxu1 %v7827_v42  ;;  %5908 = vmatprep.subr.bf16.mxu0 %v7911_v55 }
 0x1d0   : > { %5931 = vmatpush3.bf16.msra.mxu1 %v7923_v58  ;;  %2924 = vmatprep.mubr.bf16.mxu1 %v7932_v21 }
 0x1d1   : > { %2674 = vmatmul.mubr.bf16.vlgmr.msra.gmra.mrb[52].mxu0 %v8017_v26  ;;  %5932 = vmatprep.subr.bf16.mxu1 %v7929_v59 }
 0x1d2   : > { %5909 = vmatpush3.bf16.msra.mxu0 %v7923_v58  ;;  %2884 = vmatprep.mubr.bf16.mxu0 %v7741_v61 }
 0x1d3   : > { %5910 = vmatprep.subr.bf16.mxu0 %v7929_v59  ;;  %v8143_v59 = vld [vmem:[%s8902_s1 + $0x130] sm:$0xff]  }
 0x1d4   : > { %5933 = vmatpush3.bf16.msra.mxu1 %v7940_v15 }
 0x1d5   : > { %5934 = vmatprep.subr.bf16.mxu1 %v7948_v43 }
 0x1d6   : > { %5911 = vmatpush3.bf16.msra.mxu0 %v7940_v15 }
 0x1d7   : > { %5912 = vmatprep.subr.bf16.mxu0 %v7948_v43 }
 0x1d8   : > { %5935 = vmatpush3.bf16.msra.mxu1 %v7957_v62 }
 0x1d9   : > { %5936 = vmatprep.subr.bf16.mxu1 %v7963_v63 }
 0x1da   : > { %5913 = vmatpush3.bf16.msra.mxu0 %v7957_v62  ;;  %v8149_v62 = vld [vmem:[%s8902_s1 + $0x178] sm:$0xff]  }
 0x1db   : > { %5914 = vmatprep.subr.bf16.mxu0 %v7963_v63 }
 0x1dc   : > { %5937 = vmatpush3.bf16.msra.mxu1 %v6557_v0 }
 0x1dd   : > { %5938 = vmatprep.subr.bf16.mxu1 %v6558_v1 }
 0x1de   : > { %5915 = vmatpush3.bf16.msra.mxu0 %v6557_v0 }
 0x1df   : > { %5916 = vmatprep.subr.bf16.mxu0 %v6558_v1 }
 0x1e0   : > { %5939 = vmatpush3.bf16.msra.mxu1 %v6559_v2 }
 0x1e1   : > { %5940 = vmatprep.subr.bf16.mxu1 %v6560_v3 }
 0x1e2   : > { %5917 = vmatpush3.bf16.msra.mxu0 %v6559_v2  ;;  %v5638_v28 = vpop.f32.mrb[28].mxu1 }
 0x1e3   : > { %v5639_v29 = vpop.f32.mrb[29].mxu1  ;;  %5918 = vmatprep.subr.bf16.mxu0 %v6560_v3  ;;  %v8158_v3 = vld [vmem:[%s8902_s1 + $0x138] sm:$0xff]  }
 0x1e4   : > { %v5616_v30 = vpop.f32.mrb[28].mxu0  ;;  %v8038_v31 = vadd.f32 %v5639_v29, %v5638_v28  ;;  %v5641_v32 = vpop.f32.mrb[30].mxu1  ;;  %5941 = vmatpush3.bf16.msra.mxu1 %v7988_v4  ;;  %v8262_v29 = vld [vmem:[%s8902_s1 + $0x1b0] sm:$0xff]  }
 0x1e5   : > { %v5617_v52 = vpop.f32.mrb[29].mxu0  ;;  %v5642_v33 = vpop.f32.mrb[31].mxu1  ;;  %5942 = vmatprep.subr.bf16.mxu1 %v7993_v5  ;;  %v8268_v32 = vld [vmem:[%s8902_s1 + $0x1f8] sm:$0xff]  }
 0x1e6   : > { %v5618_v34 = vadd.f32 %v5617_v52, %v5616_v30  ;;  %v5619_v35 = vpop.f32.mrb[30].mxu0  ;;  %5919 = vmatpush3.bf16.msra.mxu0 %v7988_v4  ;;  %v8164_v4 = vld [vmem:[%s8902_s1 + $0x1c0] sm:$0xff]  }
 0x1e7   : > { %v5620_v36 = vpop.f32.mrb[31].mxu0  ;;  %5920 = vmatprep.subr.bf16.mxu0 %v7993_v5 }
 0x1e8   : > { %v1594_v37 = vadd.f32 %v5618_v34, %v1549_v45  ;;  %5943 = vmatpush3.bf16.msra.mxu1 %v8001_v13  ;;  %v8276_v36 = vld [vmem:[%s8902_s1 + $0x1b8] sm:$0xff]  }
 0x1e9   : > { %5944 = vmatprep.subr.bf16.mxu1 %v6564_v17 }
 0x1ea   : > { %4806 = vst.msk [vmem:[%s7491_s8 + $0x4] sm:$0x1] %vm505_vm0, %v1594_v37  ;;  %5921 = vmatpush3.bf16.msra.mxu0 %v8001_v13  ;;  %v8220_v13 = vld [vmem:[%s8902_s1 + $0x198] sm:$0xff]   ;;  %v5119_v37 = vld [vmem:[%s6879_s27 + $0x6] sm:$0x3]  ;;  %s5291_s27 = sshll.u32 %s6732_s12, 8 }
 0x1eb   : > { %5922 = vmatprep.subr.bf16.mxu0 %v6564_v17  ;;  %v8240_v17 = vld [vmem:[%s8902_s1 + $0x1e8] sm:$0xff]   ;;  %s8847_s6 = scalar_lea.hbm %s8903_s2, %s5291_s27  ;;  %s6662_s12 = scalar_lea.vmem %s8849_s30, 256 }
 0x1ec   : > { %5945 = vmatpush3.bf16.msra.mxu1 %v6565_v24  ;;  %p6663_p12 = scmp.ne.s32.totalorder %s8849_s30, %s6662_s12  ;;  %p6670_p2 = scmp.lt.s32.totalorder %s6668_s18, %s6662_s12 }
 0x1ed   : > { %5974 = vmatprep.subr.bf16.mxu1 %v8048_v38 }
 0x1ee   : > { %5923 = vmatpush3.bf16.msra.mxu0 %v6565_v24  ;;  %p6664_p13 = pnand %p6663_p12, %p6801_p4  ;;  %p6671_p3 = por %p6670_p2, %p6669_p1 }
 0x1ef   : > { %2925 = vmatmul.mubr.bf16.vlgmr.msra.gmra.mrb[56].mxu1 %v8017_v26  ;;  %5952 = vmatprep.subr.bf16.mxu0 %v8048_v38 }
 0x1f0   : > { %5975 = vmatpush3.bf16.msra.mxu1 %v8056_v39  ;;  %3135 = vmatprep.mubr.bf16.mxu1 %v7741_v61  ;;  %p6665_p0 = pneg %p6664_p13 }
 0x1f1   : > { %2885 = vmatmul.mubr.bf16.vlgmr.msra.gmra.mrb[56].mxu0 %v7739_v60  ;;  %5976 = vmatprep.subr.bf16.mxu1 %v8062_v40 }
 0x1f2   : > { %5953 = vmatpush3.bf16.msra.mxu0 %v8056_v39  ;;  %3095 = vmatprep.mubr.bf16.mxu0 %v7798_v19  ;;  %p6672_p5 = pnand %p6671_p3, %p6665_p0 }
 0x1f3   : > { %5954 = vmatprep.subr.bf16.mxu0 %v8062_v40 }
 0x1f4   : > { %5977 = vmatpush3.bf16.msra.mxu1 %v8070_v41 }
 0x1f5   : > { %5978 = vmatprep.subr.bf16.mxu1 %v8078_v44 }
 0x1f6   : > { %5955 = vmatpush3.bf16.msra.mxu0 %v8070_v41 }
 0x1f7   : > { %5956 = vmatprep.subr.bf16.mxu0 %v8078_v44 }
 0x1f8   : > { %5979 = vmatpush3.bf16.msra.mxu1 %v8087_v22 }
 0x1f9   : > { %5980 = vmatprep.subr.bf16.mxu1 %v8093_v46 }
 0x1fa   : > { %5957 = vmatpush3.bf16.msra.mxu0 %v8087_v22 }
 0x1fb   : > { %5958 = vmatprep.subr.bf16.mxu0 %v8093_v46 }
 0x1fc   : > { %5981 = vmatpush3.bf16.msra.mxu1 %v8101_v47 }
 0x1fd   : > { %5982 = vmatprep.subr.bf16.mxu1 %v8107_v48 }
 0x1fe   : > { %5959 = vmatpush3.bf16.msra.mxu0 %v8101_v47 }
 0x1ff   : > { %5960 = vmatprep.subr.bf16.mxu0 %v8107_v48 }
 0x200   : > { %5983 = vmatpush3.bf16.msra.mxu1 %v8115_v49 }
 0x201   : > { %5984 = vmatprep.subr.bf16.mxu1 %v8121_v50 }
 0x202   : > { %5961 = vmatpush3.bf16.msra.mxu0 %v8115_v49  ;;  %v5682_v54 = vpop.f32.mrb[32].mxu1 }
 0x203   : > { %v5683_v55 = vpop.f32.mrb[33].mxu1  ;;  %5962 = vmatprep.subr.bf16.mxu0 %v8121_v50 }
 0x204   : > { %v5660_v56 = vpop.f32.mrb[32].mxu0  ;;  %v5684_v57 = vadd.f32 %v5683_v55, %v5682_v54  ;;  %v5685_v58 = vpop.f32.mrb[34].mxu1  ;;  %5985 = vmatpush3.bf16.msra.mxu1 %v8129_v51 }
 0x205   : > { %v5661_v15 = vpop.f32.mrb[33].mxu0  ;;  %v5686_v43 = vpop.f32.mrb[35].mxu1  ;;  %5986 = vmatprep.subr.bf16.mxu1 %v8135_v53 }
 0x206   : > { %v5662_v63 = vadd.f32 %v5661_v15, %v5660_v56  ;;  %v5663_v0 = vpop.f32.mrb[34].mxu0  ;;  %5963 = vmatpush3.bf16.msra.mxu0 %v8129_v51  ;;  %v8345_v43 = vld [vmem:[%s8902_s1] sm:$0xff]  }
 0x207   : > { %v5664_v1 = vpop.f32.mrb[35].mxu0  ;;  %5964 = vmatprep.subr.bf16.mxu0 %v8135_v53  ;;  %v8362_v0 = vld [vmem:[%s8902_s1 + $0x8] sm:$0xff]  }
 0x208   : > { %v1800_v2 = vadd.f32 %v5662_v63, %v8038_v31  ;;  %5987 = vmatpush3.bf16.msra.mxu1 %v8143_v59 }
 0x209   : > { %5988 = vmatprep.subr.bf16.mxu1 %v8149_v62 }
 0x20a   : > { %v1845_v5 = vadd.f32 %v5684_v57, %v1800_v2  ;;  %5965 = vmatpush3.bf16.msra.mxu0 %v8143_v59  ;;  %v8381_v2 = vld [vmem:[%s8902_s1 + $0x10] sm:$0xff]  }
 0x20b   : > { %5966 = vmatprep.subr.bf16.mxu0 %v8149_v62 }
 0x20c   : > { %4855 = vst.msk [vmem:[%s7491_s8 + $0x5] sm:$0x1] %vm505_vm0, %v1845_v5  ;;  %5989 = vmatpush3.bf16.msra.mxu1 %v8158_v3 }
 0x20d   : > { %6018 = vmatprep.subr.bf16.mxu1 %v8164_v4 }
 0x20e   : > { %5967 = vmatpush3.bf16.msra.mxu0 %v8158_v3 }
 0x20f   : > { %3136 = vmatmul.mubr.bf16.vlgmr.msra.gmra.mrb[60].mxu1 %v7739_v60  ;;  %5996 = vmatprep.subr.bf16.mxu0 %v8048_v38  ;;  %v3443_v38 = vrot.slane %v5119_v37, %v6881_v11 }
 0x210   : > { %6019 = vmatpush3.bf16.msra.mxu1 %v8174_v6  ;;  %3346 = vmatprep.mubr.bf16.mxu1 %v7798_v19  ;;  %v8206_v19 = vld [vmem:[%s8902_s1 + $0x190] sm:$0xff]  }
 0x211   : > { %3096 = vmatmul.mubr.bf16.vlgmr.msra.gmra.mrb[60].mxu0 %v7827_v42  ;;  %6020 = vmatprep.subr.bf16.mxu1 %v8180_v7 }
 0x212   : > { %5997 = vmatpush3.bf16.msra.mxu0 %v8056_v39  ;;  %3175 = vmatprep.mubr.bf16.mxu0 %v7932_v21  ;;  %v3447_v39 = vrot.slane %v5119_v37, %v6883_v12 }
 0x213   : > { %5998 = vmatprep.subr.bf16.mxu0 %v8062_v40  ;;  %v8295_v40 = vpack.c.bf16 %v3443_v38, %v3443_v38  ;;  %v8485_v38 = vld [vmem:[%s8902_s1 + $0xc8] sm:$0xff]  }
 0x214   : > { %6021 = vmatpush3.bf16.msra.mxu1 %v8189_v8 }
 0x215   : > { %6022 = vmatprep.subr.bf16.mxu1 %v8197_v9 }
 0x216   : > { %5999 = vmatpush3.bf16.msra.mxu0 %v8070_v41  ;;  %v8297_v41 = vpack.c.bf16 %v3447_v39, %v3447_v39  ;;  %v8496_v39 = vld [vmem:[%s8902_s1 + $0x88] sm:$0xff]  }
 0x217   : > { %6000 = vmatprep.subr.bf16.mxu0 %v8078_v44 }
 0x218   : > { %6023 = vmatpush3.bf16.msra.mxu1 %v8206_v19 }
 0x219   : > { %6024 = vmatprep.subr.bf16.mxu1 %v8212_v10 }
 0x21a   : > { %6001 = vmatpush3.bf16.msra.mxu0 %v8087_v22 }
 0x21b   : > { %6002 = vmatprep.subr.bf16.mxu0 %v8093_v46 }
 0x21c   : > { %6025 = vmatpush3.bf16.msra.mxu1 %v8220_v13 }
 0x21d   : > { %6026 = vmatprep.subr.bf16.mxu1 %v8226_v14 }
 0x21e   : > { %6003 = vmatpush3.bf16.msra.mxu0 %v8101_v47 }
 0x21f   : > { %6004 = vmatprep.subr.bf16.mxu0 %v8107_v48 }
 0x220   : > { %6027 = vmatpush3.bf16.msra.mxu1 %v8234_v16 }
 0x221   : > { %6028 = vmatprep.subr.bf16.mxu1 %v8240_v17 }
 0x222   : > { %6005 = vmatpush3.bf16.msra.mxu0 %v8115_v49  ;;  %v5726_v23 = vpop.f32.mrb[36].mxu1 }
 0x223   : > { %v5727_v45 = vpop.f32.mrb[37].mxu1  ;;  %6006 = vmatprep.subr.bf16.mxu0 %v8121_v50 }
 0x224   : > { %v5704_v24 = vpop.f32.mrb[36].mxu0  ;;  %v5728_v25 = vadd.f32 %v5727_v45, %v5726_v23  ;;  %v5729_v28 = vpop.f32.mrb[38].mxu1  ;;  %6029 = vmatpush3.bf16.msra.mxu1 %v8248_v18 }
 0x225   : > { %v5705_v30 = vpop.f32.mrb[37].mxu0  ;;  %v5730_v31 = vpop.f32.mrb[39].mxu1  ;;  %6030 = vmatprep.subr.bf16.mxu1 %v8254_v20 }
 0x226   : > { %v5706_v52 = vadd.f32 %v5705_v30, %v5704_v24  ;;  %v5707_v33 = vpop.f32.mrb[38].mxu0  ;;  %6007 = vmatpush3.bf16.msra.mxu0 %v8129_v51  ;;  %v8443_v24 = vld [vmem:[%s8902_s1 + $0x30] sm:$0xff]  }
 0x227   : > { %v5708_v34 = vpop.f32.mrb[39].mxu0  ;;  %6008 = vmatprep.subr.bf16.mxu0 %v8135_v53  ;;  %v8461_v33 = vld [vmem:[%s8902_s1 + $0x38] sm:$0xff]  }
 0x228   : > { %v2051_v35 = vadd.f32 %v5728_v25, %v5706_v52  ;;  %6031 = vmatpush3.bf16.msra.mxu1 %v8262_v29  ;;  %v8467_v34 = vld [vmem:[%s8902_s1 + $0xc0] sm:$0xff]  }
 0x229   : > { %6032 = vmatprep.subr.bf16.mxu1 %v8268_v32 }
 0x22a   : > { %6009 = vmatpush3.bf16.msra.mxu0 %v8143_v59  ;;  %v8333_v59 = vld [vmem:[%s8902_s1 + $0x40] sm:$0xff]  }
 0x22b   : > { %6010 = vmatprep.subr.bf16.mxu0 %v8149_v62  ;;  %v8351_v62 = vld [vmem:[%s8902_s1 + $0x48] sm:$0xff]  }
 0x22c   : > { %6033 = vmatpush3.bf16.msra.mxu1 %v8276_v36 }
 0x22d   : > { %6062 = vmatprep.subr.bf16.mxu1 %v8164_v4 }
 0x22e   : > { %6011 = vmatpush3.bf16.msra.mxu0 %v8158_v3  ;;  %v8389_v3 = vld [vmem:[%s8902_s1 + $0x58] sm:$0xff]  }
 0x22f   : > { %3347 = vmatmul.mubr.bf16.vlgmr.msra.gmra.mrb[64].mxu1 %v7827_v42  ;;  %6040 = vmatprep.subr.bf16.mxu0 %v8164_v4  ;;  %v3452_v42 = vunpack.c.l.bf16 %v8295_v40 }
 0x230   : > { %6063 = vmatpush3.bf16.msra.mxu1 %v8174_v6  ;;  %3426 = vmatprep.mubr.bf16.mxu1 %v7932_v21  ;;  %v3453_v21 = vunpack.c.l.bf16 %v8297_v41 }
 0x231   : > { %3176 = vmatmul.mubr.bf16.vlgmr.msra.gmra.mrb[64].mxu0 %v8017_v26  ;;  %6064 = vmatprep.subr.bf16.mxu1 %v8180_v7 }
 0x232   : > { %6041 = vmatpush3.bf16.msra.mxu0 %v8174_v6  ;;  %3386 = vmatprep.mubr.bf16.mxu0 %v7741_v61  ;;  %v3456_v61 = vcombine.low %v3452_v42, %v3453_v21  ;;  %v8399_v6 = vld [vmem:[%s8902_s1 + $0x18] sm:$0xff]   ;;  %v8504_v42 = vld [vmem:[%s8902_s1 + $0xd0] sm:$0xff]  }
 0x233   : > { %6042 = vmatprep.subr.bf16.mxu0 %v8180_v7  ;;  %v8405_v7 = vld [vmem:[%s8902_s1 + $0x60] sm:$0xff]   ;;  %v8513_v21 = vld [vmem:[%s8902_s1 + $0x90] sm:$0xff]  }
 0x234   : > { %6065 = vmatpush3.bf16.msra.mxu1 %v8189_v8  ;;  %v3463_v44 = vrot.slane %v3456_v61, %v6922_v27  ;;  %v8519_v61 = vld [vmem:[%s8902_s1 + $0xd8] sm:$0xff]  }
 0x235   : > { %6066 = vmatprep.subr.bf16.mxu1 %v8197_v9 }
 0x236   : > { %6043 = vmatpush3.bf16.msra.mxu0 %v8189_v8  ;;  %v3470_v46 = vrot.slane %v3463_v44, %v6922_v27  ;;  %v6621_v44 = vld [vmem:[%s8902_s1 + $0x98] sm:$0xff]  }
 0x237   : > { %6044 = vmatprep.subr.bf16.mxu0 %v8197_v9  ;;  %v8413_v9 = vld [vmem:[%s8902_s1 + $0x20] sm:$0xff]  }
 0x238   : > { %6067 = vmatpush3.bf16.msra.mxu1 %v8206_v19  ;;  %v8325_v56 = vsub.f32 %v5119_v37, %v3470_v46  ;;  %v8479_v37 = vld [vmem:[%s8902_s1 + $0x80] sm:$0xff]  }
 0x239   : > { %6068 = vmatprep.subr.bf16.mxu1 %v8212_v10  ;;  %v6623_v46 = vld [vmem:[%s8902_s1 + $0xa0] sm:$0xff]  }
 0x23a   : > { %6045 = vmatpush3.bf16.msra.mxu0 %v8206_v19  ;;  %v3481_v15 = vrot.slane %v8325_v56, %v6883_v12  ;;  %v3477_v1 = vrot.slane %v8325_v56, %v6881_v11  ;;  %v8419_v19 = vld [vmem:[%s8902_s1 + $0x68] sm:$0xff]  }
 0x23b   : > { %6046 = vmatprep.subr.bf16.mxu0 %v8212_v10 }
 0x23c   : > { %6069 = vmatpush3.bf16.msra.mxu1 %v8220_v13  ;;  %v8354_v63 = vpack.c.bf16 %v3481_v15, %v3481_v15 }
 0x23d   : > { %6070 = vmatprep.subr.bf16.mxu1 %v8226_v14 }
 0x23e   : > { %6047 = vmatpush3.bf16.msra.mxu0 %v8220_v13  ;;  %v3487_v5 = vunpack.c.l.bf16 %v8354_v63  ;;  %v8428_v13 = vld [vmem:[%s8902_s1 + $0x28] sm:$0xff]  }
 0x23f   : > { %6048 = vmatprep.subr.bf16.mxu0 %v8226_v14  ;;  %v8434_v14 = vld [vmem:[%s8902_s1 + $0x70] sm:$0xff]  }
 0x240   : > { %6071 = vmatpush3.bf16.msra.mxu1 %v8234_v16 }
 0x241   : > { %6072 = vmatprep.subr.bf16.mxu1 %v8240_v17 }
 0x242   : > { %6049 = vmatpush3.bf16.msra.mxu0 %v8234_v16  ;;  %v5770_v22 = vpop.f32.mrb[40].mxu1 }
 0x243   : > { %v5771_v47 = vpop.f32.mrb[41].mxu1  ;;  %6050 = vmatprep.subr.bf16.mxu0 %v8240_v17 }
 0x244   : > { %v5748_v48 = vpop.f32.mrb[40].mxu0  ;;  %v8320_v49 = vadd.f32 %v5771_v47, %v5770_v22  ;;  %v5773_v50 = vpop.f32.mrb[42].mxu1  ;;  %6073 = vmatpush3.bf16.msra.mxu1 %v8248_v18  ;;  %v6622_v22 = vld [vmem:[%s8902_s1 + $0xe0] sm:$0xff]   ;;  %v6624_v47 = vld [vmem:[%s8902_s1 + $0xe8] sm:$0xff]  }
 0x245   : > { %v5749_v51 = vpop.f32.mrb[41].mxu0  ;;  %v5774_v53 = vpop.f32.mrb[43].mxu1  ;;  %6074 = vmatprep.subr.bf16.mxu1 %v8254_v20 }
 0x246   : > { %v5750_v54 = vadd.f32 %v5749_v51, %v5748_v48  ;;  %v5751_v55 = vpop.f32.mrb[42].mxu0  ;;  %6051 = vmatpush3.bf16.msra.mxu0 %v8248_v18  ;;  %v8544_v48 = vld [vmem:[%s8902_s1 + $0xa8] sm:$0xff]  }
 0x247   : > { %v5752_v57 = vpop.f32.mrb[43].mxu0  ;;  %6052 = vmatprep.subr.bf16.mxu0 %v8254_v20 }
 0x248   : > { %v2096_v58 = vadd.f32 %v5750_v54, %v2051_v35  ;;  %6075 = vmatpush3.bf16.msra.mxu1 %v8262_v29 }
 0x249   : > { %6076 = vmatprep.subr.bf16.mxu1 %v8268_v32 }
 0x24a   : > { %4904 = vst.msk [vmem:[%s7491_s8 + $0x6] sm:$0x1] %vm505_vm0, %v2096_v58  ;;  %6053 = vmatpush3.bf16.msra.mxu0 %v8262_v29 }
 0x24b   : > { %6054 = vmatprep.subr.bf16.mxu0 %v8268_v32 }
 0x24c   : > { %6077 = vmatpush3.bf16.msra.mxu1 %v8276_v36 }
 0x24d   : > { %6106 = vmatprep.subr.bf16.mxu1 %v8333_v59 }
 0x24e   : > { %6055 = vmatpush3.bf16.msra.mxu0 %v8276_v36 }
 0x24f   : > { %3427 = vmatmul.mubr.bf16.vlgmr.msra.gmra.mrb[68].mxu1 %v8017_v26  ;;  %6084 = vmatprep.subr.bf16.mxu0 %v8333_v59  ;;  %v8372_v26 = vld [vmem:[%s8902_s1 + $0x50] sm:$0xff]  }
 0x250   : > { %6107 = vmatpush3.bf16.msra.mxu1 %v8345_v43  ;;  %3720 = vmatprep.mubr.bf16.mxu1 %v8297_v41 }
 0x251   : > { %3387 = vmatmul.mubr.bf16.vlgmr.msra.gmra.mrb[68].mxu0 %v7739_v60  ;;  %6108 = vmatprep.subr.bf16.mxu1 %v8351_v62  ;;  %v8383_v60 = vpack.c.bf16 %v3477_v1, %v3477_v1  ;;  %v6629_v1 = vld [vmem:[%s8902_s1 + $0xb8] sm:$0xff]  }
 0x252   : > { %6085 = vmatpush3.bf16.msra.mxu0 %v8345_v43  ;;  %3680 = vmatprep.mubr.bf16.mxu0 %v8354_v63 }
 0x253   : > { %6086 = vmatprep.subr.bf16.mxu0 %v8351_v62  ;;  %v3486_v4 = vunpack.c.l.bf16 %v8383_v60 }
 0x254   : > { %6109 = vmatpush3.bf16.msra.mxu1 %v8362_v0 }
 0x255   : > { %6110 = vmatprep.subr.bf16.mxu1 %v8372_v26  ;;  %v3490_v8 = vcombine.low %v3486_v4, %v3487_v5 }
 0x256   : > { %6087 = vmatpush3.bf16.msra.mxu0 %v8362_v0 }
 0x257   : > { %6088 = vmatprep.subr.bf16.mxu0 %v8372_v26  ;;  %v3497_v10 = vrot.slane %v3490_v8, %v6922_v27 }
 0x258   : > { %6111 = vmatpush3.bf16.msra.mxu1 %v8381_v2 }
 0x259   : > { %6112 = vmatprep.subr.bf16.mxu1 %v8389_v3  ;;  %v3504_v17 = vrot.slane %v3497_v10, %v6922_v27  ;;  %v8449_v27 = vld [vmem:[%s8902_s1 + $0x78] sm:$0xff]  }
 0x25a   : > { %6089 = vmatpush3.bf16.msra.mxu0 %v8381_v2 }
 0x25b   : > { %6090 = vmatprep.subr.bf16.mxu0 %v8389_v3  ;;  %v8453_v31 = vsub.f32 %v8325_v56, %v3504_v17  ;;  %v8557_v56 = vld [vmem:[%s8902_s1 + $0xb0] sm:$0xff]   ;;  %v8618_v17 = vld [vmem:[%s8902_s1 + $0x148] sm:$0xff]  }
 0x25c   : > { %6113 = vmatpush3.bf16.msra.mxu1 %v8399_v6 }
 0x25d   : > { %6114 = vmatprep.subr.bf16.mxu1 %v8405_v7  ;;  %v3515_v36 = vrot.slane %v8453_v31, %v6883_v12 }
 0x25e   : > { %6091 = vmatpush3.bf16.msra.mxu0 %v8399_v6 }
 0x25f   : > { %6092 = vmatprep.subr.bf16.mxu0 %v8405_v7  ;;  %v8488_v12 = vpack.c.bf16 %v3515_v36, %v3515_v36 }
 0x260   : > { %6115 = vmatpush3.bf16.msra.mxu1 %v8413_v9 }
 0x261   : > { %6116 = vmatprep.subr.bf16.mxu1 %v8419_v19 }
 0x262   : > { %6093 = vmatpush3.bf16.msra.mxu0 %v8413_v9  ;;  %v5814_v16 = vpop.f32.mrb[44].mxu1 }
 0x263   : > { %v5815_v18 = vpop.f32.mrb[45].mxu1  ;;  %6094 = vmatprep.subr.bf16.mxu0 %v8419_v19 }
 0x264   : > { %v5792_v20 = vpop.f32.mrb[44].mxu0  ;;  %v5816_v23 = vadd.f32 %v5815_v18, %v5814_v16  ;;  %v5817_v45 = vpop.f32.mrb[46].mxu1  ;;  %6117 = vmatpush3.bf16.msra.mxu1 %v8428_v13  ;;  %v8612_v16 = vld [vmem:[%s8902_s1 + $0x100] sm:$0xff]   ;;  %v8626_v18 = vld [vmem:[%s8902_s1 + $0x108] sm:$0xff]  }
 0x265   : > { %v5793_v25 = vpop.f32.mrb[45].mxu0  ;;  %v5818_v28 = vpop.f32.mrb[47].mxu1  ;;  %6118 = vmatprep.subr.bf16.mxu1 %v8434_v14  ;;  %v8649_v45 = vld [vmem:[%s8902_s1 + $0x158] sm:$0xff]  }
 0x266   : > { %v5794_v29 = vadd.f32 %v5793_v25, %v5792_v20  ;;  %v5795_v30 = vpop.f32.mrb[46].mxu0  ;;  %6095 = vmatpush3.bf16.msra.mxu0 %v8428_v13  ;;  %v8634_v20 = vld [vmem:[%s8902_s1 + $0x150] sm:$0xff]   ;;  %v8663_v25 = vld [vmem:[%s8902_s1 + $0x160] sm:$0xff]  }
 0x267   : > { %v5796_v32 = vpop.f32.mrb[47].mxu0  ;;  %6096 = vmatprep.subr.bf16.mxu0 %v8434_v14  ;;  %v8671_v28 = vld [vmem:[%s8902_s1 + $0x120] sm:$0xff]   ;;  %v8691_v30 = vld [vmem:[%s8902_s1 + $0x170] sm:$0xff]  }
 0x268   : > { %v2302_v52 = vadd.f32 %v5794_v29, %v8320_v49  ;;  %6119 = vmatpush3.bf16.msra.mxu1 %v8443_v24  ;;  %v8549_v49 = vld [vmem:[%s8902_s1 + $0xf0] sm:$0xff]   ;;  %v8685_v29 = vld [vmem:[%s8902_s1 + $0x128] sm:$0xff]  }
 0x269   : > { %6120 = vmatprep.subr.bf16.mxu1 %v8449_v27 }
 0x26a   : > { %v2347_v35 = vadd.f32 %v5816_v23, %v2302_v52  ;;  %6097 = vmatpush3.bf16.msra.mxu0 %v8443_v24  ;;  %v8643_v23 = vld [vmem:[%s8902_s1 + $0x110] sm:$0xff]  }
 0x26b   : > { %6098 = vmatprep.subr.bf16.mxu0 %v8449_v27 }
 0x26c   : > { %4953 = vst.msk [vmem:[%s7491_s8 + $0x7] sm:$0x1] %vm505_vm0, %v2347_v35  ;;  %6121 = vmatpush3.bf16.msra.mxu1 %v8461_v33  ;;  %v8699_v35 = vld [vmem:[%s8902_s1 + $0x130] sm:$0xff]  }
 0x26d   : > { %6150 = vmatprep.subr.bf16.mxu1 %v8467_v34 }
 0x26e   : > { %6099 = vmatpush3.bf16.msra.mxu0 %v8461_v33 }
 0x26f   : > { %3721 = vmatmul.mubr.bf16.vlgmr.msra.gmra.mrb[72].mxu1 %v8295_v40  ;;  %6128 = vmatprep.subr.bf16.mxu0 %v8333_v59  ;;  %v6628_v59 = vld [vmem:[%s8902_s1 + $0xf8] sm:$0xff]  }
 0x270   : > { %6151 = vmatpush3.bf16.msra.mxu1 %v8479_v37  ;;  %3931 = vmatprep.mubr.bf16.mxu1 %v8354_v63 }
 0x271   : > { %3681 = vmatmul.mubr.bf16.vlgmr.msra.gmra.mrb[72].mxu0 %v8383_v60  ;;  %6152 = vmatprep.subr.bf16.mxu1 %v8485_v38 }
 0x272   : > { %6129 = vmatpush3.bf16.msra.mxu0 %v8345_v43  ;;  %3760 = vmatprep.mubr.bf16.mxu0 %v8488_v12 }
 0x273   : > { %6130 = vmatprep.subr.bf16.mxu0 %v8351_v62 }
 0x274   : > { %6153 = vmatpush3.bf16.msra.mxu1 %v8496_v39 }
 0x275   : > { %6154 = vmatprep.subr.bf16.mxu1 %v8504_v42 }
 0x276   : > { %6131 = vmatpush3.bf16.msra.mxu0 %v8362_v0 }
 0x277   : > { %6132 = vmatprep.subr.bf16.mxu0 %v8372_v26  ;;  %v3511_v26 = vrot.slane %v8453_v31, %v6881_v11 }
 0x278   : > { %6155 = vmatpush3.bf16.msra.mxu1 %v8513_v21 }
 0x279   : > { %6156 = vmatprep.subr.bf16.mxu1 %v8519_v61 }
 0x27a   : > { %6133 = vmatpush3.bf16.msra.mxu0 %v8381_v2  ;;  %v8573_v2 = vpack.c.bf16 %v3511_v26, %v3511_v26 }
 0x27b   : > { %6134 = vmatprep.subr.bf16.mxu0 %v8389_v3 }
 0x27c   : > { %6157 = vmatpush3.bf16.msra.mxu1 %v6621_v44 }
 0x27d   : > { %6158 = vmatprep.subr.bf16.mxu1 %v6622_v22 }
 0x27e   : > { %6135 = vmatpush3.bf16.msra.mxu0 %v8399_v6 }
 0x27f   : > { %6136 = vmatprep.subr.bf16.mxu0 %v8405_v7 }
 0x280   : > { %6159 = vmatpush3.bf16.msra.mxu1 %v6623_v46 }
 0x281   : > { %6160 = vmatprep.subr.bf16.mxu1 %v6624_v47 }
 0x282   : > { %6137 = vmatpush3.bf16.msra.mxu0 %v8413_v9  ;;  %v5858_v50 = vpop.f32.mrb[48].mxu1 }
 0x283   : > { %v5859_v51 = vpop.f32.mrb[49].mxu1  ;;  %6138 = vmatprep.subr.bf16.mxu0 %v8419_v19 }
 0x284   : > { %v5836_v53 = vpop.f32.mrb[48].mxu0  ;;  %v5860_v54 = vadd.f32 %v5859_v51, %v5858_v50  ;;  %v5861_v55 = vpop.f32.mrb[50].mxu1  ;;  %6161 = vmatpush3.bf16.msra.mxu1 %v8544_v48  ;;  %v8753_v50 = vld [vmem:[%s8902_s1 + $0x1d0] sm:$0xff]   ;;  %v6652_v51 = vld [vmem:[%s8902_s1 + $0x1d8] sm:$0xff]  }
 0x285   : > { %v5837_v57 = vpop.f32.mrb[49].mxu0  ;;  %v5862_v58 = vpop.f32.mrb[51].mxu1  ;;  %6162 = vmatprep.subr.bf16.mxu1 %v8549_v49  ;;  %v6655_v55 = vld [vmem:[%s8902_s1 + $0x1a0] sm:$0xff]  }
 0x286   : > { %v5838_v15 = vadd.f32 %v5837_v57, %v5836_v53  ;;  %v5839_v43 = vpop.f32.mrb[50].mxu0  ;;  %6139 = vmatpush3.bf16.msra.mxu0 %v8428_v13  ;;  %v6653_v53 = vld [vmem:[%s8902_s1 + $0x198] sm:$0xff]   ;;  %v8787_v57 = vld [vmem:[%s8902_s1 + $0x1a8] sm:$0xff]   ;;  %v8792_v58 = vld [vmem:[%s8902_s1 + $0x1f0] sm:$0xff]  }
 0x287   : > { %v5840_v62 = vpop.f32.mrb[51].mxu0  ;;  %6140 = vmatprep.subr.bf16.mxu0 %v8434_v14  ;;  %v8604_v14 = vld [vmem:[%s8902_s1 + $0x140] sm:$0xff]  }
 0x288   : > { %v2636_v0 = vadd.f32 %v5860_v54, %v5838_v15  ;;  %6163 = vmatpush3.bf16.msra.mxu1 %v8557_v56  ;;  %v6654_v54 = vld [vmem:[%s8902_s1 + $0x1e0] sm:$0xff]  }
 0x289   : > { %6164 = vmatprep.subr.bf16.mxu1 %v6628_v59 }
 0x28a   : > { %6141 = vmatpush3.bf16.msra.mxu0 %v8443_v24  ;;  %v8657_v24 = vld [vmem:[%s8902_s1 + $0x118] sm:$0xff]  }
 0x28b   : > { %6142 = vmatprep.subr.bf16.mxu0 %v8449_v27  ;;  %v8677_v27 = vld [vmem:[%s8902_s1 + $0x168] sm:$0xff]  }
 0x28c   : > { %6165 = vmatpush3.bf16.msra.mxu1 %v6629_v1 }
 0x28d   : > { %6194 = vmatprep.subr.bf16.mxu1 %v8467_v34 }
 0x28e   : > { %6143 = vmatpush3.bf16.msra.mxu0 %v8461_v33 }
 0x28f   : > { %3932 = vmatmul.mubr.bf16.vlgmr.msra.gmra.mrb[76].mxu1 %v8383_v60  ;;  %6172 = vmatprep.subr.bf16.mxu0 %v8467_v34 }
 0x290   : > { %6195 = vmatpush3.bf16.msra.mxu1 %v8479_v37  ;;  %4011 = vmatprep.mubr.bf16.mxu1 %v8488_v12 }
 0x291   : > { %3761 = vmatmul.mubr.bf16.vlgmr.msra.gmra.mrb[76].mxu0 %v8573_v2  ;;  %6196 = vmatprep.subr.bf16.mxu1 %v8485_v38 }
 0x292   : > { %6173 = vmatpush3.bf16.msra.mxu0 %v8479_v37  ;;  %3971 = vmatprep.mubr.bf16.mxu0 %v8297_v41 }
 0x293   : > { %6174 = vmatprep.subr.bf16.mxu0 %v8485_v38  ;;  %v8705_v38 = vld [vmem:[%s8902_s1 + $0x178] sm:$0xff]  }
 0x294   : > { %6197 = vmatpush3.bf16.msra.mxu1 %v8496_v39 }
 0x295   : > { %6198 = vmatprep.subr.bf16.mxu1 %v8504_v42 }
 0x296   : > { %6175 = vmatpush3.bf16.msra.mxu0 %v8496_v39 }
 0x297   : > { %6176 = vmatprep.subr.bf16.mxu0 %v8504_v42 }
 0x298   : > { %6199 = vmatpush3.bf16.msra.mxu1 %v8513_v21 }
 0x299   : > { %6200 = vmatprep.subr.bf16.mxu1 %v8519_v61 }
 0x29a   : > { %6177 = vmatpush3.bf16.msra.mxu0 %v8513_v21 }
 0x29b   : > { %6178 = vmatprep.subr.bf16.mxu0 %v8519_v61 }
 0x29c   : > { %6201 = vmatpush3.bf16.msra.mxu1 %v6621_v44 }
 0x29d   : > { %6202 = vmatprep.subr.bf16.mxu1 %v6622_v22 }
 0x29e   : > { %6179 = vmatpush3.bf16.msra.mxu0 %v6621_v44  ;;  %v8714_v44 = vld [vmem:[%s8902_s1 + $0x138] sm:$0xff]  }
 0x29f   : > { %6180 = vmatprep.subr.bf16.mxu0 %v6622_v22  ;;  %v8720_v22 = vld [vmem:[%s8902_s1 + $0x1c0] sm:$0xff]  }
 0x2a0   : > { %6203 = vmatpush3.bf16.msra.mxu1 %v6623_v46 }
 0x2a1   : > { %6204 = vmatprep.subr.bf16.mxu1 %v6624_v47 }
 0x2a2   : > { %6181 = vmatpush3.bf16.msra.mxu0 %v6623_v46  ;;  %v5902_v11 = vpop.f32.mrb[52].mxu1 }
 0x2a3   : > { %v5903_v3 = vpop.f32.mrb[53].mxu1  ;;  %6182 = vmatprep.subr.bf16.mxu0 %v6624_v47  ;;  %v8730_v47 = vld [vmem:[%s8902_s1 + $0x180] sm:$0xff]  }
 0x2a4   : > { %v5880_v4 = vpop.f32.mrb[52].mxu0  ;;  %v8594_v5 = vadd.f32 %v5903_v3, %v5902_v11  ;;  %v5905_v6 = vpop.f32.mrb[54].mxu1  ;;  %6205 = vmatpush3.bf16.msra.mxu1 %v8544_v48  ;;  %v6660_v3 = vld [vmem:[%s8902_s1 + $0x1f8] sm:$0xff]  }
 0x2a5   : > { %v5881_v7 = vpop.f32.mrb[53].mxu0  ;;  %v5906_v8 = vpop.f32.mrb[55].mxu1  ;;  %6206 = vmatprep.subr.bf16.mxu1 %v8549_v49 }
 0x2a6   : > { %v5882_v9 = vadd.f32 %v5881_v7, %v5880_v4  ;;  %v5883_v19 = vpop.f32.mrb[54].mxu0  ;;  %6183 = vmatpush3.bf16.msra.mxu0 %v8544_v48  ;;  %v8736_v48 = vld [vmem:[%s8902_s1 + $0x1c8] sm:$0xff]   ;;  %v6661_v8 = vld [vmem:[%s8902_s1 + $0x1b8] sm:$0xff]  }
 0x2a7   : > { %v5884_v10 = vpop.f32.mrb[55].mxu0  ;;  %6184 = vmatprep.subr.bf16.mxu0 %v8549_v49  ;;  %v8745_v49 = vld [vmem:[%s8902_s1 + $0x188] sm:$0xff]  }
 0x2a8   : > { %v2681_v13 = vadd.f32 %v5882_v9, %v2636_v0  ;;  %6207 = vmatpush3.bf16.msra.mxu1 %v8557_v56 }
 0x2a9   : > { %6208 = vmatprep.subr.bf16.mxu1 %v6628_v59 }
 0x2aa   : > { %4971 = vst.msk [vmem:[%s7491_s8 + $0x8] sm:$0x1] %vm505_vm0, %v2681_v13  ;;  %6185 = vmatpush3.bf16.msra.mxu0 %v8557_v56  ;;  %v6656_v56 = vld [vmem:[%s8902_s1 + $0x1e8] sm:$0xff]  }
 0x2ab   : > { %6186 = vmatprep.subr.bf16.mxu0 %v6628_v59 }
 0x2ac   : > { %6209 = vmatpush3.bf16.msra.mxu1 %v6629_v1 }
 0x2ad   : > { %6238 = vmatprep.subr.bf16.mxu1 %v8604_v14 }
 0x2ae   : > { %6187 = vmatpush3.bf16.msra.mxu0 %v6629_v1  ;;  %v6659_v1 = vld [vmem:[%s8902_s1 + $0x1b0] sm:$0xff]  }
 0x2af   : > { %4012 = vmatmul.mubr.bf16.vlgmr.msra.gmra.mrb[80].mxu1 %v8573_v2  ;;  %6216 = vmatprep.subr.bf16.mxu0 %v8604_v14 }
 0x2b0   : > { %6239 = vmatpush3.bf16.msra.mxu1 %v8612_v16  ;;  %4222 = vmatprep.mubr.bf16.mxu1 %v8297_v41 }
 0x2b1   : > { %3972 = vmatmul.mubr.bf16.vlgmr.msra.gmra.mrb[80].mxu0 %v8295_v40  ;;  %6240 = vmatprep.subr.bf16.mxu1 %v8618_v17 }
 0x2b2   : > { %6217 = vmatpush3.bf16.msra.mxu0 %v8612_v16  ;;  %4182 = vmatprep.mubr.bf16.mxu0 %v8354_v63 }
 0x2b3   : > { %6218 = vmatprep.subr.bf16.mxu0 %v8618_v17 }
 0x2b4   : > { %6241 = vmatpush3.bf16.msra.mxu1 %v8626_v18 }
 0x2b5   : > { %6242 = vmatprep.subr.bf16.mxu1 %v8634_v20 }
 0x2b6   : > { %6219 = vmatpush3.bf16.msra.mxu0 %v8626_v18 }
 0x2b7   : > { %6220 = vmatprep.subr.bf16.mxu0 %v8634_v20 }
 0x2b8   : > { %6243 = vmatpush3.bf16.msra.mxu1 %v8643_v23 }
 0x2b9   : > { %6244 = vmatprep.subr.bf16.mxu1 %v8649_v45 }
 0x2ba   : > { %6221 = vmatpush3.bf16.msra.mxu0 %v8643_v23 }
 0x2bb   : > { %6222 = vmatprep.subr.bf16.mxu0 %v8649_v45 }
 0x2bc   : > { %6245 = vmatpush3.bf16.msra.mxu1 %v8657_v24 }
 0x2bd   : > { %6246 = vmatprep.subr.bf16.mxu1 %v8663_v25 }
 0x2be   : > { %6223 = vmatpush3.bf16.msra.mxu0 %v8657_v24 }
 0x2bf   : > { %6224 = vmatprep.subr.bf16.mxu0 %v8663_v25 }
 0x2c0   : > { %6247 = vmatpush3.bf16.msra.mxu1 %v8671_v28 }
 0x2c1   : > { %6248 = vmatprep.subr.bf16.mxu1 %v8677_v27 }
 0x2c2   : > { %6225 = vmatpush3.bf16.msra.mxu0 %v8671_v28  ;;  %v5946_v31 = vpop.f32.mrb[56].mxu1 }
 0x2c3   : > { %v5947_v32 = vpop.f32.mrb[57].mxu1  ;;  %6226 = vmatprep.subr.bf16.mxu0 %v8677_v27 }
 0x2c4   : > { %v5924_v52 = vpop.f32.mrb[56].mxu0  ;;  %v5948_v33 = vadd.f32 %v5947_v32, %v5946_v31  ;;  %v5949_v34 = vpop.f32.mrb[58].mxu1  ;;  %6249 = vmatpush3.bf16.msra.mxu1 %v8685_v29 }
 0x2c5   : > { %v5925_v36 = vpop.f32.mrb[57].mxu0  ;;  %v5950_v37 = vpop.f32.mrb[59].mxu1  ;;  %6250 = vmatprep.subr.bf16.mxu1 %v8691_v30 }
 0x2c6   : > { %v5926_v39 = vadd.f32 %v5925_v36, %v5924_v52  ;;  %v5927_v42 = vpop.f32.mrb[58].mxu0  ;;  %6227 = vmatpush3.bf16.msra.mxu0 %v8685_v29 }
 0x2c7   : > { %v5928_v21 = vpop.f32.mrb[59].mxu0  ;;  %6228 = vmatprep.subr.bf16.mxu0 %v8691_v30 }
 0x2c8   : > { %v2887_v61 = vadd.f32 %v5926_v39, %v8594_v5  ;;  %6251 = vmatpush3.bf16.msra.mxu1 %v8699_v35 }
 0x2c9   : > { %6252 = vmatprep.subr.bf16.mxu1 %v8705_v38 }
 0x2ca   : > { %v2932_v46 = vadd.f32 %v5948_v33, %v2887_v61  ;;  %6229 = vmatpush3.bf16.msra.mxu0 %v8699_v35 }
 0x2cb   : > { %6230 = vmatprep.subr.bf16.mxu0 %v8705_v38 }
 0x2cc   : > { %5020 = vst.msk [vmem:[%s7491_s8 + $0x9] sm:$0x1] %vm505_vm0, %v2932_v46  ;;  %6253 = vmatpush3.bf16.msra.mxu1 %v8714_v44 }
 0x2cd   : > { %6282 = vmatprep.subr.bf16.mxu1 %v8720_v22 }
 0x2ce   : > { %6231 = vmatpush3.bf16.msra.mxu0 %v8714_v44 }
 0x2cf   : > { %4223 = vmatmul.mubr.bf16.vlgmr.msra.gmra.mrb[84].mxu1 %v8295_v40  ;;  %6260 = vmatprep.subr.bf16.mxu0 %v8604_v14 }
 0x2d0   : > { %6283 = vmatpush3.bf16.msra.mxu1 %v8730_v47  ;;  %4433 = vmatprep.mubr.bf16.mxu1 %v8354_v63  ;;  %v6651_v63 = vld [vmem:[%s8902_s1 + $0x190] sm:$0xff]  }
 0x2d1   : > { %4183 = vmatmul.mubr.bf16.vlgmr.msra.gmra.mrb[84].mxu0 %v8383_v60  ;;  %6284 = vmatprep.subr.bf16.mxu1 %v8736_v48 }
 0x2d2   : > { %6261 = vmatpush3.bf16.msra.mxu0 %v8612_v16  ;;  %4262 = vmatprep.mubr.bf16.mxu0 %v8488_v12 }
 0x2d3   : > { %6262 = vmatprep.subr.bf16.mxu0 %v8618_v17 }
 0x2d4   : > { %6285 = vmatpush3.bf16.msra.mxu1 %v8745_v49 }
 0x2d5   : > { %6286 = vmatprep.subr.bf16.mxu1 %v8753_v50 }
 0x2d6   : > { %6263 = vmatpush3.bf16.msra.mxu0 %v8626_v18 }
 0x2d7   : > { %6264 = vmatprep.subr.bf16.mxu0 %v8634_v20 }
 0x2d8   : > { %6287 = vmatpush3.bf16.msra.mxu1 %v6651_v63 }
 0x2d9   : > { %6288 = vmatprep.subr.bf16.mxu1 %v6652_v51 }
 0x2da   : > { %6265 = vmatpush3.bf16.msra.mxu0 %v8643_v23 }
 0x2db   : > { %6266 = vmatprep.subr.bf16.mxu0 %v8649_v45 }
 0x2dc   : > { %6289 = vmatpush3.bf16.msra.mxu1 %v6653_v53 }
 0x2dd   : > { %6290 = vmatprep.subr.bf16.mxu1 %v6654_v54 }
 0x2de   : > { %6267 = vmatpush3.bf16.msra.mxu0 %v8657_v24 }
 0x2df   : > { %6268 = vmatprep.subr.bf16.mxu0 %v8663_v25 }
 0x2e0   : > { %6291 = vmatpush3.bf16.msra.mxu1 %v6655_v55 }
 0x2e1   : > { %6292 = vmatprep.subr.bf16.mxu1 %v6656_v56 }
 0x2e2   : > { %6269 = vmatpush3.bf16.msra.mxu0 %v8671_v28  ;;  %v5990_v59 = vpop.f32.mrb[60].mxu1 }
 0x2e3   : > { %v5991_v15 = vpop.f32.mrb[61].mxu1  ;;  %6270 = vmatprep.subr.bf16.mxu0 %v8677_v27 }
 0x2e4   : > { %v5968_v43 = vpop.f32.mrb[60].mxu0  ;;  %v5992_v62 = vadd.f32 %v5991_v15, %v5990_v59  ;;  %v5993_v0 = vpop.f32.mrb[62].mxu1  ;;  %6293 = vmatpush3.bf16.msra.mxu1 %v8787_v57 }
 0x2e5   : > { %v5969_v26 = vpop.f32.mrb[61].mxu0  ;;  %v5994_v11 = vpop.f32.mrb[63].mxu1  ;;  %6294 = vmatprep.subr.bf16.mxu1 %v8792_v58 }
 0x2e6   : > { %v5970_v4 = vadd.f32 %v5969_v26, %v5968_v43  ;;  %v5971_v5 = vpop.f32.mrb[62].mxu0  ;;  %6271 = vmatpush3.bf16.msra.mxu0 %v8685_v29 }
 0x2e7   : > { %v5972_v6 = vpop.f32.mrb[63].mxu0  ;;  %6272 = vmatprep.subr.bf16.mxu0 %v8691_v30 }
 0x2e8   : > { %v3138_v7 = vadd.f32 %v5992_v62, %v5970_v4  ;;  %6295 = vmatpush3.bf16.msra.mxu1 %v6659_v1 }
 0x2e9   : > { %6296 = vmatprep.subr.bf16.mxu1 %v6660_v3 }
 0x2ea   : > { %6273 = vmatpush3.bf16.msra.mxu0 %v8699_v35 }
 0x2eb   : > { %6274 = vmatprep.subr.bf16.mxu0 %v8705_v38 }
 0x2ec   : > { %6297 = vmatpush3.bf16.msra.mxu1 %v6661_v8 }
 0x2ed   : > { %6326 = vmatprep.subr.bf16.mxu1 %v8720_v22 }
 0x2ee   : > { %6275 = vmatpush3.bf16.msra.mxu0 %v8714_v44 }
 0x2ef   : > { %4434 = vmatmul.mubr.bf16.vlgmr.msra.gmra.mrb[88].mxu1 %v8383_v60  ;;  %6304 = vmatprep.subr.bf16.mxu0 %v8720_v22 }
 0x2f0   : > { %6327 = vmatpush3.bf16.msra.mxu1 %v8730_v47  ;;  %4513 = vmatprep.mubr.bf16.mxu1 %v8488_v12 }
 0x2f1   : > { %4263 = vmatmul.mubr.bf16.vlgmr.msra.gmra.mrb[88].mxu0 %v8573_v2  ;;  %6328 = vmatprep.subr.bf16.mxu1 %v8736_v48 }
 0x2f2   : > { %6305 = vmatpush3.bf16.msra.mxu0 %v8730_v47  ;;  %4473 = vmatprep.mubr.bf16.mxu0 %v8297_v41 }
 0x2f3   : > { %6306 = vmatprep.subr.bf16.mxu0 %v8736_v48 }
 0x2f4   : > { %6329 = vmatpush3.bf16.msra.mxu1 %v8745_v49 }
 0x2f5   : > { %6330 = vmatprep.subr.bf16.mxu1 %v8753_v50 }
 0x2f6   : > { %6307 = vmatpush3.bf16.msra.mxu0 %v8745_v49 }
 0x2f7   : > { %6308 = vmatprep.subr.bf16.mxu0 %v8753_v50 }
 0x2f8   : > { %6331 = vmatpush3.bf16.msra.mxu1 %v6651_v63 }
 0x2f9   : > { %6332 = vmatprep.subr.bf16.mxu1 %v6652_v51 }
 0x2fa   : > { %6309 = vmatpush3.bf16.msra.mxu0 %v6651_v63 }
 0x2fb   : > { %6310 = vmatprep.subr.bf16.mxu0 %v6652_v51 }
 0x2fc   : > { %6333 = vmatpush3.bf16.msra.mxu1 %v6653_v53 }
 0x2fd   : > { %6334 = vmatprep.subr.bf16.mxu1 %v6654_v54 }
 0x2fe   : > { %6311 = vmatpush3.bf16.msra.mxu0 %v6653_v53 }
 0x2ff   : > { %6312 = vmatprep.subr.bf16.mxu0 %v6654_v54 }
 0x300   : > { %6335 = vmatpush3.bf16.msra.mxu1 %v6655_v55 }
 0x301   : > { %6336 = vmatprep.subr.bf16.mxu1 %v6656_v56 }
 0x302   : > { %6313 = vmatpush3.bf16.msra.mxu0 %v6655_v55  ;;  %v6034_v41 = vpop.f32.mrb[64].mxu1 }
 0x303   : > { %v6035_v60 = vpop.f32.mrb[65].mxu1  ;;  %6314 = vmatprep.subr.bf16.mxu0 %v6656_v56 }
 0x304   : > { %v6012_v12 = vpop.f32.mrb[64].mxu0  ;;  %v6036_v9 = vadd.f32 %v6035_v60, %v6034_v41  ;;  %v6037_v19 = vpop.f32.mrb[66].mxu1  ;;  %6337 = vmatpush3.bf16.msra.mxu1 %v8787_v57 }
 0x305   : > { %v6013_v10 = vpop.f32.mrb[65].mxu0  ;;  %v6038_v13 = vpop.f32.mrb[67].mxu1  ;;  %6338 = vmatprep.subr.bf16.mxu1 %v8792_v58 }
 0x306   : > { %v6014_v14 = vadd.f32 %v6013_v10, %v6012_v12  ;;  %v6015_v16 = vpop.f32.mrb[66].mxu0  ;;  %6315 = vmatpush3.bf16.msra.mxu0 %v8787_v57 }
 0x307   : > { %v6016_v17 = vpop.f32.mrb[67].mxu0  ;;  %6316 = vmatprep.subr.bf16.mxu0 %v8792_v58 }
 0x308   : > { %v3183_v18 = vadd.f32 %v6014_v14, %v3138_v7  ;;  %6339 = vmatpush3.bf16.msra.mxu1 %v6659_v1 }
 0x309   : > { %6340 = vmatprep.subr.bf16.mxu1 %v6660_v3 }
 0x30a   : > { %5069 = vst.msk [vmem:[%s7491_s8 + $0xa] sm:$0x1] %vm505_vm0, %v3183_v18  ;;  %6317 = vmatpush3.bf16.msra.mxu0 %v6659_v1 }
 0x30b   : > { %6318 = vmatprep.subr.bf16.mxu0 %v6660_v3 }
 0x30c   : > { %6341 = vmatpush3.bf16.msra.mxu1 %v6661_v8 }
 0x30e   : > { %6319 = vmatpush3.bf16.msra.mxu0 %v6661_v8 }
 0x30f   : > { %4514 = vmatmul.mubr.bf16.vlgmr.msra.gmra.mrb[92].mxu1 %v8573_v2 }
 0x311   : > { %4474 = vmatmul.mubr.bf16.vlgmr.msra.gmra.mrb[92].mxu0 %v8295_v40 }
 0x322   : > { %v6078_v20 = vpop.f32.mrb[68].mxu1 }
 0x323   : > { %v6079_v23 = vpop.f32.mrb[69].mxu1 }
 0x324   : > { %v6056_v45 = vpop.f32.mrb[68].mxu0  ;;  %v6080_v24 = vadd.f32 %v6079_v23, %v6078_v20  ;;  %v6081_v25 = vpop.f32.mrb[70].mxu1 }
 0x325   : > { %v6057_v28 = vpop.f32.mrb[69].mxu0  ;;  %v6082_v27 = vpop.f32.mrb[71].mxu1 }
 0x326   : > { %v6058_v29 = vadd.f32 %v6057_v28, %v6056_v45  ;;  %v6059_v30 = vpop.f32.mrb[70].mxu0 }
 0x327   : > { %v6060_v31 = vpop.f32.mrb[71].mxu0 }
 0x328   : > { %v3389_v32 = vadd.f32 %v6058_v29, %v6036_v9 }
 0x32a   : > { %v3434_v52 = vadd.f32 %v6080_v24, %v3389_v32 }
 0x32c   : > { %5118 = vst.msk [vmem:[%s7491_s8 + $0xb] sm:$0x1] %vm505_vm0, %v3434_v52 }
 0x342   : > { %v6122_v33 = vpop.f32.mrb[72].mxu1 }
 0x343   : > { %v6123_v34 = vpop.f32.mrb[73].mxu1 }
 0x344   : > { %v6100_v35 = vpop.f32.mrb[72].mxu0  ;;  %v6124_v2 = vadd.f32 %v6123_v34, %v6122_v33  ;;  %v6125_v36 = vpop.f32.mrb[74].mxu1 }
 0x345   : > { %v6101_v40 = vpop.f32.mrb[73].mxu0  ;;  %v6126_v37 = vpop.f32.mrb[75].mxu1 }
 0x346   : > { %v6102_v38 = vadd.f32 %v6101_v40, %v6100_v35  ;;  %v6103_v39 = vpop.f32.mrb[74].mxu0 }
 0x347   : > { %v6104_v42 = vpop.f32.mrb[75].mxu0 }
 0x348   : > { %v3723_v21 = vadd.f32 %v6124_v2, %v6102_v38 }
 0x362   : > { %v6166_v61 = vpop.f32.mrb[76].mxu1 }
 0x363   : > { %v6167_v44 = vpop.f32.mrb[77].mxu1 }
 0x364   : > { %v6144_v22 = vpop.f32.mrb[76].mxu0  ;;  %v6168_v46 = vadd.f32 %v6167_v44, %v6166_v61  ;;  %v6169_v47 = vpop.f32.mrb[78].mxu1 }
 0x365   : > { %v6145_v48 = vpop.f32.mrb[77].mxu0  ;;  %v6170_v49 = vpop.f32.mrb[79].mxu1 }
 0x366   : > { %v6146_v50 = vadd.f32 %v6145_v48, %v6144_v22  ;;  %v6147_v63 = vpop.f32.mrb[78].mxu0 }
 0x367   : > { %v6148_v51 = vpop.f32.mrb[79].mxu0 }
 0x368   : > { %v3768_v53 = vadd.f32 %v6146_v50, %v3723_v21 }
 0x36a   : > { %5136 = vst.msk [vmem:[%s7491_s8 + $0xc] sm:$0x1] %vm505_vm0, %v3768_v53 }
 0x382   : > { %v6210_v54 = vpop.f32.mrb[80].mxu1 }
 0x383   : > { %v6211_v55 = vpop.f32.mrb[81].mxu1 }
 0x384   : > { %v6188_v56 = vpop.f32.mrb[80].mxu0  ;;  %v6212_v57 = vadd.f32 %v6211_v55, %v6210_v54  ;;  %v6213_v58 = vpop.f32.mrb[82].mxu1 }
 0x385   : > { %v6189_v59 = vpop.f32.mrb[81].mxu0  ;;  %v6214_v15 = vpop.f32.mrb[83].mxu1 }
 0x386   : > { %v6190_v43 = vadd.f32 %v6189_v59, %v6188_v56  ;;  %v6191_v62 = vpop.f32.mrb[82].mxu0 }
 0x387   : > { %v6192_v0 = vpop.f32.mrb[83].mxu0 }
 0x388   : > { %v3974_v1 = vadd.f32 %v6190_v43, %v6168_v46 }
 0x38a   : > { %v4019_v26 = vadd.f32 %v6212_v57, %v3974_v1 }
 0x38c   : > { %5185 = vst.msk [vmem:[%s7491_s8 + $0xd] sm:$0x1] %vm505_vm0, %v4019_v26 }
 0x3a2   : > { %v6254_v11 = vpop.f32.mrb[84].mxu1 }
 0x3a3   : > { %v6255_v3 = vpop.f32.mrb[85].mxu1 }
 0x3a4   : > { %v6232_v4 = vpop.f32.mrb[84].mxu0  ;;  %v6256_v5 = vadd.f32 %v6255_v3, %v6254_v11  ;;  %v6257_v6 = vpop.f32.mrb[86].mxu1 }
 0x3a5   : > { %v6233_v7 = vpop.f32.mrb[85].mxu0  ;;  %v6258_v8 = vpop.f32.mrb[87].mxu1 }
 0x3a6   : > { %v6234_v41 = vadd.f32 %v6233_v7, %v6232_v4  ;;  %v6235_v60 = vpop.f32.mrb[86].mxu0 }
 0x3a7   : > { %v6236_v12 = vpop.f32.mrb[87].mxu0 }
 0x3a8   : > { %v4225_v9 = vadd.f32 %v6256_v5, %v6234_v41 }
 0x3c2   : > { %v6298_v19 = vpop.f32.mrb[88].mxu1 }
 0x3c3   : > { %v6299_v10 = vpop.f32.mrb[89].mxu1 }
 0x3c4   : > { %v6276_v13 = vpop.f32.mrb[88].mxu0  ;;  %v6300_v14 = vadd.f32 %v6299_v10, %v6298_v19  ;;  %v6301_v16 = vpop.f32.mrb[90].mxu1 }
 0x3c5   : > { %v6277_v17 = vpop.f32.mrb[89].mxu0  ;;  %v6302_v18 = vpop.f32.mrb[91].mxu1 }
 0x3c6   : > { %v6278_v20 = vadd.f32 %v6277_v17, %v6276_v13  ;;  %v6279_v23 = vpop.f32.mrb[90].mxu0 }
 0x3c7   : > { %v6280_v45 = vpop.f32.mrb[91].mxu0 }
 0x3c8   : > { %v4270_v24 = vadd.f32 %v6278_v20, %v4225_v9 }
 0x3ca   : > { %5234 = vst.msk [vmem:[%s7491_s8 + $0xe] sm:$0x1] %vm505_vm0, %v4270_v24 }
 0x3e2   : > { %v6342_v25 = vpop.f32.mrb[92].mxu1 }
 0x3e3   : > { %v6343_v28 = vpop.f32.mrb[93].mxu1 }
 0x3e4   : > { %v6320_v27 = vpop.f32.mrb[92].mxu0  ;;  %v6344_v29 = vadd.f32 %v6343_v28, %v6342_v25  ;;  %v6345_v30 = vpop.f32.mrb[94].mxu1 }
 0x3e5   : > { %v6321_v31 = vpop.f32.mrb[93].mxu0  ;;  %v6346_v32 = vpop.f32.mrb[95].mxu1 }
 0x3e6   : > { %v6322_v52 = vadd.f32 %v6321_v31, %v6320_v27  ;;  %v6323_v33 = vpop.f32.mrb[94].mxu0 }
 0x3e7   : > { %v6324_v34 = vpop.f32.mrb[95].mxu0 }
 0x3e8   : > { %v4476_v35 = vadd.f32 %v6322_v52, %v6300_v14 }
 0x3ea   : > { %v4521_v2 = vadd.f32 %v6344_v29, %v4476_v35 }
 0x3ec   : > { %5283 = vst.msk [vmem:[%s7491_s8 + $0xf] sm:$0x1] %vm505_vm0, %v4521_v2 }
 0x3ed   : > { %6675 = shalt.err (!%p6672_p5)
}
 0x3ee   : > { %s6676_s4 = scalar_lea.hbm %s8847_s6, 256  ;;  %s6680_s23 = scalar_lea.hbm %s8903_s2, 512 }
 0x3ef   : > { %p6677_p6 = scmp.ne.s32.totalorder %s8847_s6, %s6676_s4  ;;  %p6681_p10 = scmp.lt.u32.totalorder %s8847_s6, %s8903_s2 }
 0x3f0   : > { %p6682_p11 = scmp.lt.u32.totalorder %s6680_s23, %s6676_s4  ;;  %p6684_p13 = scmp.lt.u32.totalorder %s6676_s4, %s8847_s6 }
 0x3f1   : > { %p6678_p7 = pnand %p6677_p6, %p6801_p4 }
 0x3f2   : > { %p6683_p12 = por %p6682_p11, %p6681_p10 }
 0x3f3   : > { %p6679_p9 = pneg %p6678_p7 }
 0x3f4   : > { %p6685_p0 = por %p6684_p13, %p6683_p12 }
 0x3f6   : > { %p6686_p1 = pnand %p6685_p0, %p6679_p9 }
 0x3f8   : > { %6689 = shalt.err (!%p6686_p1)
}
 0x3f9   : > { %s6744_s25 = smov 16   ;;  %s6745_s28 = smov 1  }
 0x3fa   : > { %6348 = dma.vmem_to_hbm [thread:$0]  (%p6801_p4), %s8849_s30, 256, %s8847_s6, %s8855_s7, %s6744_s25, %s6744_s25, %s6745_s28  }
 0x3fb PF: > { %p6354_p2 = scmp.ge.s32.totalorder %s6740_s14, 2  ;;  %s4555_s29 = sand.u32 1, %s6720_s9  }
 0x3fc   : > { %s4556_s27 = scalar_lea.sflag [#allocation3], %s4555_s29 }
 0x3fd   : > { %p6351_p3 = pnand %p6354_p2, %p6808_p8 }
 0x3ff   : > { %6715 = dma.done.wait (!%p6351_p3), %s4556_s27, 256  }
 0x400   : > { %6717 = vsyncadd (!%p6351_p3), %s4556_s27, 4294967040  ;;  %s15_s14 = sadd.s32 1, %s6740_s14   ;;  %s8906_s9 = smov %s6724_s10 }
 0x401   : > { %p12_p5 = scmp.ge.s32.totalorder %s15_s14, 4   ;;  %s8907_s10 = smov %s6728_s11 }
 0x402   : > { %s8908_s11 = smov %s6814_s22  ;;  %s8909_s12 = smov %s6736_s13 }
 0x403   : > { %s8910_s13 = smov %s8912_s17  ;;  %14 = sbr.rel (!%p12_p5) target bundleno = 4 (0x4), region = 84 }
 0x40a   :  { %4561 = vsyncpa [#allocation3], 1 }
 0x40b   :  { %4563 = vsyncpa [#allocation3 + $0x1], 1 }

</bundles_post_ra>
